<compile_context>
chip_gen: v7x
topology: tpu7x:2x2x1
jax: 0.10.0
libtpu: 0.0.40
codegen_flags: <defaults>
</compile_context>

<pallas_src>
import functools
import math

import jax
import jax.numpy as jnp
from jax.experimental import pallas as pl
from jax.experimental.pallas import tpu as pltpu


_HEAD_PAD = 128               # pad forecasting head to 128 output lanes
_SQRT1_2 = 1.0 / math.sqrt(2.0)


# ------------------------- in-kernel helper functions -------------------------

def _gelu_exact(x):
    """Exact (erf) GELU; erf via Abramowitz–Stegun 7.1.26 (max |err| ~1.5e-7)."""
    z = x * _SQRT1_2
    az = jnp.abs(z)
    t = 1.0 / (1.0 + 0.3275911 * az)
    poly = ((((1.061405429 * t - 1.453152027) * t + 1.421413741) * t
             - 0.284496736) * t + 0.254829592) * t
    erf_abs = 1.0 - poly * jnp.exp(-az * az)
    erf_z = jnp.where(z >= 0.0, erf_abs, -erf_abs)
    return 0.5 * x * (1.0 + erf_z)


def _layernorm(y, gamma, beta):
    mean = jnp.mean(y, axis=-1, keepdims=True)
    yc = y - mean
    var = jnp.mean(yc * yc, axis=-1, keepdims=True)
    return yc * jax.lax.rsqrt(var + 1e-5) * gamma + beta


# ------------------------------ fused model kernel ----------------------------

def _fused_forecaster_kernel(
        # SMEM scalars
        pe_w_ref, gates_ref, lw_ref,
        # VMEM tensors
        x_ref, femb_w_ref, femb_b_ref, temb_w_ref, temb_b_ref, pe_ref,
        wqkv_ref, bqkv_ref, wo_ref, bo_ref, norms_ref,
        ffw1_ref, ffb1_ref, ffw2_ref, ffb2_ref,
        tout_w_ref, tout_b_ref, pre_w_ref, pre_b_ref, head_w_ref, head_b_ref,
        # output
        out_ref,
        *, B, S, D, H, NL):
    dh = D // H
    scale = 1.0 / math.sqrt(dh)
    BS = B * S
    f32 = jnp.float32

    # --- embeddings (forecaster Fin->D, then transformer D->D) + pos. encoding
    h = jnp.dot(x_ref[...], femb_w_ref[...], preferred_element_type=f32) + femb_b_ref[...]
    h = jnp.dot(h, temb_w_ref[...], preferred_element_type=f32) + temb_b_ref[...]
    pe = pe_ref[...] * pe_w_ref[0]
    h = (h.reshape(B, S, D) + pe).reshape(BS, D)

    # --- encoder layers (fully unrolled; all weights VMEM-resident) ----------
    layer_sum = None
    for l in range(NL):
        g = gates_ref[l]                       # sigmoid(gate_l), SMEM scalar
        nrm = norms_ref[l]                     # (4, D): n1_g, n1_b, n2_g, n2_b
        bo = bo_ref[l]                         # (2, D): out-proj biases (both branches)

        # fused QKV for BOTH attention branches: (BS, D) @ (D, 6D)
        qkv = jnp.dot(h, wqkv_ref[l], preferred_element_type=f32) + bqkv_ref[l]

        branch_out = []
        for br in range(2):                    # 0: FullAttention, 1: ProbAttention(==full)
            off = br * 3 * D
            q = qkv[:, off:off + D].reshape(B, S, D)
            k = qkv[:, off + D:off + 2 * D].reshape(B, S, D)
            v = qkv[:, off + 2 * D:off + 3 * D].reshape(B, S, D)
            heads = []
            for hh in range(H):
                lo, hi = hh * dh, (hh + 1) * dh
                qh, kh, vh = q[..., lo:hi], k[..., lo:hi], v[..., lo:hi]
                s = jnp.einsum("bld,bsd->bls", qh, kh,
                               preferred_element_type=f32) * scale
                m = jnp.max(s, axis=-1, keepdims=True)
                p = jnp.exp(s - m)
                p = p / jnp.sum(p, axis=-1, keepdims=True)
                heads.append(jnp.einsum("bls,bsd->bld", p, vh,
                                        preferred_element_type=f32))
            branch_out.append(jnp.concatenate(heads, axis=-1).reshape(BS, D))

        # gated combine folded into one stacked output projection:
        #   g*(O1@Wo1 + bo1) + (1-g)*(O2@Wo2 + bo2)
        cat = jnp.concatenate([g * branch_out[0], (1.0 - g) * branch_out[1]], axis=-1)
        proj = jnp.dot(cat, wo_ref[l], preferred_element_type=f32)
        proj = proj + g * bo[0:1, :] + (1.0 - g) * bo[1:2, :]

        # residual + norm1
        y = _layernorm(h + proj, nrm[0:1, :], nrm[1:2, :])

        # feed-forward (GELU fused in-kernel), residual + norm2
        ff = jnp.dot(y, ffw1_ref[l], preferred_element_type=f32) + ffb1_ref[l]
        ff = _gelu_exact(ff)
        ff = jnp.dot(ff, ffw2_ref[l], preferred_element_type=f32) + ffb2_ref[l]
        h = _layernorm(y + ff, nrm[2:3, :], nrm[3:4, :])

        # softmax(layer_weights)-weighted running sum of layer outputs
        contrib = lw_ref[l] * h
        layer_sum = contrib if layer_sum is None else layer_sum + contrib

    # --- transformer output projection (D -> D) ------------------------------
    hw = jnp.dot(layer_sum, tout_w_ref[...], preferred_element_type=f32) + tout_b_ref[...]

    # --- last token per batch, pre-output Linear+GELU, forecasting head ------
    last_rows = [hw[b * S + (S - 1): b * S + S, :] for b in range(B)]
    h_last = jnp.concatenate(last_rows, axis=0)                     # (B, D)
    z = jnp.dot(h_last, pre_w_ref[...], preferred_element_type=f32) + pre_b_ref[...]
    z = _gelu_exact(z)
    out = jnp.dot(z, head_w_ref[...], preferred_element_type=f32) + head_b_ref[...]
    out_ref[...] = out.astype(out_ref.dtype)


# ---------------------------------- wrapper ------------------------------------

def fused_forward(x, pk, cfg):
    B = x.shape[0]
    S, Fin, D = cfg["seq_len"], cfg["input_dim"], cfg["hidden_dim"]
    H, NL, P = cfg["num_heads"], cfg["num_layers"], cfg["pred_len"]

    # Informer ProbAttention (factor=5) degenerates to full attention only while
    # factor*ceil(ln L) >= L; the kernel relies on that.
    assert 5 * math.ceil(math.log(S)) >= S, (
        "ProbSparse top-u path not implemented for this seq_len")
    assert x.shape[1] == S * Fin   # reference pad/truncate path not needed here

    x2 = x.reshape(B * S, Fin)     # wrapper-side layout plumbing only

    vmem = pl.BlockSpec(memory_space=pltpu.MemorySpace.VMEM)
    smem = pl.BlockSpec(memory_space=pltpu.MemorySpace.SMEM)
    kern = functools.partial(_fused_forecaster_kernel, B=B, S=S, D=D, H=H, NL=NL)

    out_pad = pl.pallas_call(
        kern,
        out_shape=jax.ShapeDtypeStruct((B, _HEAD_PAD), jnp.float32),
        in_specs=[smem, smem, smem] + [vmem] * 21,
        out_specs=vmem,
    )(pk["pe_w"], pk["gates"], pk["layer_w"],
      x2, pk["femb_w"], pk["femb_b"], pk["temb_w"], pk["temb_b"], pk["pe"],
      pk["wqkv"], pk["bqkv"], pk["wo"], pk["bo"], pk["norms"],
      pk["ffw1"], pk["ffb1"], pk["ffw2"], pk["ffb2"],
      pk["tout_w"], pk["tout_b"], pk["pre_w"], pk["pre_b"],
      pk["head_w"], pk["head_b"])
    return out_pad[:, :P]


# ------------------------------ parameter handling ------------------------------

def make_pe(max_len, d_model):
    position = jnp.arange(max_len, dtype=jnp.float32)[:, None]
    div_term = jnp.exp(
        jnp.arange(0, d_model, 2, dtype=jnp.float32) * (-math.log(10000.0) / d_model))
    ang = position * div_term
    pe = jnp.zeros((max_len, d_model), jnp.float32)
    pe = pe.at[:, 0::2].set(jnp.sin(ang))
    pe = pe.at[:, 1::2].set(jnp.cos(ang))
    return pe[None]  # (1, max_len, d_model)


def build_params(cfg, seed=0):
    key = jax.random.PRNGKey(seed)
    key_iter = iter(jax.random.split(key, 256))

    def lin(in_dim, out_dim):
        k1, k2 = next(key_iter), next(key_iter)
        bound = 1.0 / math.sqrt(in_dim)
        w = jax.random.uniform(k1, (in_dim, out_dim), jnp.float32, -bound, bound)
        b = jax.random.uniform(k2, (out_dim,), jnp.float32, -bound, bound)
        return w, b

    D, Fin, dff = cfg["hidden_dim"], cfg["input_dim"], 4 * cfg["hidden_dim"]
    params = {}
    params["emb_w"], params["emb_b"] = lin(Fin, D)

    t = {}
    t["emb_w"], t["emb_b"] = lin(D, D)
    t["pe"] = make_pe(cfg["seq_len"], D)
    t["pe_weight"] = jnp.ones((1,), jnp.float32)
    layers = []
    for _ in range(cfg["num_layers"]):
        lp = {}
        for name in ("attn1", "attn2"):
            a = {}
            a["wq"], a["bq"] = lin(D, D)
            a["wk"], a["bk"] = lin(D, D)
            a["wv"], a["bv"] = lin(D, D)
            a["wo"], a["bo"] = lin(D, D)
            lp[name] = a
        lp["ff_w1"], lp["ff_b1"] = lin(D, dff)
        lp["ff_w2"], lp["ff_b2"] = lin(dff, D)
        lp["norm1_g"] = jnp.ones((D,), jnp.float32)
        lp["norm1_b"] = jnp.zeros((D,), jnp.float32)
        lp["norm2_g"] = jnp.ones((D,), jnp.float32)
        lp["norm2_b"] = jnp.zeros((D,), jnp.float32)
        lp["gate"] = jnp.zeros((1,), jnp.float32)        # sigmoid(0) = 0.5
        layers.append(lp)
    t["layers"] = layers
    t["layer_weights"] = jnp.ones((cfg["num_layers"],), jnp.float32) / cfg["num_layers"]
    t["out_w"], t["out_b"] = lin(D, D)
    params["transformer"] = t

    params["pre_w"], params["pre_b"] = lin(D, D)
    params["out_w"], params["out_b"] = lin(D, cfg["pred_len"])
    return params


def pack_params(params, cfg):
    """Pack per-layer weights into stacked / concatenated arrays (done once, eagerly)."""
    D, P = cfg["hidden_dim"], cfg["pred_len"]
    t = params["transformer"]
    layers = t["layers"]

    def cat_qkv(lp):
        a1, a2 = lp["attn1"], lp["attn2"]
        return jnp.concatenate(
            [a1["wq"], a1["wk"], a1["wv"], a2["wq"], a2["wk"], a2["wv"]], axis=1)

    def cat_qkv_b(lp):
        a1, a2 = lp["attn1"], lp["attn2"]
        return jnp.concatenate(
            [a1["bq"], a1["bk"], a1["bv"], a2["bq"], a2["bk"], a2["bv"]])[None, :]

    packed = dict(
        # SMEM scalars (parameter-only transforms precomputed once)
        pe_w=t["pe_weight"],                                            # (1,)
        gates=jax.nn.sigmoid(jnp.concatenate([lp["gate"] for lp in layers])),  # (NL,)
        layer_w=jax.nn.softmax(t["layer_weights"]),                     # (NL,)
        # VMEM tensors
        femb_w=params["emb_w"], femb_b=params["emb_b"][None, :],
        temb_w=t["emb_w"], temb_b=t["emb_b"][None, :],
        pe=t["pe"][0, :cfg["seq_len"], :],                              # (S, D)
        wqkv=jnp.stack([cat_qkv(lp) for lp in layers]),                 # (NL, D, 6D)
        bqkv=jnp.stack([cat_qkv_b(lp) for lp in layers]),               # (NL, 1, 6D)
        wo=jnp.stack([jnp.concatenate([lp["attn1"]["wo"], lp["attn2"]["wo"]], axis=0)
                      for lp in layers]),                               # (NL, 2D, D)
        bo=jnp.stack([jnp.stack([lp["attn1"]["bo"], lp["attn2"]["bo"]])
                      for lp in layers]),                               # (NL, 2, D)
        norms=jnp.stack([jnp.stack([lp["norm1_g"], lp["norm1_b"],
                                    lp["norm2_g"], lp["norm2_b"]])
                         for lp in layers]),                            # (NL, 4, D)
        ffw1=jnp.stack([lp["ff_w1"] for lp in layers]),                 # (NL, D, 4D)
        ffb1=jnp.stack([lp["ff_b1"][None, :] for lp in layers]),        # (NL, 1, 4D)
        ffw2=jnp.stack([lp["ff_w2"] for lp in layers]),                 # (NL, 4D, D)
        ffb2=jnp.stack([lp["ff_b2"][None, :] for lp in layers]),        # (NL, 1, D)
        tout_w=t["out_w"], tout_b=t["out_b"][None, :],
        pre_w=params["pre_w"], pre_b=params["pre_b"][None, :],
        # forecasting head padded to 128 output lanes (lane-dense store)
        head_w=jnp.zeros((D, _HEAD_PAD), jnp.float32).at[:, :P].set(params["out_w"]),
        head_b=jnp.zeros((1, _HEAD_PAD), jnp.float32).at[0, :P].set(params["out_b"]),
    )
    return packed


# ----------------------------------- main --------------------------------------

if __name__ == "__main__":
    cfg = dict(
        input_dim=4,
        seq_len=8,       # small: factor*ceil(ln L) >= L  => ProbAttention == FullAttention
        pred_len=12,
        hidden_dim=32,
        num_heads=4,
        num_layers=2,
    )
    params = build_params(cfg, seed=0)
    packed = pack_params(params, cfg)

    batch = 2
    x = jax.random.normal(
        jax.random.PRNGKey(0), (batch, cfg["seq_len"] * cfg["input_dim"]), jnp.float32)

    fwd = jax.jit(lambda inp: fused_forward(inp, packed, cfg))
    out = fwd(x)
    jax.block_until_ready(out)
    assert out.shape == (batch, cfg["pred_len"])
    print("KERNEL_OK")
</pallas_src>

<mosaic_0001>
module attributes {stable_mosaic.version = 11 : i64} {
  func.func @_fused_forecaster_kernel(%arg0: memref<1xf32, #tpu.memory_space<smem>>, %arg1: memref<2xf32, #tpu.memory_space<smem>>, %arg2: memref<2xf32, #tpu.memory_space<smem>>, %arg3: memref<16x4xf32, #tpu.memory_space<vmem>>, %arg4: memref<4x32xf32, #tpu.memory_space<vmem>>, %arg5: memref<1x32xf32, #tpu.memory_space<vmem>>, %arg6: memref<32x32xf32, #tpu.memory_space<vmem>>, %arg7: memref<1x32xf32, #tpu.memory_space<vmem>>, %arg8: memref<8x32xf32, #tpu.memory_space<vmem>>, %arg9: memref<2x32x192xf32, #tpu.memory_space<vmem>>, %arg10: memref<2x1x192xf32, #tpu.memory_space<vmem>>, %arg11: memref<2x64x32xf32, #tpu.memory_space<vmem>>, %arg12: memref<2x2x32xf32, #tpu.memory_space<vmem>>, %arg13: memref<2x4x32xf32, #tpu.memory_space<vmem>>, %arg14: memref<2x32x128xf32, #tpu.memory_space<vmem>>, %arg15: memref<2x1x128xf32, #tpu.memory_space<vmem>>, %arg16: memref<2x128x32xf32, #tpu.memory_space<vmem>>, %arg17: memref<2x1x32xf32, #tpu.memory_space<vmem>>, %arg18: memref<32x32xf32, #tpu.memory_space<vmem>>, %arg19: memref<1x32xf32, #tpu.memory_space<vmem>>, %arg20: memref<32x32xf32, #tpu.memory_space<vmem>>, %arg21: memref<1x32xf32, #tpu.memory_space<vmem>>, %arg22: memref<32x128xf32, #tpu.memory_space<vmem>>, %arg23: memref<1x128xf32, #tpu.memory_space<vmem>>, %arg24: memref<2x128xf32, #tpu.memory_space<vmem>>) attributes {dimension_semantics = [], scalar_prefetch = 0 : i64, scratch_operands = 0 : i64, tpu.core_type = #tpu.core_type<tc>} {
    %c0 = arith.constant 0 : index
    %c0_0 = arith.constant 0 : index
    %0 = vector.load %arg3[%c0, %c0_0] : memref<16x4xf32, #tpu.memory_space<vmem>>, vector<16x4xf32>
    %c0_1 = arith.constant 0 : index
    %c0_2 = arith.constant 0 : index
    %1 = vector.load %arg4[%c0_1, %c0_2] : memref<4x32xf32, #tpu.memory_space<vmem>>, vector<4x32xf32>
    %cst = arith.constant dense<0.000000e+00> : vector<16x32xf32>
    %2 = tpu.matmul %0, %1, %cst {dimension_numbers = #tpu.dot_dimension_numbers<[1], [0], [0], [1], [0, 0, 1, 1], [], []>} : vector<16x4xf32>, vector<4x32xf32>, vector<16x32xf32> -> vector<16x32xf32>
    %c0_3 = arith.constant 0 : index
    %c0_4 = arith.constant 0 : index
    %3 = vector.load %arg5[%c0_3, %c0_4] : memref<1x32xf32, #tpu.memory_space<vmem>>, vector<1x32xf32>
    %4 = vector.broadcast %3 : vector<1x32xf32> to vector<16x32xf32>
    %5 = arith.addf %2, %4 : vector<16x32xf32>
    %c0_5 = arith.constant 0 : index
    %c0_6 = arith.constant 0 : index
    %6 = vector.load %arg6[%c0_5, %c0_6] : memref<32x32xf32, #tpu.memory_space<vmem>>, vector<32x32xf32>
    %cst_7 = arith.constant dense<0.000000e+00> : vector<16x32xf32>
    %7 = tpu.matmul %5, %6, %cst_7 {dimension_numbers = #tpu.dot_dimension_numbers<[1], [0], [0], [1], [0, 0, 1, 1], [], []>} : vector<16x32xf32>, vector<32x32xf32>, vector<16x32xf32> -> vector<16x32xf32>
    %c0_8 = arith.constant 0 : index
    %c0_9 = arith.constant 0 : index
    %8 = vector.load %arg7[%c0_8, %c0_9] : memref<1x32xf32, #tpu.memory_space<vmem>>, vector<1x32xf32>
    %9 = vector.broadcast %8 : vector<1x32xf32> to vector<16x32xf32>
    %10 = arith.addf %7, %9 : vector<16x32xf32>
    %c0_10 = arith.constant 0 : index
    %c0_11 = arith.constant 0 : index
    %11 = vector.load %arg8[%c0_10, %c0_11] : memref<8x32xf32, #tpu.memory_space<vmem>>, vector<8x32xf32>
    %c0_12 = arith.constant 0 : index
    %12 = memref.load %arg0[%c0_12] : memref<1xf32, #tpu.memory_space<smem>>
    %13 = vector.broadcast %12 : f32 to vector<8x32xf32>
    %14 = arith.mulf %11, %13 : vector<8x32xf32>
    %15 = vector.shape_cast %10 : vector<16x32xf32> to vector<2x8x32xf32>
    %16 = vector.shape_cast %14 : vector<8x32xf32> to vector<1x8x32xf32>
    %17 = vector.broadcast %16 : vector<1x8x32xf32> to vector<2x8x32xf32>
    %18 = arith.addf %15, %17 : vector<2x8x32xf32>
    %19 = vector.shape_cast %18 : vector<2x8x32xf32> to vector<16x32xf32>
    %c0_13 = arith.constant 0 : index
    %20 = memref.load %arg1[%c0_13] : memref<2xf32, #tpu.memory_space<smem>>
    %c0_14 = arith.constant 0 : index
    %c0_15 = arith.constant 0 : index
    %c0_16 = arith.constant 0 : index
    %21 = vector.load %arg13[%c0_14, %c0_15, %c0_16] : memref<2x4x32xf32, #tpu.memory_space<vmem>>, vector<1x4x32xf32>
    %22 = vector.shape_cast %21 : vector<1x4x32xf32> to vector<4x32xf32>
    %c0_17 = arith.constant 0 : index
    %c0_18 = arith.constant 0 : index
    %c0_19 = arith.constant 0 : index
    %23 = vector.load %arg12[%c0_17, %c0_18, %c0_19] : memref<2x2x32xf32, #tpu.memory_space<vmem>>, vector<1x2x32xf32>
    %24 = vector.shape_cast %23 : vector<1x2x32xf32> to vector<2x32xf32>
    %c0_20 = arith.constant 0 : index
    %c0_21 = arith.constant 0 : index
    %c0_22 = arith.constant 0 : index
    %25 = vector.load %arg9[%c0_20, %c0_21, %c0_22] : memref<2x32x192xf32, #tpu.memory_space<vmem>>, vector<1x32x192xf32>
    %26 = vector.shape_cast %25 : vector<1x32x192xf32> to vector<32x192xf32>
    %cst_23 = arith.constant dense<0.000000e+00> : vector<16x192xf32>
    %27 = tpu.matmul %19, %26, %cst_23 {dimension_numbers = #tpu.dot_dimension_numbers<[1], [0], [0], [1], [0, 0, 1, 1], [], []>} : vector<16x32xf32>, vector<32x192xf32>, vector<16x192xf32> -> vector<16x192xf32>
    %c0_24 = arith.constant 0 : index
    %c0_25 = arith.constant 0 : index
    %c0_26 = arith.constant 0 : index
    %28 = vector.load %arg10[%c0_24, %c0_25, %c0_26] : memref<2x1x192xf32, #tpu.memory_space<vmem>>, vector<1x1x192xf32>
    %29 = vector.shape_cast %28 : vector<1x1x192xf32> to vector<1x192xf32>
    %30 = vector.broadcast %29 : vector<1x192xf32> to vector<16x192xf32>
    %31 = arith.addf %27, %30 : vector<16x192xf32>
    %32 = vector.extract_strided_slice %31 {offsets = [0, 0], sizes = [16, 32], strides = [1, 1]} : vector<16x192xf32> to vector<16x32xf32>
    %33 = vector.shape_cast %32 : vector<16x32xf32> to vector<2x8x32xf32>
    %34 = vector.extract_strided_slice %31 {offsets = [0, 32], sizes = [16, 32], strides = [1, 1]} : vector<16x192xf32> to vector<16x32xf32>
    %35 = vector.shape_cast %34 : vector<16x32xf32> to vector<2x8x32xf32>
    %36 = vector.extract_strided_slice %31 {offsets = [0, 64], sizes = [16, 32], strides = [1, 1]} : vector<16x192xf32> to vector<16x32xf32>
    %37 = vector.shape_cast %36 : vector<16x32xf32> to vector<2x8x32xf32>
    %38 = vector.extract_strided_slice %33 {offsets = [0, 0, 0], sizes = [2, 8, 8], strides = [1, 1, 1]} : vector<2x8x32xf32> to vector<2x8x8xf32>
    %39 = vector.extract_strided_slice %35 {offsets = [0, 0, 0], sizes = [2, 8, 8], strides = [1, 1, 1]} : vector<2x8x32xf32> to vector<2x8x8xf32>
    %40 = vector.extract_strided_slice %37 {offsets = [0, 0, 0], sizes = [2, 8, 8], strides = [1, 1, 1]} : vector<2x8x32xf32> to vector<2x8x8xf32>
    "tpu.trace_start"() <{level = 10 : i32, message = "bld,bsd->bls"}> : () -> ()
    %cst_27 = arith.constant dense<0.000000e+00> : vector<2x8x8xf32>
    %41 = tpu.matmul %38, %39, %cst_27 {dimension_numbers = #tpu.dot_dimension_numbers<[2], [2], [1], [1], [0, 0, 0, 1, 1, 1], [0], [0]>} : vector<2x8x8xf32>, vector<2x8x8xf32>, vector<2x8x8xf32> -> vector<2x8x8xf32>
    "tpu.trace_stop"() : () -> ()
    %cst_28 = arith.constant 0.353553385 : f32
    %42 = vector.broadcast %cst_28 : f32 to vector<2x8x8xf32>
    %43 = arith.mulf %41, %42 : vector<2x8x8xf32>
    %cst_29 = arith.constant dense<0xFF800000> : vector<2x8xf32>
    %44 = vector.multi_reduction <maximumf>, %43, %cst_29 [2] : vector<2x8x8xf32> to vector<2x8xf32>
    %45 = vector.shape_cast %44 : vector<2x8xf32> to vector<2x8x1xf32>
    %46 = vector.broadcast %45 : vector<2x8x1xf32> to vector<2x8x8xf32>
    %47 = arith.subf %43, %46 : vector<2x8x8xf32>
    %48 = math.exp %47 : vector<2x8x8xf32>
    %cst_30 = arith.constant dense<0.000000e+00> : vector<2x8xf32>
    %49 = vector.multi_reduction <add>, %48, %cst_30 [2] : vector<2x8x8xf32> to vector<2x8xf32>
    %50 = vector.shape_cast %49 : vector<2x8xf32> to vector<2x8x1xf32>
    %51 = vector.broadcast %50 : vector<2x8x1xf32> to vector<2x8x8xf32>
    %52 = arith.divf %48, %51 : vector<2x8x8xf32>
    "tpu.trace_start"() <{level = 10 : i32, message = "bls,bsd->bld"}> : () -> ()
    %cst_31 = arith.constant dense<0.000000e+00> : vector<2x8x8xf32>
    %53 = tpu.matmul %52, %40, %cst_31 {dimension_numbers = #tpu.dot_dimension_numbers<[2], [1], [1], [2], [0, 0, 0, 1, 1, 2], [0], [0]>} : vector<2x8x8xf32>, vector<2x8x8xf32>, vector<2x8x8xf32> -> vector<2x8x8xf32>
    "tpu.trace_stop"() : () -> ()
    %54 = vector.extract_strided_slice %33 {offsets = [0, 0, 8], sizes = [2, 8, 8], strides = [1, 1, 1]} : vector<2x8x32xf32> to vector<2x8x8xf32>
    %55 = vector.extract_strided_slice %35 {offsets = [0, 0, 8], sizes = [2, 8, 8], strides = [1, 1, 1]} : vector<2x8x32xf32> to vector<2x8x8xf32>
    %56 = vector.extract_strided_slice %37 {offsets = [0, 0, 8], sizes = [2, 8, 8], strides = [1, 1, 1]} : vector<2x8x32xf32> to vector<2x8x8xf32>
    "tpu.trace_start"() <{level = 10 : i32, message = "bld,bsd->bls"}> : () -> ()
    %cst_32 = arith.constant dense<0.000000e+00> : vector<2x8x8xf32>
    %57 = tpu.matmul %54, %55, %cst_32 {dimension_numbers = #tpu.dot_dimension_numbers<[2], [2], [1], [1], [0, 0, 0, 1, 1, 1], [0], [0]>} : vector<2x8x8xf32>, vector<2x8x8xf32>, vector<2x8x8xf32> -> vector<2x8x8xf32>
    "tpu.trace_stop"() : () -> ()
    %cst_33 = arith.constant 0.353553385 : f32
    %58 = vector.broadcast %cst_33 : f32 to vector<2x8x8xf32>
    %59 = arith.mulf %57, %58 : vector<2x8x8xf32>
    %cst_34 = arith.constant dense<0xFF800000> : vector<2x8xf32>
    %60 = vector.multi_reduction <maximumf>, %59, %cst_34 [2] : vector<2x8x8xf32> to vector<2x8xf32>
    %61 = vector.shape_cast %60 : vector<2x8xf32> to vector<2x8x1xf32>
    %62 = vector.broadcast %61 : vector<2x8x1xf32> to vector<2x8x8xf32>
    %63 = arith.subf %59, %62 : vector<2x8x8xf32>
    %64 = math.exp %63 : vector<2x8x8xf32>
    %cst_35 = arith.constant dense<0.000000e+00> : vector<2x8xf32>
    %65 = vector.multi_reduction <add>, %64, %cst_35 [2] : vector<2x8x8xf32> to vector<2x8xf32>
    %66 = vector.shape_cast %65 : vector<2x8xf32> to vector<2x8x1xf32>
    %67 = vector.broadcast %66 : vector<2x8x1xf32> to vector<2x8x8xf32>
    %68 = arith.divf %64, %67 : vector<2x8x8xf32>
    "tpu.trace_start"() <{level = 10 : i32, message = "bls,bsd->bld"}> : () -> ()
    %cst_36 = arith.constant dense<0.000000e+00> : vector<2x8x8xf32>
    %69 = tpu.matmul %68, %56, %cst_36 {dimension_numbers = #tpu.dot_dimension_numbers<[2], [1], [1], [2], [0, 0, 0, 1, 1, 2], [0], [0]>} : vector<2x8x8xf32>, vector<2x8x8xf32>, vector<2x8x8xf32> -> vector<2x8x8xf32>
    "tpu.trace_stop"() : () -> ()
    %70 = vector.extract_strided_slice %33 {offsets = [0, 0, 16], sizes = [2, 8, 8], strides = [1, 1, 1]} : vector<2x8x32xf32> to vector<2x8x8xf32>
    %71 = vector.extract_strided_slice %35 {offsets = [0, 0, 16], sizes = [2, 8, 8], strides = [1, 1, 1]} : vector<2x8x32xf32> to vector<2x8x8xf32>
    %72 = vector.extract_strided_slice %37 {offsets = [0, 0, 16], sizes = [2, 8, 8], strides = [1, 1, 1]} : vector<2x8x32xf32> to vector<2x8x8xf32>
    "tpu.trace_start"() <{level = 10 : i32, message = "bld,bsd->bls"}> : () -> ()
    %cst_37 = arith.constant dense<0.000000e+00> : vector<2x8x8xf32>
    %73 = tpu.matmul %70, %71, %cst_37 {dimension_numbers = #tpu.dot_dimension_numbers<[2], [2], [1], [1], [0, 0, 0, 1, 1, 1], [0], [0]>} : vector<2x8x8xf32>, vector<2x8x8xf32>, vector<2x8x8xf32> -> vector<2x8x8xf32>
    "tpu.trace_stop"() : () -> ()
    %cst_38 = arith.constant 0.353553385 : f32
    %74 = vector.broadcast %cst_38 : f32 to vector<2x8x8xf32>
    %75 = arith.mulf %73, %74 : vector<2x8x8xf32>
    %cst_39 = arith.constant dense<0xFF800000> : vector<2x8xf32>
    %76 = vector.multi_reduction <maximumf>, %75, %cst_39 [2] : vector<2x8x8xf32> to vector<2x8xf32>
    %77 = vector.shape_cast %76 : vector<2x8xf32> to vector<2x8x1xf32>
    %78 = vector.broadcast %77 : vector<2x8x1xf32> to vector<2x8x8xf32>
    %79 = arith.subf %75, %78 : vector<2x8x8xf32>
    %80 = math.exp %79 : vector<2x8x8xf32>
    %cst_40 = arith.constant dense<0.000000e+00> : vector<2x8xf32>
    %81 = vector.multi_reduction <add>, %80, %cst_40 [2] : vector<2x8x8xf32> to vector<2x8xf32>
    %82 = vector.shape_cast %81 : vector<2x8xf32> to vector<2x8x1xf32>
    %83 = vector.broadcast %82 : vector<2x8x1xf32> to vector<2x8x8xf32>
    %84 = arith.divf %80, %83 : vector<2x8x8xf32>
    "tpu.trace_start"() <{level = 10 : i32, message = "bls,bsd->bld"}> : () -> ()
    %cst_41 = arith.constant dense<0.000000e+00> : vector<2x8x8xf32>
    %85 = tpu.matmul %84, %72, %cst_41 {dimension_numbers = #tpu.dot_dimension_numbers<[2], [1], [1], [2], [0, 0, 0, 1, 1, 2], [0], [0]>} : vector<2x8x8xf32>, vector<2x8x8xf32>, vector<2x8x8xf32> -> vector<2x8x8xf32>
    "tpu.trace_stop"() : () -> ()
    %86 = vector.extract_strided_slice %33 {offsets = [0, 0, 24], sizes = [2, 8, 8], strides = [1, 1, 1]} : vector<2x8x32xf32> to vector<2x8x8xf32>
    %87 = vector.extract_strided_slice %35 {offsets = [0, 0, 24], sizes = [2, 8, 8], strides = [1, 1, 1]} : vector<2x8x32xf32> to vector<2x8x8xf32>
    %88 = vector.extract_strided_slice %37 {offsets = [0, 0, 24], sizes = [2, 8, 8], strides = [1, 1, 1]} : vector<2x8x32xf32> to vector<2x8x8xf32>
    "tpu.trace_start"() <{level = 10 : i32, message = "bld,bsd->bls"}> : () -> ()
    %cst_42 = arith.constant dense<0.000000e+00> : vector<2x8x8xf32>
    %89 = tpu.matmul %86, %87, %cst_42 {dimension_numbers = #tpu.dot_dimension_numbers<[2], [2], [1], [1], [0, 0, 0, 1, 1, 1], [0], [0]>} : vector<2x8x8xf32>, vector<2x8x8xf32>, vector<2x8x8xf32> -> vector<2x8x8xf32>
    "tpu.trace_stop"() : () -> ()
    %cst_43 = arith.constant 0.353553385 : f32
    %90 = vector.broadcast %cst_43 : f32 to vector<2x8x8xf32>
    %91 = arith.mulf %89, %90 : vector<2x8x8xf32>
    %cst_44 = arith.constant dense<0xFF800000> : vector<2x8xf32>
    %92 = vector.multi_reduction <maximumf>, %91, %cst_44 [2] : vector<2x8x8xf32> to vector<2x8xf32>
    %93 = vector.shape_cast %92 : vector<2x8xf32> to vector<2x8x1xf32>
    %94 = vector.broadcast %93 : vector<2x8x1xf32> to vector<2x8x8xf32>
    %95 = arith.subf %91, %94 : vector<2x8x8xf32>
    %96 = math.exp %95 : vector<2x8x8xf32>
    %cst_45 = arith.constant dense<0.000000e+00> : vector<2x8xf32>
    %97 = vector.multi_reduction <add>, %96, %cst_45 [2] : vector<2x8x8xf32> to vector<2x8xf32>
    %98 = vector.shape_cast %97 : vector<2x8xf32> to vector<2x8x1xf32>
    %99 = vector.broadcast %98 : vector<2x8x1xf32> to vector<2x8x8xf32>
    %100 = arith.divf %96, %99 : vector<2x8x8xf32>
    "tpu.trace_start"() <{level = 10 : i32, message = "bls,bsd->bld"}> : () -> ()
    %cst_46 = arith.constant dense<0.000000e+00> : vector<2x8x8xf32>
    %101 = tpu.matmul %100, %88, %cst_46 {dimension_numbers = #tpu.dot_dimension_numbers<[2], [1], [1], [2], [0, 0, 0, 1, 1, 2], [0], [0]>} : vector<2x8x8xf32>, vector<2x8x8xf32>, vector<2x8x8xf32> -> vector<2x8x8xf32>
    "tpu.trace_stop"() : () -> ()
    %102 = tpu.concatenate %53, %69, %85, %101 in 2 : vector<2x8x8xf32>, vector<2x8x8xf32>, vector<2x8x8xf32>, vector<2x8x8xf32> -> vector<2x8x32xf32>
    %103 = vector.shape_cast %102 : vector<2x8x32xf32> to vector<16x32xf32>
    %104 = vector.extract_strided_slice %31 {offsets = [0, 96], sizes = [16, 32], strides = [1, 1]} : vector<16x192xf32> to vector<16x32xf32>
    %105 = vector.shape_cast %104 : vector<16x32xf32> to vector<2x8x32xf32>
    %106 = vector.extract_strided_slice %31 {offsets = [0, 128], sizes = [16, 32], strides = [1, 1]} : vector<16x192xf32> to vector<16x32xf32>
    %107 = vector.shape_cast %106 : vector<16x32xf32> to vector<2x8x32xf32>
    %108 = vector.extract_strided_slice %31 {offsets = [0, 160], sizes = [16, 32], strides = [1, 1]} : vector<16x192xf32> to vector<16x32xf32>
    %109 = vector.shape_cast %108 : vector<16x32xf32> to vector<2x8x32xf32>
    %110 = vector.extract_strided_slice %105 {offsets = [0, 0, 0], sizes = [2, 8, 8], strides = [1, 1, 1]} : vector<2x8x32xf32> to vector<2x8x8xf32>
    %111 = vector.extract_strided_slice %107 {offsets = [0, 0, 0], sizes = [2, 8, 8], strides = [1, 1, 1]} : vector<2x8x32xf32> to vector<2x8x8xf32>
    %112 = vector.extract_strided_slice %109 {offsets = [0, 0, 0], sizes = [2, 8, 8], strides = [1, 1, 1]} : vector<2x8x32xf32> to vector<2x8x8xf32>
    "tpu.trace_start"() <{level = 10 : i32, message = "bld,bsd->bls"}> : () -> ()
    %cst_47 = arith.constant dense<0.000000e+00> : vector<2x8x8xf32>
    %113 = tpu.matmul %110, %111, %cst_47 {dimension_numbers = #tpu.dot_dimension_numbers<[2], [2], [1], [1], [0, 0, 0, 1, 1, 1], [0], [0]>} : vector<2x8x8xf32>, vector<2x8x8xf32>, vector<2x8x8xf32> -> vector<2x8x8xf32>
    "tpu.trace_stop"() : () -> ()
    %cst_48 = arith.constant 0.353553385 : f32
    %114 = vector.broadcast %cst_48 : f32 to vector<2x8x8xf32>
    %115 = arith.mulf %113, %114 : vector<2x8x8xf32>
    %cst_49 = arith.constant dense<0xFF800000> : vector<2x8xf32>
    %116 = vector.multi_reduction <maximumf>, %115, %cst_49 [2] : vector<2x8x8xf32> to vector<2x8xf32>
    %117 = vector.shape_cast %116 : vector<2x8xf32> to vector<2x8x1xf32>
    %118 = vector.broadcast %117 : vector<2x8x1xf32> to vector<2x8x8xf32>
    %119 = arith.subf %115, %118 : vector<2x8x8xf32>
    %120 = math.exp %119 : vector<2x8x8xf32>
    %cst_50 = arith.constant dense<0.000000e+00> : vector<2x8xf32>
    %121 = vector.multi_reduction <add>, %120, %cst_50 [2] : vector<2x8x8xf32> to vector<2x8xf32>
    %122 = vector.shape_cast %121 : vector<2x8xf32> to vector<2x8x1xf32>
    %123 = vector.broadcast %122 : vector<2x8x1xf32> to vector<2x8x8xf32>
    %124 = arith.divf %120, %123 : vector<2x8x8xf32>
    "tpu.trace_start"() <{level = 10 : i32, message = "bls,bsd->bld"}> : () -> ()
    %cst_51 = arith.constant dense<0.000000e+00> : vector<2x8x8xf32>
    %125 = tpu.matmul %124, %112, %cst_51 {dimension_numbers = #tpu.dot_dimension_numbers<[2], [1], [1], [2], [0, 0, 0, 1, 1, 2], [0], [0]>} : vector<2x8x8xf32>, vector<2x8x8xf32>, vector<2x8x8xf32> -> vector<2x8x8xf32>
    "tpu.trace_stop"() : () -> ()
    %126 = vector.extract_strided_slice %105 {offsets = [0, 0, 8], sizes = [2, 8, 8], strides = [1, 1, 1]} : vector<2x8x32xf32> to vector<2x8x8xf32>
    %127 = vector.extract_strided_slice %107 {offsets = [0, 0, 8], sizes = [2, 8, 8], strides = [1, 1, 1]} : vector<2x8x32xf32> to vector<2x8x8xf32>
    %128 = vector.extract_strided_slice %109 {offsets = [0, 0, 8], sizes = [2, 8, 8], strides = [1, 1, 1]} : vector<2x8x32xf32> to vector<2x8x8xf32>
    "tpu.trace_start"() <{level = 10 : i32, message = "bld,bsd->bls"}> : () -> ()
    %cst_52 = arith.constant dense<0.000000e+00> : vector<2x8x8xf32>
    %129 = tpu.matmul %126, %127, %cst_52 {dimension_numbers = #tpu.dot_dimension_numbers<[2], [2], [1], [1], [0, 0, 0, 1, 1, 1], [0], [0]>} : vector<2x8x8xf32>, vector<2x8x8xf32>, vector<2x8x8xf32> -> vector<2x8x8xf32>
    "tpu.trace_stop"() : () -> ()
    %cst_53 = arith.constant 0.353553385 : f32
    %130 = vector.broadcast %cst_53 : f32 to vector<2x8x8xf32>
    %131 = arith.mulf %129, %130 : vector<2x8x8xf32>
    %cst_54 = arith.constant dense<0xFF800000> : vector<2x8xf32>
    %132 = vector.multi_reduction <maximumf>, %131, %cst_54 [2] : vector<2x8x8xf32> to vector<2x8xf32>
    %133 = vector.shape_cast %132 : vector<2x8xf32> to vector<2x8x1xf32>
    %134 = vector.broadcast %133 : vector<2x8x1xf32> to vector<2x8x8xf32>
    %135 = arith.subf %131, %134 : vector<2x8x8xf32>
    %136 = math.exp %135 : vector<2x8x8xf32>
    %cst_55 = arith.constant dense<0.000000e+00> : vector<2x8xf32>
    %137 = vector.multi_reduction <add>, %136, %cst_55 [2] : vector<2x8x8xf32> to vector<2x8xf32>
    %138 = vector.shape_cast %137 : vector<2x8xf32> to vector<2x8x1xf32>
    %139 = vector.broadcast %138 : vector<2x8x1xf32> to vector<2x8x8xf32>
    %140 = arith.divf %136, %139 : vector<2x8x8xf32>
    "tpu.trace_start"() <{level = 10 : i32, message = "bls,bsd->bld"}> : () -> ()
    %cst_56 = arith.constant dense<0.000000e+00> : vector<2x8x8xf32>
    %141 = tpu.matmul %140, %128, %cst_56 {dimension_numbers = #tpu.dot_dimension_numbers<[2], [1], [1], [2], [0, 0, 0, 1, 1, 2], [0], [0]>} : vector<2x8x8xf32>, vector<2x8x8xf32>, vector<2x8x8xf32> -> vector<2x8x8xf32>
    "tpu.trace_stop"() : () -> ()
    %142 = vector.extract_strided_slice %105 {offsets = [0, 0, 16], sizes = [2, 8, 8], strides = [1, 1, 1]} : vector<2x8x32xf32> to vector<2x8x8xf32>
    %143 = vector.extract_strided_slice %107 {offsets = [0, 0, 16], sizes = [2, 8, 8], strides = [1, 1, 1]} : vector<2x8x32xf32> to vector<2x8x8xf32>
    %144 = vector.extract_strided_slice %109 {offsets = [0, 0, 16], sizes = [2, 8, 8], strides = [1, 1, 1]} : vector<2x8x32xf32> to vector<2x8x8xf32>
    "tpu.trace_start"() <{level = 10 : i32, message = "bld,bsd->bls"}> : () -> ()
    %cst_57 = arith.constant dense<0.000000e+00> : vector<2x8x8xf32>
    %145 = tpu.matmul %142, %143, %cst_57 {dimension_numbers = #tpu.dot_dimension_numbers<[2], [2], [1], [1], [0, 0, 0, 1, 1, 1], [0], [0]>} : vector<2x8x8xf32>, vector<2x8x8xf32>, vector<2x8x8xf32> -> vector<2x8x8xf32>
    "tpu.trace_stop"() : () -> ()
    %cst_58 = arith.constant 0.353553385 : f32
    %146 = vector.broadcast %cst_58 : f32 to vector<2x8x8xf32>
    %147 = arith.mulf %145, %146 : vector<2x8x8xf32>
    %cst_59 = arith.constant dense<0xFF800000> : vector<2x8xf32>
    %148 = vector.multi_reduction <maximumf>, %147, %cst_59 [2] : vector<2x8x8xf32> to vector<2x8xf32>
    %149 = vector.shape_cast %148 : vector<2x8xf32> to vector<2x8x1xf32>
    %150 = vector.broadcast %149 : vector<2x8x1xf32> to vector<2x8x8xf32>
    %151 = arith.subf %147, %150 : vector<2x8x8xf32>
    %152 = math.exp %151 : vector<2x8x8xf32>
    %cst_60 = arith.constant dense<0.000000e+00> : vector<2x8xf32>
    %153 = vector.multi_reduction <add>, %152, %cst_60 [2] : vector<2x8x8xf32> to vector<2x8xf32>
    %154 = vector.shape_cast %153 : vector<2x8xf32> to vector<2x8x1xf32>
    %155 = vector.broadcast %154 : vector<2x8x1xf32> to vector<2x8x8xf32>
    %156 = arith.divf %152, %155 : vector<2x8x8xf32>
    "tpu.trace_start"() <{level = 10 : i32, message = "bls,bsd->bld"}> : () -> ()
    %cst_61 = arith.constant dense<0.000000e+00> : vector<2x8x8xf32>
    %157 = tpu.matmul %156, %144, %cst_61 {dimension_numbers = #tpu.dot_dimension_numbers<[2], [1], [1], [2], [0, 0, 0, 1, 1, 2], [0], [0]>} : vector<2x8x8xf32>, vector<2x8x8xf32>, vector<2x8x8xf32> -> vector<2x8x8xf32>
    "tpu.trace_stop"() : () -> ()
    %158 = vector.extract_strided_slice %105 {offsets = [0, 0, 24], sizes = [2, 8, 8], strides = [1, 1, 1]} : vector<2x8x32xf32> to vector<2x8x8xf32>
    %159 = vector.extract_strided_slice %107 {offsets = [0, 0, 24], sizes = [2, 8, 8], strides = [1, 1, 1]} : vector<2x8x32xf32> to vector<2x8x8xf32>
    %160 = vector.extract_strided_slice %109 {offsets = [0, 0, 24], sizes = [2, 8, 8], strides = [1, 1, 1]} : vector<2x8x32xf32> to vector<2x8x8xf32>
    "tpu.trace_start"() <{level = 10 : i32, message = "bld,bsd->bls"}> : () -> ()
    %cst_62 = arith.constant dense<0.000000e+00> : vector<2x8x8xf32>
    %161 = tpu.matmul %158, %159, %cst_62 {dimension_numbers = #tpu.dot_dimension_numbers<[2], [2], [1], [1], [0, 0, 0, 1, 1, 1], [0], [0]>} : vector<2x8x8xf32>, vector<2x8x8xf32>, vector<2x8x8xf32> -> vector<2x8x8xf32>
    "tpu.trace_stop"() : () -> ()
    %cst_63 = arith.constant 0.353553385 : f32
    %162 = vector.broadcast %cst_63 : f32 to vector<2x8x8xf32>
    %163 = arith.mulf %161, %162 : vector<2x8x8xf32>
    %cst_64 = arith.constant dense<0xFF800000> : vector<2x8xf32>
    %164 = vector.multi_reduction <maximumf>, %163, %cst_64 [2] : vector<2x8x8xf32> to vector<2x8xf32>
    %165 = vector.shape_cast %164 : vector<2x8xf32> to vector<2x8x1xf32>
    %166 = vector.broadcast %165 : vector<2x8x1xf32> to vector<2x8x8xf32>
    %167 = arith.subf %163, %166 : vector<2x8x8xf32>
    %168 = math.exp %167 : vector<2x8x8xf32>
    %cst_65 = arith.constant dense<0.000000e+00> : vector<2x8xf32>
    %169 = vector.multi_reduction <add>, %168, %cst_65 [2] : vector<2x8x8xf32> to vector<2x8xf32>
    %170 = vector.shape_cast %169 : vector<2x8xf32> to vector<2x8x1xf32>
    %171 = vector.broadcast %170 : vector<2x8x1xf32> to vector<2x8x8xf32>
    %172 = arith.divf %168, %171 : vector<2x8x8xf32>
    "tpu.trace_start"() <{level = 10 : i32, message = "bls,bsd->bld"}> : () -> ()
    %cst_66 = arith.constant dense<0.000000e+00> : vector<2x8x8xf32>
    %173 = tpu.matmul %172, %160, %cst_66 {dimension_numbers = #tpu.dot_dimension_numbers<[2], [1], [1], [2], [0, 0, 0, 1, 1, 2], [0], [0]>} : vector<2x8x8xf32>, vector<2x8x8xf32>, vector<2x8x8xf32> -> vector<2x8x8xf32>
    "tpu.trace_stop"() : () -> ()
    %174 = tpu.concatenate %125, %141, %157, %173 in 2 : vector<2x8x8xf32>, vector<2x8x8xf32>, vector<2x8x8xf32>, vector<2x8x8xf32> -> vector<2x8x32xf32>
    %175 = vector.shape_cast %174 : vector<2x8x32xf32> to vector<16x32xf32>
    %176 = vector.broadcast %20 : f32 to vector<16x32xf32>
    %177 = arith.mulf %176, %103 : vector<16x32xf32>
    %cst_67 = arith.constant 1.000000e+00 : f32
    %178 = arith.subf %cst_67, %20 : f32
    %179 = vector.broadcast %178 : f32 to vector<16x32xf32>
    %180 = arith.mulf %179, %175 : vector<16x32xf32>
    %181 = tpu.concatenate %177, %180 in 1 : vector<16x32xf32>, vector<16x32xf32> -> vector<16x64xf32>
    %c0_68 = arith.constant 0 : index
    %c0_69 = arith.constant 0 : index
    %c0_70 = arith.constant 0 : index
    %182 = vector.load %arg11[%c0_68, %c0_69, %c0_70] : memref<2x64x32xf32, #tpu.memory_space<vmem>>, vector<1x64x32xf32>
    %183 = vector.shape_cast %182 : vector<1x64x32xf32> to vector<64x32xf32>
    %cst_71 = arith.constant dense<0.000000e+00> : vector<16x32xf32>
    %184 = tpu.matmul %181, %183, %cst_71 {dimension_numbers = #tpu.dot_dimension_numbers<[1], [0], [0], [1], [0, 0, 1, 1], [], []>} : vector<16x64xf32>, vector<64x32xf32>, vector<16x32xf32> -> vector<16x32xf32>
    %185 = vector.extract_strided_slice %24 {offsets = [0, 0], sizes = [1, 32], strides = [1, 1]} : vector<2x32xf32> to vector<1x32xf32>
    %186 = vector.broadcast %20 : f32 to vector<1x32xf32>
    %187 = arith.mulf %186, %185 : vector<1x32xf32>
    %188 = vector.broadcast %187 : vector<1x32xf32> to vector<16x32xf32>
    %189 = arith.addf %184, %188 : vector<16x32xf32>
    %cst_72 = arith.constant 1.000000e+00 : f32
    %190 = arith.subf %cst_72, %20 : f32
    %191 = vector.extract_strided_slice %24 {offsets = [1, 0], sizes = [1, 32], strides = [1, 1]} : vector<2x32xf32> to vector<1x32xf32>
    %192 = vector.broadcast %190 : f32 to vector<1x32xf32>
    %193 = arith.mulf %192, %191 : vector<1x32xf32>
    %194 = vector.broadcast %193 : vector<1x32xf32> to vector<16x32xf32>
    %195 = arith.addf %189, %194 : vector<16x32xf32>
    %196 = arith.addf %19, %195 : vector<16x32xf32>
    %197 = vector.extract_strided_slice %22 {offsets = [0, 0], sizes = [1, 32], strides = [1, 1]} : vector<4x32xf32> to vector<1x32xf32>
    %198 = vector.extract_strided_slice %22 {offsets = [1, 0], sizes = [1, 32], strides = [1, 1]} : vector<4x32xf32> to vector<1x32xf32>
    %cst_73 = arith.constant dense<0.000000e+00> : vector<16xf32>
    %199 = vector.multi_reduction <add>, %196, %cst_73 [1] : vector<16x32xf32> to vector<16xf32>
    %200 = vector.shape_cast %199 : vector<16xf32> to vector<16x1xf32>
    %cst_74 = arith.constant 3.200000e+01 : f32
    %201 = vector.broadcast %cst_74 : f32 to vector<16x1xf32>
    %202 = arith.divf %200, %201 : vector<16x1xf32>
    %203 = vector.broadcast %202 : vector<16x1xf32> to vector<16x32xf32>
    %204 = arith.subf %196, %203 : vector<16x32xf32>
    %205 = arith.mulf %204, %204 : vector<16x32xf32>
    %cst_75 = arith.constant dense<0.000000e+00> : vector<16xf32>
    %206 = vector.multi_reduction <add>, %205, %cst_75 [1] : vector<16x32xf32> to vector<16xf32>
    %207 = vector.shape_cast %206 : vector<16xf32> to vector<16x1xf32>
    %cst_76 = arith.constant 3.200000e+01 : f32
    %208 = vector.broadcast %cst_76 : f32 to vector<16x1xf32>
    %209 = arith.divf %207, %208 : vector<16x1xf32>
    %cst_77 = arith.constant 9.99999974E-6 : f32
    %210 = vector.broadcast %cst_77 : f32 to vector<16x1xf32>
    %211 = arith.addf %209, %210 : vector<16x1xf32>
    %212 = math.rsqrt %211 : vector<16x1xf32>
    %213 = vector.broadcast %212 : vector<16x1xf32> to vector<16x32xf32>
    %214 = arith.mulf %204, %213 : vector<16x32xf32>
    %215 = vector.broadcast %197 : vector<1x32xf32> to vector<16x32xf32>
    %216 = arith.mulf %214, %215 : vector<16x32xf32>
    %217 = vector.broadcast %198 : vector<1x32xf32> to vector<16x32xf32>
    %218 = arith.addf %216, %217 : vector<16x32xf32>
    %c0_78 = arith.constant 0 : index
    %c0_79 = arith.constant 0 : index
    %c0_80 = arith.constant 0 : index
    %219 = vector.load %arg14[%c0_78, %c0_79, %c0_80] : memref<2x32x128xf32, #tpu.memory_space<vmem>>, vector<1x32x128xf32>
    %220 = vector.shape_cast %219 : vector<1x32x128xf32> to vector<32x128xf32>
    %cst_81 = arith.constant dense<0.000000e+00> : vector<16x128xf32>
    %221 = tpu.matmul %218, %220, %cst_81 {dimension_numbers = #tpu.dot_dimension_numbers<[1], [0], [0], [1], [0, 0, 1, 1], [], []>} : vector<16x32xf32>, vector<32x128xf32>, vector<16x128xf32> -> vector<16x128xf32>
    %c0_82 = arith.constant 0 : index
    %c0_83 = arith.constant 0 : index
    %c0_84 = arith.constant 0 : index
    %222 = vector.load %arg15[%c0_82, %c0_83, %c0_84] : memref<2x1x128xf32, #tpu.memory_space<vmem>>, vector<1x1x128xf32>
    %223 = vector.shape_cast %222 : vector<1x1x128xf32> to vector<1x128xf32>
    %224 = vector.broadcast %223 : vector<1x128xf32> to vector<16x128xf32>
    %225 = arith.addf %221, %224 : vector<16x128xf32>
    %cst_85 = arith.constant 0.707106769 : f32
    %226 = vector.broadcast %cst_85 : f32 to vector<16x128xf32>
    %227 = arith.mulf %225, %226 : vector<16x128xf32>
    %228 = math.absf %227 : vector<16x128xf32>
    %cst_86 = arith.constant 0.327591091 : f32
    %229 = vector.broadcast %cst_86 : f32 to vector<16x128xf32>
    %230 = arith.mulf %229, %228 : vector<16x128xf32>
    %cst_87 = arith.constant 1.000000e+00 : f32
    %231 = vector.broadcast %cst_87 : f32 to vector<16x128xf32>
    %232 = arith.addf %231, %230 : vector<16x128xf32>
    %cst_88 = arith.constant 1.000000e+00 : f32
    %233 = vector.broadcast %cst_88 : f32 to vector<16x128xf32>
    %234 = arith.divf %233, %232 : vector<16x128xf32>
    %cst_89 = arith.constant 1.06140542 : f32
    %235 = vector.broadcast %cst_89 : f32 to vector<16x128xf32>
    %236 = arith.mulf %235, %234 : vector<16x128xf32>
    %cst_90 = arith.constant 1.45315206 : f32
    %237 = vector.broadcast %cst_90 : f32 to vector<16x128xf32>
    %238 = arith.subf %236, %237 : vector<16x128xf32>
    %239 = arith.mulf %238, %234 : vector<16x128xf32>
    %cst_91 = arith.constant 1.42141378 : f32
    %240 = vector.broadcast %cst_91 : f32 to vector<16x128xf32>
    %241 = arith.addf %239, %240 : vector<16x128xf32>
    %242 = arith.mulf %241, %234 : vector<16x128xf32>
    %cst_92 = arith.constant 0.284496725 : f32
    %243 = vector.broadcast %cst_92 : f32 to vector<16x128xf32>
    %244 = arith.subf %242, %243 : vector<16x128xf32>
    %245 = arith.mulf %244, %234 : vector<16x128xf32>
    %cst_93 = arith.constant 0.254829586 : f32
    %246 = vector.broadcast %cst_93 : f32 to vector<16x128xf32>
    %247 = arith.addf %245, %246 : vector<16x128xf32>
    %248 = arith.mulf %247, %234 : vector<16x128xf32>
    %cst_94 = arith.constant 0.000000e+00 : f32
    %249 = vector.broadcast %cst_94 : f32 to vector<16x128xf32>
    %250 = arith.subf %249, %228 : vector<16x128xf32>
    %251 = arith.mulf %250, %228 : vector<16x128xf32>
    %252 = math.exp %251 : vector<16x128xf32>
    %253 = arith.mulf %248, %252 : vector<16x128xf32>
    %cst_95 = arith.constant 1.000000e+00 : f32
    %254 = vector.broadcast %cst_95 : f32 to vector<16x128xf32>
    %255 = arith.subf %254, %253 : vector<16x128xf32>
    %cst_96 = arith.constant 0.000000e+00 : f32
    %256 = vector.broadcast %cst_96 : f32 to vector<16x128xf32>
    %257 = arith.cmpf oge, %227, %256 : vector<16x128xf32>
    %cst_97 = arith.constant 0.000000e+00 : f32
    %258 = vector.broadcast %cst_97 : f32 to vector<16x128xf32>
    %259 = arith.subf %258, %255 : vector<16x128xf32>
    %260 = arith.select %257, %255, %259 : vector<16x128xi1>, vector<16x128xf32>
    %cst_98 = arith.constant 5.000000e-01 : f32
    %261 = vector.broadcast %cst_98 : f32 to vector<16x128xf32>
    %262 = arith.mulf %261, %225 : vector<16x128xf32>
    %cst_99 = arith.constant 1.000000e+00 : f32
    %263 = vector.broadcast %cst_99 : f32 to vector<16x128xf32>
    %264 = arith.addf %263, %260 : vector<16x128xf32>
    %265 = arith.mulf %262, %264 : vector<16x128xf32>
    %c0_100 = arith.constant 0 : index
    %c0_101 = arith.constant 0 : index
    %c0_102 = arith.constant 0 : index
    %266 = vector.load %arg16[%c0_100, %c0_101, %c0_102] : memref<2x128x32xf32, #tpu.memory_space<vmem>>, vector<1x128x32xf32>
    %267 = vector.shape_cast %266 : vector<1x128x32xf32> to vector<128x32xf32>
    %cst_103 = arith.constant dense<0.000000e+00> : vector<16x32xf32>
    %268 = tpu.matmul %265, %267, %cst_103 {dimension_numbers = #tpu.dot_dimension_numbers<[1], [0], [0], [1], [0, 0, 1, 1], [], []>} : vector<16x128xf32>, vector<128x32xf32>, vector<16x32xf32> -> vector<16x32xf32>
    %c0_104 = arith.constant 0 : index
    %c0_105 = arith.constant 0 : index
    %c0_106 = arith.constant 0 : index
    %269 = vector.load %arg17[%c0_104, %c0_105, %c0_106] : memref<2x1x32xf32, #tpu.memory_space<vmem>>, vector<1x1x32xf32>
    %270 = vector.shape_cast %269 : vector<1x1x32xf32> to vector<1x32xf32>
    %271 = vector.broadcast %270 : vector<1x32xf32> to vector<16x32xf32>
    %272 = arith.addf %268, %271 : vector<16x32xf32>
    %273 = arith.addf %218, %272 : vector<16x32xf32>
    %274 = vector.extract_strided_slice %22 {offsets = [2, 0], sizes = [1, 32], strides = [1, 1]} : vector<4x32xf32> to vector<1x32xf32>
    %275 = vector.extract_strided_slice %22 {offsets = [3, 0], sizes = [1, 32], strides = [1, 1]} : vector<4x32xf32> to vector<1x32xf32>
    %cst_107 = arith.constant dense<0.000000e+00> : vector<16xf32>
    %276 = vector.multi_reduction <add>, %273, %cst_107 [1] : vector<16x32xf32> to vector<16xf32>
    %277 = vector.shape_cast %276 : vector<16xf32> to vector<16x1xf32>
    %cst_108 = arith.constant 3.200000e+01 : f32
    %278 = vector.broadcast %cst_108 : f32 to vector<16x1xf32>
    %279 = arith.divf %277, %278 : vector<16x1xf32>
    %280 = vector.broadcast %279 : vector<16x1xf32> to vector<16x32xf32>
    %281 = arith.subf %273, %280 : vector<16x32xf32>
    %282 = arith.mulf %281, %281 : vector<16x32xf32>
    %cst_109 = arith.constant dense<0.000000e+00> : vector<16xf32>
    %283 = vector.multi_reduction <add>, %282, %cst_109 [1] : vector<16x32xf32> to vector<16xf32>
    %284 = vector.shape_cast %283 : vector<16xf32> to vector<16x1xf32>
    %cst_110 = arith.constant 3.200000e+01 : f32
    %285 = vector.broadcast %cst_110 : f32 to vector<16x1xf32>
    %286 = arith.divf %284, %285 : vector<16x1xf32>
    %cst_111 = arith.constant 9.99999974E-6 : f32
    %287 = vector.broadcast %cst_111 : f32 to vector<16x1xf32>
    %288 = arith.addf %286, %287 : vector<16x1xf32>
    %289 = math.rsqrt %288 : vector<16x1xf32>
    %290 = vector.broadcast %289 : vector<16x1xf32> to vector<16x32xf32>
    %291 = arith.mulf %281, %290 : vector<16x32xf32>
    %292 = vector.broadcast %274 : vector<1x32xf32> to vector<16x32xf32>
    %293 = arith.mulf %291, %292 : vector<16x32xf32>
    %294 = vector.broadcast %275 : vector<1x32xf32> to vector<16x32xf32>
    %295 = arith.addf %293, %294 : vector<16x32xf32>
    %c0_112 = arith.constant 0 : index
    %296 = memref.load %arg2[%c0_112] : memref<2xf32, #tpu.memory_space<smem>>
    %297 = vector.broadcast %296 : f32 to vector<16x32xf32>
    %298 = arith.mulf %297, %295 : vector<16x32xf32>
    %c1 = arith.constant 1 : index
    %299 = memref.load %arg1[%c1] : memref<2xf32, #tpu.memory_space<smem>>
    %c1_113 = arith.constant 1 : index
    %c0_114 = arith.constant 0 : index
    %c0_115 = arith.constant 0 : index
    %300 = vector.load %arg13[%c1_113, %c0_114, %c0_115] : memref<2x4x32xf32, #tpu.memory_space<vmem>>, vector<1x4x32xf32>
    %301 = vector.shape_cast %300 : vector<1x4x32xf32> to vector<4x32xf32>
    %c1_116 = arith.constant 1 : index
    %c0_117 = arith.constant 0 : index
    %c0_118 = arith.constant 0 : index
    %302 = vector.load %arg12[%c1_116, %c0_117, %c0_118] : memref<2x2x32xf32, #tpu.memory_space<vmem>>, vector<1x2x32xf32>
    %303 = vector.shape_cast %302 : vector<1x2x32xf32> to vector<2x32xf32>
    %c1_119 = arith.constant 1 : index
    %c0_120 = arith.constant 0 : index
    %c0_121 = arith.constant 0 : index
    %304 = vector.load %arg9[%c1_119, %c0_120, %c0_121] : memref<2x32x192xf32, #tpu.memory_space<vmem>>, vector<1x32x192xf32>
    %305 = vector.shape_cast %304 : vector<1x32x192xf32> to vector<32x192xf32>
    %cst_122 = arith.constant dense<0.000000e+00> : vector<16x192xf32>
    %306 = tpu.matmul %295, %305, %cst_122 {dimension_numbers = #tpu.dot_dimension_numbers<[1], [0], [0], [1], [0, 0, 1, 1], [], []>} : vector<16x32xf32>, vector<32x192xf32>, vector<16x192xf32> -> vector<16x192xf32>
    %c1_123 = arith.constant 1 : index
    %c0_124 = arith.constant 0 : index
    %c0_125 = arith.constant 0 : index
    %307 = vector.load %arg10[%c1_123, %c0_124, %c0_125] : memref<2x1x192xf32, #tpu.memory_space<vmem>>, vector<1x1x192xf32>
    %308 = vector.shape_cast %307 : vector<1x1x192xf32> to vector<1x192xf32>
    %309 = vector.broadcast %308 : vector<1x192xf32> to vector<16x192xf32>
    %310 = arith.addf %306, %309 : vector<16x192xf32>
    %311 = vector.extract_strided_slice %310 {offsets = [0, 0], sizes = [16, 32], strides = [1, 1]} : vector<16x192xf32> to vector<16x32xf32>
    %312 = vector.shape_cast %311 : vector<16x32xf32> to vector<2x8x32xf32>
    %313 = vector.extract_strided_slice %310 {offsets = [0, 32], sizes = [16, 32], strides = [1, 1]} : vector<16x192xf32> to vector<16x32xf32>
    %314 = vector.shape_cast %313 : vector<16x32xf32> to vector<2x8x32xf32>
    %315 = vector.extract_strided_slice %310 {offsets = [0, 64], sizes = [16, 32], strides = [1, 1]} : vector<16x192xf32> to vector<16x32xf32>
    %316 = vector.shape_cast %315 : vector<16x32xf32> to vector<2x8x32xf32>
    %317 = vector.extract_strided_slice %312 {offsets = [0, 0, 0], sizes = [2, 8, 8], strides = [1, 1, 1]} : vector<2x8x32xf32> to vector<2x8x8xf32>
    %318 = vector.extract_strided_slice %314 {offsets = [0, 0, 0], sizes = [2, 8, 8], strides = [1, 1, 1]} : vector<2x8x32xf32> to vector<2x8x8xf32>
    %319 = vector.extract_strided_slice %316 {offsets = [0, 0, 0], sizes = [2, 8, 8], strides = [1, 1, 1]} : vector<2x8x32xf32> to vector<2x8x8xf32>
    "tpu.trace_start"() <{level = 10 : i32, message = "bld,bsd->bls"}> : () -> ()
    %cst_126 = arith.constant dense<0.000000e+00> : vector<2x8x8xf32>
    %320 = tpu.matmul %317, %318, %cst_126 {dimension_numbers = #tpu.dot_dimension_numbers<[2], [2], [1], [1], [0, 0, 0, 1, 1, 1], [0], [0]>} : vector<2x8x8xf32>, vector<2x8x8xf32>, vector<2x8x8xf32> -> vector<2x8x8xf32>
    "tpu.trace_stop"() : () -> ()
    %cst_127 = arith.constant 0.353553385 : f32
    %321 = vector.broadcast %cst_127 : f32 to vector<2x8x8xf32>
    %322 = arith.mulf %320, %321 : vector<2x8x8xf32>
    %cst_128 = arith.constant dense<0xFF800000> : vector<2x8xf32>
    %323 = vector.multi_reduction <maximumf>, %322, %cst_128 [2] : vector<2x8x8xf32> to vector<2x8xf32>
    %324 = vector.shape_cast %323 : vector<2x8xf32> to vector<2x8x1xf32>
    %325 = vector.broadcast %324 : vector<2x8x1xf32> to vector<2x8x8xf32>
    %326 = arith.subf %322, %325 : vector<2x8x8xf32>
    %327 = math.exp %326 : vector<2x8x8xf32>
    %cst_129 = arith.constant dense<0.000000e+00> : vector<2x8xf32>
    %328 = vector.multi_reduction <add>, %327, %cst_129 [2] : vector<2x8x8xf32> to vector<2x8xf32>
    %329 = vector.shape_cast %328 : vector<2x8xf32> to vector<2x8x1xf32>
    %330 = vector.broadcast %329 : vector<2x8x1xf32> to vector<2x8x8xf32>
    %331 = arith.divf %327, %330 : vector<2x8x8xf32>
    "tpu.trace_start"() <{level = 10 : i32, message = "bls,bsd->bld"}> : () -> ()
    %cst_130 = arith.constant dense<0.000000e+00> : vector<2x8x8xf32>
    %332 = tpu.matmul %331, %319, %cst_130 {dimension_numbers = #tpu.dot_dimension_numbers<[2], [1], [1], [2], [0, 0, 0, 1, 1, 2], [0], [0]>} : vector<2x8x8xf32>, vector<2x8x8xf32>, vector<2x8x8xf32> -> vector<2x8x8xf32>
    "tpu.trace_stop"() : () -> ()
    %333 = vector.extract_strided_slice %312 {offsets = [0, 0, 8], sizes = [2, 8, 8], strides = [1, 1, 1]} : vector<2x8x32xf32> to vector<2x8x8xf32>
    %334 = vector.extract_strided_slice %314 {offsets = [0, 0, 8], sizes = [2, 8, 8], strides = [1, 1, 1]} : vector<2x8x32xf32> to vector<2x8x8xf32>
    %335 = vector.extract_strided_slice %316 {offsets = [0, 0, 8], sizes = [2, 8, 8], strides = [1, 1, 1]} : vector<2x8x32xf32> to vector<2x8x8xf32>
    "tpu.trace_start"() <{level = 10 : i32, message = "bld,bsd->bls"}> : () -> ()
    %cst_131 = arith.constant dense<0.000000e+00> : vector<2x8x8xf32>
    %336 = tpu.matmul %333, %334, %cst_131 {dimension_numbers = #tpu.dot_dimension_numbers<[2], [2], [1], [1], [0, 0, 0, 1, 1, 1], [0], [0]>} : vector<2x8x8xf32>, vector<2x8x8xf32>, vector<2x8x8xf32> -> vector<2x8x8xf32>
    "tpu.trace_stop"() : () -> ()
    %cst_132 = arith.constant 0.353553385 : f32
    %337 = vector.broadcast %cst_132 : f32 to vector<2x8x8xf32>
    %338 = arith.mulf %336, %337 : vector<2x8x8xf32>
    %cst_133 = arith.constant dense<0xFF800000> : vector<2x8xf32>
    %339 = vector.multi_reduction <maximumf>, %338, %cst_133 [2] : vector<2x8x8xf32> to vector<2x8xf32>
    %340 = vector.shape_cast %339 : vector<2x8xf32> to vector<2x8x1xf32>
    %341 = vector.broadcast %340 : vector<2x8x1xf32> to vector<2x8x8xf32>
    %342 = arith.subf %338, %341 : vector<2x8x8xf32>
    %343 = math.exp %342 : vector<2x8x8xf32>
    %cst_134 = arith.constant dense<0.000000e+00> : vector<2x8xf32>
    %344 = vector.multi_reduction <add>, %343, %cst_134 [2] : vector<2x8x8xf32> to vector<2x8xf32>
    %345 = vector.shape_cast %344 : vector<2x8xf32> to vector<2x8x1xf32>
    %346 = vector.broadcast %345 : vector<2x8x1xf32> to vector<2x8x8xf32>
    %347 = arith.divf %343, %346 : vector<2x8x8xf32>
    "tpu.trace_start"() <{level = 10 : i32, message = "bls,bsd->bld"}> : () -> ()
    %cst_135 = arith.constant dense<0.000000e+00> : vector<2x8x8xf32>
    %348 = tpu.matmul %347, %335, %cst_135 {dimension_numbers = #tpu.dot_dimension_numbers<[2], [1], [1], [2], [0, 0, 0, 1, 1, 2], [0], [0]>} : vector<2x8x8xf32>, vector<2x8x8xf32>, vector<2x8x8xf32> -> vector<2x8x8xf32>
    "tpu.trace_stop"() : () -> ()
    %349 = vector.extract_strided_slice %312 {offsets = [0, 0, 16], sizes = [2, 8, 8], strides = [1, 1, 1]} : vector<2x8x32xf32> to vector<2x8x8xf32>
    %350 = vector.extract_strided_slice %314 {offsets = [0, 0, 16], sizes = [2, 8, 8], strides = [1, 1, 1]} : vector<2x8x32xf32> to vector<2x8x8xf32>
    %351 = vector.extract_strided_slice %316 {offsets = [0, 0, 16], sizes = [2, 8, 8], strides = [1, 1, 1]} : vector<2x8x32xf32> to vector<2x8x8xf32>
    "tpu.trace_start"() <{level = 10 : i32, message = "bld,bsd->bls"}> : () -> ()
    %cst_136 = arith.constant dense<0.000000e+00> : vector<2x8x8xf32>
    %352 = tpu.matmul %349, %350, %cst_136 {dimension_numbers = #tpu.dot_dimension_numbers<[2], [2], [1], [1], [0, 0, 0, 1, 1, 1], [0], [0]>} : vector<2x8x8xf32>, vector<2x8x8xf32>, vector<2x8x8xf32> -> vector<2x8x8xf32>
    "tpu.trace_stop"() : () -> ()
    %cst_137 = arith.constant 0.353553385 : f32
    %353 = vector.broadcast %cst_137 : f32 to vector<2x8x8xf32>
    %354 = arith.mulf %352, %353 : vector<2x8x8xf32>
    %cst_138 = arith.constant dense<0xFF800000> : vector<2x8xf32>
    %355 = vector.multi_reduction <maximumf>, %354, %cst_138 [2] : vector<2x8x8xf32> to vector<2x8xf32>
    %356 = vector.shape_cast %355 : vector<2x8xf32> to vector<2x8x1xf32>
    %357 = vector.broadcast %356 : vector<2x8x1xf32> to vector<2x8x8xf32>
    %358 = arith.subf %354, %357 : vector<2x8x8xf32>
    %359 = math.exp %358 : vector<2x8x8xf32>
    %cst_139 = arith.constant dense<0.000000e+00> : vector<2x8xf32>
    %360 = vector.multi_reduction <add>, %359, %cst_139 [2] : vector<2x8x8xf32> to vector<2x8xf32>
    %361 = vector.shape_cast %360 : vector<2x8xf32> to vector<2x8x1xf32>
    %362 = vector.broadcast %361 : vector<2x8x1xf32> to vector<2x8x8xf32>
    %363 = arith.divf %359, %362 : vector<2x8x8xf32>
    "tpu.trace_start"() <{level = 10 : i32, message = "bls,bsd->bld"}> : () -> ()
    %cst_140 = arith.constant dense<0.000000e+00> : vector<2x8x8xf32>
    %364 = tpu.matmul %363, %351, %cst_140 {dimension_numbers = #tpu.dot_dimension_numbers<[2], [1], [1], [2], [0, 0, 0, 1, 1, 2], [0], [0]>} : vector<2x8x8xf32>, vector<2x8x8xf32>, vector<2x8x8xf32> -> vector<2x8x8xf32>
    "tpu.trace_stop"() : () -> ()
    %365 = vector.extract_strided_slice %312 {offsets = [0, 0, 24], sizes = [2, 8, 8], strides = [1, 1, 1]} : vector<2x8x32xf32> to vector<2x8x8xf32>
    %366 = vector.extract_strided_slice %314 {offsets = [0, 0, 24], sizes = [2, 8, 8], strides = [1, 1, 1]} : vector<2x8x32xf32> to vector<2x8x8xf32>
    %367 = vector.extract_strided_slice %316 {offsets = [0, 0, 24], sizes = [2, 8, 8], strides = [1, 1, 1]} : vector<2x8x32xf32> to vector<2x8x8xf32>
    "tpu.trace_start"() <{level = 10 : i32, message = "bld,bsd->bls"}> : () -> ()
    %cst_141 = arith.constant dense<0.000000e+00> : vector<2x8x8xf32>
    %368 = tpu.matmul %365, %366, %cst_141 {dimension_numbers = #tpu.dot_dimension_numbers<[2], [2], [1], [1], [0, 0, 0, 1, 1, 1], [0], [0]>} : vector<2x8x8xf32>, vector<2x8x8xf32>, vector<2x8x8xf32> -> vector<2x8x8xf32>
    "tpu.trace_stop"() : () -> ()
    %cst_142 = arith.constant 0.353553385 : f32
    %369 = vector.broadcast %cst_142 : f32 to vector<2x8x8xf32>
    %370 = arith.mulf %368, %369 : vector<2x8x8xf32>
    %cst_143 = arith.constant dense<0xFF800000> : vector<2x8xf32>
    %371 = vector.multi_reduction <maximumf>, %370, %cst_143 [2] : vector<2x8x8xf32> to vector<2x8xf32>
    %372 = vector.shape_cast %371 : vector<2x8xf32> to vector<2x8x1xf32>
    %373 = vector.broadcast %372 : vector<2x8x1xf32> to vector<2x8x8xf32>
    %374 = arith.subf %370, %373 : vector<2x8x8xf32>
    %375 = math.exp %374 : vector<2x8x8xf32>
    %cst_144 = arith.constant dense<0.000000e+00> : vector<2x8xf32>
    %376 = vector.multi_reduction <add>, %375, %cst_144 [2] : vector<2x8x8xf32> to vector<2x8xf32>
    %377 = vector.shape_cast %376 : vector<2x8xf32> to vector<2x8x1xf32>
    %378 = vector.broadcast %377 : vector<2x8x1xf32> to vector<2x8x8xf32>
    %379 = arith.divf %375, %378 : vector<2x8x8xf32>
    "tpu.trace_start"() <{level = 10 : i32, message = "bls,bsd->bld"}> : () -> ()
    %cst_145 = arith.constant dense<0.000000e+00> : vector<2x8x8xf32>
    %380 = tpu.matmul %379, %367, %cst_145 {dimension_numbers = #tpu.dot_dimension_numbers<[2], [1], [1], [2], [0, 0, 0, 1, 1, 2], [0], [0]>} : vector<2x8x8xf32>, vector<2x8x8xf32>, vector<2x8x8xf32> -> vector<2x8x8xf32>
    "tpu.trace_stop"() : () -> ()
    %381 = tpu.concatenate %332, %348, %364, %380 in 2 : vector<2x8x8xf32>, vector<2x8x8xf32>, vector<2x8x8xf32>, vector<2x8x8xf32> -> vector<2x8x32xf32>
    %382 = vector.shape_cast %381 : vector<2x8x32xf32> to vector<16x32xf32>
    %383 = vector.extract_strided_slice %310 {offsets = [0, 96], sizes = [16, 32], strides = [1, 1]} : vector<16x192xf32> to vector<16x32xf32>
    %384 = vector.shape_cast %383 : vector<16x32xf32> to vector<2x8x32xf32>
    %385 = vector.extract_strided_slice %310 {offsets = [0, 128], sizes = [16, 32], strides = [1, 1]} : vector<16x192xf32> to vector<16x32xf32>
    %386 = vector.shape_cast %385 : vector<16x32xf32> to vector<2x8x32xf32>
    %387 = vector.extract_strided_slice %310 {offsets = [0, 160], sizes = [16, 32], strides = [1, 1]} : vector<16x192xf32> to vector<16x32xf32>
    %388 = vector.shape_cast %387 : vector<16x32xf32> to vector<2x8x32xf32>
    %389 = vector.extract_strided_slice %384 {offsets = [0, 0, 0], sizes = [2, 8, 8], strides = [1, 1, 1]} : vector<2x8x32xf32> to vector<2x8x8xf32>
    %390 = vector.extract_strided_slice %386 {offsets = [0, 0, 0], sizes = [2, 8, 8], strides = [1, 1, 1]} : vector<2x8x32xf32> to vector<2x8x8xf32>
    %391 = vector.extract_strided_slice %388 {offsets = [0, 0, 0], sizes = [2, 8, 8], strides = [1, 1, 1]} : vector<2x8x32xf32> to vector<2x8x8xf32>
    "tpu.trace_start"() <{level = 10 : i32, message = "bld,bsd->bls"}> : () -> ()
    %cst_146 = arith.constant dense<0.000000e+00> : vector<2x8x8xf32>
    %392 = tpu.matmul %389, %390, %cst_146 {dimension_numbers = #tpu.dot_dimension_numbers<[2], [2], [1], [1], [0, 0, 0, 1, 1, 1], [0], [0]>} : vector<2x8x8xf32>, vector<2x8x8xf32>, vector<2x8x8xf32> -> vector<2x8x8xf32>
    "tpu.trace_stop"() : () -> ()
    %cst_147 = arith.constant 0.353553385 : f32
    %393 = vector.broadcast %cst_147 : f32 to vector<2x8x8xf32>
    %394 = arith.mulf %392, %393 : vector<2x8x8xf32>
    %cst_148 = arith.constant dense<0xFF800000> : vector<2x8xf32>
    %395 = vector.multi_reduction <maximumf>, %394, %cst_148 [2] : vector<2x8x8xf32> to vector<2x8xf32>
    %396 = vector.shape_cast %395 : vector<2x8xf32> to vector<2x8x1xf32>
    %397 = vector.broadcast %396 : vector<2x8x1xf32> to vector<2x8x8xf32>
    %398 = arith.subf %394, %397 : vector<2x8x8xf32>
    %399 = math.exp %398 : vector<2x8x8xf32>
    %cst_149 = arith.constant dense<0.000000e+00> : vector<2x8xf32>
    %400 = vector.multi_reduction <add>, %399, %cst_149 [2] : vector<2x8x8xf32> to vector<2x8xf32>
    %401 = vector.shape_cast %400 : vector<2x8xf32> to vector<2x8x1xf32>
    %402 = vector.broadcast %401 : vector<2x8x1xf32> to vector<2x8x8xf32>
    %403 = arith.divf %399, %402 : vector<2x8x8xf32>
    "tpu.trace_start"() <{level = 10 : i32, message = "bls,bsd->bld"}> : () -> ()
    %cst_150 = arith.constant dense<0.000000e+00> : vector<2x8x8xf32>
    %404 = tpu.matmul %403, %391, %cst_150 {dimension_numbers = #tpu.dot_dimension_numbers<[2], [1], [1], [2], [0, 0, 0, 1, 1, 2], [0], [0]>} : vector<2x8x8xf32>, vector<2x8x8xf32>, vector<2x8x8xf32> -> vector<2x8x8xf32>
    "tpu.trace_stop"() : () -> ()
    %405 = vector.extract_strided_slice %384 {offsets = [0, 0, 8], sizes = [2, 8, 8], strides = [1, 1, 1]} : vector<2x8x32xf32> to vector<2x8x8xf32>
    %406 = vector.extract_strided_slice %386 {offsets = [0, 0, 8], sizes = [2, 8, 8], strides = [1, 1, 1]} : vector<2x8x32xf32> to vector<2x8x8xf32>
    %407 = vector.extract_strided_slice %388 {offsets = [0, 0, 8], sizes = [2, 8, 8], strides = [1, 1, 1]} : vector<2x8x32xf32> to vector<2x8x8xf32>
    "tpu.trace_start"() <{level = 10 : i32, message = "bld,bsd->bls"}> : () -> ()
    %cst_151 = arith.constant dense<0.000000e+00> : vector<2x8x8xf32>
    %408 = tpu.matmul %405, %406, %cst_151 {dimension_numbers = #tpu.dot_dimension_numbers<[2], [2], [1], [1], [0, 0, 0, 1, 1, 1], [0], [0]>} : vector<2x8x8xf32>, vector<2x8x8xf32>, vector<2x8x8xf32> -> vector<2x8x8xf32>
    "tpu.trace_stop"() : () -> ()
    %cst_152 = arith.constant 0.353553385 : f32
    %409 = vector.broadcast %cst_152 : f32 to vector<2x8x8xf32>
    %410 = arith.mulf %408, %409 : vector<2x8x8xf32>
    %cst_153 = arith.constant dense<0xFF800000> : vector<2x8xf32>
    %411 = vector.multi_reduction <maximumf>, %410, %cst_153 [2] : vector<2x8x8xf32> to vector<2x8xf32>
    %412 = vector.shape_cast %411 : vector<2x8xf32> to vector<2x8x1xf32>
    %413 = vector.broadcast %412 : vector<2x8x1xf32> to vector<2x8x8xf32>
    %414 = arith.subf %410, %413 : vector<2x8x8xf32>
    %415 = math.exp %414 : vector<2x8x8xf32>
    %cst_154 = arith.constant dense<0.000000e+00> : vector<2x8xf32>
    %416 = vector.multi_reduction <add>, %415, %cst_154 [2] : vector<2x8x8xf32> to vector<2x8xf32>
    %417 = vector.shape_cast %416 : vector<2x8xf32> to vector<2x8x1xf32>
    %418 = vector.broadcast %417 : vector<2x8x1xf32> to vector<2x8x8xf32>
    %419 = arith.divf %415, %418 : vector<2x8x8xf32>
    "tpu.trace_start"() <{level = 10 : i32, message = "bls,bsd->bld"}> : () -> ()
    %cst_155 = arith.constant dense<0.000000e+00> : vector<2x8x8xf32>
    %420 = tpu.matmul %419, %407, %cst_155 {dimension_numbers = #tpu.dot_dimension_numbers<[2], [1], [1], [2], [0, 0, 0, 1, 1, 2], [0], [0]>} : vector<2x8x8xf32>, vector<2x8x8xf32>, vector<2x8x8xf32> -> vector<2x8x8xf32>
    "tpu.trace_stop"() : () -> ()
    %421 = vector.extract_strided_slice %384 {offsets = [0, 0, 16], sizes = [2, 8, 8], strides = [1, 1, 1]} : vector<2x8x32xf32> to vector<2x8x8xf32>
    %422 = vector.extract_strided_slice %386 {offsets = [0, 0, 16], sizes = [2, 8, 8], strides = [1, 1, 1]} : vector<2x8x32xf32> to vector<2x8x8xf32>
    %423 = vector.extract_strided_slice %388 {offsets = [0, 0, 16], sizes = [2, 8, 8], strides = [1, 1, 1]} : vector<2x8x32xf32> to vector<2x8x8xf32>
    "tpu.trace_start"() <{level = 10 : i32, message = "bld,bsd->bls"}> : () -> ()
    %cst_156 = arith.constant dense<0.000000e+00> : vector<2x8x8xf32>
    %424 = tpu.matmul %421, %422, %cst_156 {dimension_numbers = #tpu.dot_dimension_numbers<[2], [2], [1], [1], [0, 0, 0, 1, 1, 1], [0], [0]>} : vector<2x8x8xf32>, vector<2x8x8xf32>, vector<2x8x8xf32> -> vector<2x8x8xf32>
    "tpu.trace_stop"() : () -> ()
    %cst_157 = arith.constant 0.353553385 : f32
    %425 = vector.broadcast %cst_157 : f32 to vector<2x8x8xf32>
    %426 = arith.mulf %424, %425 : vector<2x8x8xf32>
    %cst_158 = arith.constant dense<0xFF800000> : vector<2x8xf32>
    %427 = vector.multi_reduction <maximumf>, %426, %cst_158 [2] : vector<2x8x8xf32> to vector<2x8xf32>
    %428 = vector.shape_cast %427 : vector<2x8xf32> to vector<2x8x1xf32>
    %429 = vector.broadcast %428 : vector<2x8x1xf32> to vector<2x8x8xf32>
    %430 = arith.subf %426, %429 : vector<2x8x8xf32>
    %431 = math.exp %430 : vector<2x8x8xf32>
    %cst_159 = arith.constant dense<0.000000e+00> : vector<2x8xf32>
    %432 = vector.multi_reduction <add>, %431, %cst_159 [2] : vector<2x8x8xf32> to vector<2x8xf32>
    %433 = vector.shape_cast %432 : vector<2x8xf32> to vector<2x8x1xf32>
    %434 = vector.broadcast %433 : vector<2x8x1xf32> to vector<2x8x8xf32>
    %435 = arith.divf %431, %434 : vector<2x8x8xf32>
    "tpu.trace_start"() <{level = 10 : i32, message = "bls,bsd->bld"}> : () -> ()
    %cst_160 = arith.constant dense<0.000000e+00> : vector<2x8x8xf32>
    %436 = tpu.matmul %435, %423, %cst_160 {dimension_numbers = #tpu.dot_dimension_numbers<[2], [1], [1], [2], [0, 0, 0, 1, 1, 2], [0], [0]>} : vector<2x8x8xf32>, vector<2x8x8xf32>, vector<2x8x8xf32> -> vector<2x8x8xf32>
    "tpu.trace_stop"() : () -> ()
    %437 = vector.extract_strided_slice %384 {offsets = [0, 0, 24], sizes = [2, 8, 8], strides = [1, 1, 1]} : vector<2x8x32xf32> to vector<2x8x8xf32>
    %438 = vector.extract_strided_slice %386 {offsets = [0, 0, 24], sizes = [2, 8, 8], strides = [1, 1, 1]} : vector<2x8x32xf32> to vector<2x8x8xf32>
    %439 = vector.extract_strided_slice %388 {offsets = [0, 0, 24], sizes = [2, 8, 8], strides = [1, 1, 1]} : vector<2x8x32xf32> to vector<2x8x8xf32>
    "tpu.trace_start"() <{level = 10 : i32, message = "bld,bsd->bls"}> : () -> ()
    %cst_161 = arith.constant dense<0.000000e+00> : vector<2x8x8xf32>
    %440 = tpu.matmul %437, %438, %cst_161 {dimension_numbers = #tpu.dot_dimension_numbers<[2], [2], [1], [1], [0, 0, 0, 1, 1, 1], [0], [0]>} : vector<2x8x8xf32>, vector<2x8x8xf32>, vector<2x8x8xf32> -> vector<2x8x8xf32>
    "tpu.trace_stop"() : () -> ()
    %cst_162 = arith.constant 0.353553385 : f32
    %441 = vector.broadcast %cst_162 : f32 to vector<2x8x8xf32>
    %442 = arith.mulf %440, %441 : vector<2x8x8xf32>
    %cst_163 = arith.constant dense<0xFF800000> : vector<2x8xf32>
    %443 = vector.multi_reduction <maximumf>, %442, %cst_163 [2] : vector<2x8x8xf32> to vector<2x8xf32>
    %444 = vector.shape_cast %443 : vector<2x8xf32> to vector<2x8x1xf32>
    %445 = vector.broadcast %444 : vector<2x8x1xf32> to vector<2x8x8xf32>
    %446 = arith.subf %442, %445 : vector<2x8x8xf32>
    %447 = math.exp %446 : vector<2x8x8xf32>
    %cst_164 = arith.constant dense<0.000000e+00> : vector<2x8xf32>
    %448 = vector.multi_reduction <add>, %447, %cst_164 [2] : vector<2x8x8xf32> to vector<2x8xf32>
    %449 = vector.shape_cast %448 : vector<2x8xf32> to vector<2x8x1xf32>
    %450 = vector.broadcast %449 : vector<2x8x1xf32> to vector<2x8x8xf32>
    %451 = arith.divf %447, %450 : vector<2x8x8xf32>
    "tpu.trace_start"() <{level = 10 : i32, message = "bls,bsd->bld"}> : () -> ()
    %cst_165 = arith.constant dense<0.000000e+00> : vector<2x8x8xf32>
    %452 = tpu.matmul %451, %439, %cst_165 {dimension_numbers = #tpu.dot_dimension_numbers<[2], [1], [1], [2], [0, 0, 0, 1, 1, 2], [0], [0]>} : vector<2x8x8xf32>, vector<2x8x8xf32>, vector<2x8x8xf32> -> vector<2x8x8xf32>
    "tpu.trace_stop"() : () -> ()
    %453 = tpu.concatenate %404, %420, %436, %452 in 2 : vector<2x8x8xf32>, vector<2x8x8xf32>, vector<2x8x8xf32>, vector<2x8x8xf32> -> vector<2x8x32xf32>
    %454 = vector.shape_cast %453 : vector<2x8x32xf32> to vector<16x32xf32>
    %455 = vector.broadcast %299 : f32 to vector<16x32xf32>
    %456 = arith.mulf %455, %382 : vector<16x32xf32>
    %cst_166 = arith.constant 1.000000e+00 : f32
    %457 = arith.subf %cst_166, %299 : f32
    %458 = vector.broadcast %457 : f32 to vector<16x32xf32>
    %459 = arith.mulf %458, %454 : vector<16x32xf32>
    %460 = tpu.concatenate %456, %459 in 1 : vector<16x32xf32>, vector<16x32xf32> -> vector<16x64xf32>
    %c1_167 = arith.constant 1 : index
    %c0_168 = arith.constant 0 : index
    %c0_169 = arith.constant 0 : index
    %461 = vector.load %arg11[%c1_167, %c0_168, %c0_169] : memref<2x64x32xf32, #tpu.memory_space<vmem>>, vector<1x64x32xf32>
    %462 = vector.shape_cast %461 : vector<1x64x32xf32> to vector<64x32xf32>
    %cst_170 = arith.constant dense<0.000000e+00> : vector<16x32xf32>
    %463 = tpu.matmul %460, %462, %cst_170 {dimension_numbers = #tpu.dot_dimension_numbers<[1], [0], [0], [1], [0, 0, 1, 1], [], []>} : vector<16x64xf32>, vector<64x32xf32>, vector<16x32xf32> -> vector<16x32xf32>
    %464 = vector.extract_strided_slice %303 {offsets = [0, 0], sizes = [1, 32], strides = [1, 1]} : vector<2x32xf32> to vector<1x32xf32>
    %465 = vector.broadcast %299 : f32 to vector<1x32xf32>
    %466 = arith.mulf %465, %464 : vector<1x32xf32>
    %467 = vector.broadcast %466 : vector<1x32xf32> to vector<16x32xf32>
    %468 = arith.addf %463, %467 : vector<16x32xf32>
    %cst_171 = arith.constant 1.000000e+00 : f32
    %469 = arith.subf %cst_171, %299 : f32
    %470 = vector.extract_strided_slice %303 {offsets = [1, 0], sizes = [1, 32], strides = [1, 1]} : vector<2x32xf32> to vector<1x32xf32>
    %471 = vector.broadcast %469 : f32 to vector<1x32xf32>
    %472 = arith.mulf %471, %470 : vector<1x32xf32>
    %473 = vector.broadcast %472 : vector<1x32xf32> to vector<16x32xf32>
    %474 = arith.addf %468, %473 : vector<16x32xf32>
    %475 = arith.addf %295, %474 : vector<16x32xf32>
    %476 = vector.extract_strided_slice %301 {offsets = [0, 0], sizes = [1, 32], strides = [1, 1]} : vector<4x32xf32> to vector<1x32xf32>
    %477 = vector.extract_strided_slice %301 {offsets = [1, 0], sizes = [1, 32], strides = [1, 1]} : vector<4x32xf32> to vector<1x32xf32>
    %cst_172 = arith.constant dense<0.000000e+00> : vector<16xf32>
    %478 = vector.multi_reduction <add>, %475, %cst_172 [1] : vector<16x32xf32> to vector<16xf32>
    %479 = vector.shape_cast %478 : vector<16xf32> to vector<16x1xf32>
    %cst_173 = arith.constant 3.200000e+01 : f32
    %480 = vector.broadcast %cst_173 : f32 to vector<16x1xf32>
    %481 = arith.divf %479, %480 : vector<16x1xf32>
    %482 = vector.broadcast %481 : vector<16x1xf32> to vector<16x32xf32>
    %483 = arith.subf %475, %482 : vector<16x32xf32>
    %484 = arith.mulf %483, %483 : vector<16x32xf32>
    %cst_174 = arith.constant dense<0.000000e+00> : vector<16xf32>
    %485 = vector.multi_reduction <add>, %484, %cst_174 [1] : vector<16x32xf32> to vector<16xf32>
    %486 = vector.shape_cast %485 : vector<16xf32> to vector<16x1xf32>
    %cst_175 = arith.constant 3.200000e+01 : f32
    %487 = vector.broadcast %cst_175 : f32 to vector<16x1xf32>
    %488 = arith.divf %486, %487 : vector<16x1xf32>
    %cst_176 = arith.constant 9.99999974E-6 : f32
    %489 = vector.broadcast %cst_176 : f32 to vector<16x1xf32>
    %490 = arith.addf %488, %489 : vector<16x1xf32>
    %491 = math.rsqrt %490 : vector<16x1xf32>
    %492 = vector.broadcast %491 : vector<16x1xf32> to vector<16x32xf32>
    %493 = arith.mulf %483, %492 : vector<16x32xf32>
    %494 = vector.broadcast %476 : vector<1x32xf32> to vector<16x32xf32>
    %495 = arith.mulf %493, %494 : vector<16x32xf32>
    %496 = vector.broadcast %477 : vector<1x32xf32> to vector<16x32xf32>
    %497 = arith.addf %495, %496 : vector<16x32xf32>
    %c1_177 = arith.constant 1 : index
    %c0_178 = arith.constant 0 : index
    %c0_179 = arith.constant 0 : index
    %498 = vector.load %arg14[%c1_177, %c0_178, %c0_179] : memref<2x32x128xf32, #tpu.memory_space<vmem>>, vector<1x32x128xf32>
    %499 = vector.shape_cast %498 : vector<1x32x128xf32> to vector<32x128xf32>
    %cst_180 = arith.constant dense<0.000000e+00> : vector<16x128xf32>
    %500 = tpu.matmul %497, %499, %cst_180 {dimension_numbers = #tpu.dot_dimension_numbers<[1], [0], [0], [1], [0, 0, 1, 1], [], []>} : vector<16x32xf32>, vector<32x128xf32>, vector<16x128xf32> -> vector<16x128xf32>
    %c1_181 = arith.constant 1 : index
    %c0_182 = arith.constant 0 : index
    %c0_183 = arith.constant 0 : index
    %501 = vector.load %arg15[%c1_181, %c0_182, %c0_183] : memref<2x1x128xf32, #tpu.memory_space<vmem>>, vector<1x1x128xf32>
    %502 = vector.shape_cast %501 : vector<1x1x128xf32> to vector<1x128xf32>
    %503 = vector.broadcast %502 : vector<1x128xf32> to vector<16x128xf32>
    %504 = arith.addf %500, %503 : vector<16x128xf32>
    %cst_184 = arith.constant 0.707106769 : f32
    %505 = vector.broadcast %cst_184 : f32 to vector<16x128xf32>
    %506 = arith.mulf %504, %505 : vector<16x128xf32>
    %507 = math.absf %506 : vector<16x128xf32>
    %cst_185 = arith.constant 0.327591091 : f32
    %508 = vector.broadcast %cst_185 : f32 to vector<16x128xf32>
    %509 = arith.mulf %508, %507 : vector<16x128xf32>
    %cst_186 = arith.constant 1.000000e+00 : f32
    %510 = vector.broadcast %cst_186 : f32 to vector<16x128xf32>
    %511 = arith.addf %510, %509 : vector<16x128xf32>
    %cst_187 = arith.constant 1.000000e+00 : f32
    %512 = vector.broadcast %cst_187 : f32 to vector<16x128xf32>
    %513 = arith.divf %512, %511 : vector<16x128xf32>
    %cst_188 = arith.constant 1.06140542 : f32
    %514 = vector.broadcast %cst_188 : f32 to vector<16x128xf32>
    %515 = arith.mulf %514, %513 : vector<16x128xf32>
    %cst_189 = arith.constant 1.45315206 : f32
    %516 = vector.broadcast %cst_189 : f32 to vector<16x128xf32>
    %517 = arith.subf %515, %516 : vector<16x128xf32>
    %518 = arith.mulf %517, %513 : vector<16x128xf32>
    %cst_190 = arith.constant 1.42141378 : f32
    %519 = vector.broadcast %cst_190 : f32 to vector<16x128xf32>
    %520 = arith.addf %518, %519 : vector<16x128xf32>
    %521 = arith.mulf %520, %513 : vector<16x128xf32>
    %cst_191 = arith.constant 0.284496725 : f32
    %522 = vector.broadcast %cst_191 : f32 to vector<16x128xf32>
    %523 = arith.subf %521, %522 : vector<16x128xf32>
    %524 = arith.mulf %523, %513 : vector<16x128xf32>
    %cst_192 = arith.constant 0.254829586 : f32
    %525 = vector.broadcast %cst_192 : f32 to vector<16x128xf32>
    %526 = arith.addf %524, %525 : vector<16x128xf32>
    %527 = arith.mulf %526, %513 : vector<16x128xf32>
    %cst_193 = arith.constant 0.000000e+00 : f32
    %528 = vector.broadcast %cst_193 : f32 to vector<16x128xf32>
    %529 = arith.subf %528, %507 : vector<16x128xf32>
    %530 = arith.mulf %529, %507 : vector<16x128xf32>
    %531 = math.exp %530 : vector<16x128xf32>
    %532 = arith.mulf %527, %531 : vector<16x128xf32>
    %cst_194 = arith.constant 1.000000e+00 : f32
    %533 = vector.broadcast %cst_194 : f32 to vector<16x128xf32>
    %534 = arith.subf %533, %532 : vector<16x128xf32>
    %cst_195 = arith.constant 0.000000e+00 : f32
    %535 = vector.broadcast %cst_195 : f32 to vector<16x128xf32>
    %536 = arith.cmpf oge, %506, %535 : vector<16x128xf32>
    %cst_196 = arith.constant 0.000000e+00 : f32
    %537 = vector.broadcast %cst_196 : f32 to vector<16x128xf32>
    %538 = arith.subf %537, %534 : vector<16x128xf32>
    %539 = arith.select %536, %534, %538 : vector<16x128xi1>, vector<16x128xf32>
    %cst_197 = arith.constant 5.000000e-01 : f32
    %540 = vector.broadcast %cst_197 : f32 to vector<16x128xf32>
    %541 = arith.mulf %540, %504 : vector<16x128xf32>
    %cst_198 = arith.constant 1.000000e+00 : f32
    %542 = vector.broadcast %cst_198 : f32 to vector<16x128xf32>
    %543 = arith.addf %542, %539 : vector<16x128xf32>
    %544 = arith.mulf %541, %543 : vector<16x128xf32>
    %c1_199 = arith.constant 1 : index
    %c0_200 = arith.constant 0 : index
    %c0_201 = arith.constant 0 : index
    %545 = vector.load %arg16[%c1_199, %c0_200, %c0_201] : memref<2x128x32xf32, #tpu.memory_space<vmem>>, vector<1x128x32xf32>
    %546 = vector.shape_cast %545 : vector<1x128x32xf32> to vector<128x32xf32>
    %cst_202 = arith.constant dense<0.000000e+00> : vector<16x32xf32>
    %547 = tpu.matmul %544, %546, %cst_202 {dimension_numbers = #tpu.dot_dimension_numbers<[1], [0], [0], [1], [0, 0, 1, 1], [], []>} : vector<16x128xf32>, vector<128x32xf32>, vector<16x32xf32> -> vector<16x32xf32>
    %c1_203 = arith.constant 1 : index
    %c0_204 = arith.constant 0 : index
    %c0_205 = arith.constant 0 : index
    %548 = vector.load %arg17[%c1_203, %c0_204, %c0_205] : memref<2x1x32xf32, #tpu.memory_space<vmem>>, vector<1x1x32xf32>
    %549 = vector.shape_cast %548 : vector<1x1x32xf32> to vector<1x32xf32>
    %550 = vector.broadcast %549 : vector<1x32xf32> to vector<16x32xf32>
    %551 = arith.addf %547, %550 : vector<16x32xf32>
    %552 = arith.addf %497, %551 : vector<16x32xf32>
    %553 = vector.extract_strided_slice %301 {offsets = [2, 0], sizes = [1, 32], strides = [1, 1]} : vector<4x32xf32> to vector<1x32xf32>
    %554 = vector.extract_strided_slice %301 {offsets = [3, 0], sizes = [1, 32], strides = [1, 1]} : vector<4x32xf32> to vector<1x32xf32>
    %cst_206 = arith.constant dense<0.000000e+00> : vector<16xf32>
    %555 = vector.multi_reduction <add>, %552, %cst_206 [1] : vector<16x32xf32> to vector<16xf32>
    %556 = vector.shape_cast %555 : vector<16xf32> to vector<16x1xf32>
    %cst_207 = arith.constant 3.200000e+01 : f32
    %557 = vector.broadcast %cst_207 : f32 to vector<16x1xf32>
    %558 = arith.divf %556, %557 : vector<16x1xf32>
    %559 = vector.broadcast %558 : vector<16x1xf32> to vector<16x32xf32>
    %560 = arith.subf %552, %559 : vector<16x32xf32>
    %561 = arith.mulf %560, %560 : vector<16x32xf32>
    %cst_208 = arith.constant dense<0.000000e+00> : vector<16xf32>
    %562 = vector.multi_reduction <add>, %561, %cst_208 [1] : vector<16x32xf32> to vector<16xf32>
    %563 = vector.shape_cast %562 : vector<16xf32> to vector<16x1xf32>
    %cst_209 = arith.constant 3.200000e+01 : f32
    %564 = vector.broadcast %cst_209 : f32 to vector<16x1xf32>
    %565 = arith.divf %563, %564 : vector<16x1xf32>
    %cst_210 = arith.constant 9.99999974E-6 : f32
    %566 = vector.broadcast %cst_210 : f32 to vector<16x1xf32>
    %567 = arith.addf %565, %566 : vector<16x1xf32>
    %568 = math.rsqrt %567 : vector<16x1xf32>
    %569 = vector.broadcast %568 : vector<16x1xf32> to vector<16x32xf32>
    %570 = arith.mulf %560, %569 : vector<16x32xf32>
    %571 = vector.broadcast %553 : vector<1x32xf32> to vector<16x32xf32>
    %572 = arith.mulf %570, %571 : vector<16x32xf32>
    %573 = vector.broadcast %554 : vector<1x32xf32> to vector<16x32xf32>
    %574 = arith.addf %572, %573 : vector<16x32xf32>
    %c1_211 = arith.constant 1 : index
    %575 = memref.load %arg2[%c1_211] : memref<2xf32, #tpu.memory_space<smem>>
    %576 = vector.broadcast %575 : f32 to vector<16x32xf32>
    %577 = arith.mulf %576, %574 : vector<16x32xf32>
    %578 = arith.addf %298, %577 : vector<16x32xf32>
    %c0_212 = arith.constant 0 : index
    %c0_213 = arith.constant 0 : index
    %579 = vector.load %arg18[%c0_212, %c0_213] : memref<32x32xf32, #tpu.memory_space<vmem>>, vector<32x32xf32>
    %cst_214 = arith.constant dense<0.000000e+00> : vector<16x32xf32>
    %580 = tpu.matmul %578, %579, %cst_214 {dimension_numbers = #tpu.dot_dimension_numbers<[1], [0], [0], [1], [0, 0, 1, 1], [], []>} : vector<16x32xf32>, vector<32x32xf32>, vector<16x32xf32> -> vector<16x32xf32>
    %c0_215 = arith.constant 0 : index
    %c0_216 = arith.constant 0 : index
    %581 = vector.load %arg19[%c0_215, %c0_216] : memref<1x32xf32, #tpu.memory_space<vmem>>, vector<1x32xf32>
    %582 = vector.broadcast %581 : vector<1x32xf32> to vector<16x32xf32>
    %583 = arith.addf %580, %582 : vector<16x32xf32>
    %584 = vector.extract_strided_slice %583 {offsets = [7, 0], sizes = [1, 32], strides = [1, 1]} : vector<16x32xf32> to vector<1x32xf32>
    %585 = vector.extract_strided_slice %583 {offsets = [15, 0], sizes = [1, 32], strides = [1, 1]} : vector<16x32xf32> to vector<1x32xf32>
    %586 = tpu.concatenate %584, %585 in 0 : vector<1x32xf32>, vector<1x32xf32> -> vector<2x32xf32>
    %c0_217 = arith.constant 0 : index
    %c0_218 = arith.constant 0 : index
    %587 = vector.load %arg20[%c0_217, %c0_218] : memref<32x32xf32, #tpu.memory_space<vmem>>, vector<32x32xf32>
    %cst_219 = arith.constant dense<0.000000e+00> : vector<2x32xf32>
    %588 = tpu.matmul %586, %587, %cst_219 {dimension_numbers = #tpu.dot_dimension_numbers<[1], [0], [0], [1], [0, 0, 1, 1], [], []>} : vector<2x32xf32>, vector<32x32xf32>, vector<2x32xf32> -> vector<2x32xf32>
    %c0_220 = arith.constant 0 : index
    %c0_221 = arith.constant 0 : index
    %589 = vector.load %arg21[%c0_220, %c0_221] : memref<1x32xf32, #tpu.memory_space<vmem>>, vector<1x32xf32>
    %590 = vector.broadcast %589 : vector<1x32xf32> to vector<2x32xf32>
    %591 = arith.addf %588, %590 : vector<2x32xf32>
    %cst_222 = arith.constant 0.707106769 : f32
    %592 = vector.broadcast %cst_222 : f32 to vector<2x32xf32>
    %593 = arith.mulf %591, %592 : vector<2x32xf32>
    %594 = math.absf %593 : vector<2x32xf32>
    %cst_223 = arith.constant 0.327591091 : f32
    %595 = vector.broadcast %cst_223 : f32 to vector<2x32xf32>
    %596 = arith.mulf %595, %594 : vector<2x32xf32>
    %cst_224 = arith.constant 1.000000e+00 : f32
    %597 = vector.broadcast %cst_224 : f32 to vector<2x32xf32>
    %598 = arith.addf %597, %596 : vector<2x32xf32>
    %cst_225 = arith.constant 1.000000e+00 : f32
    %599 = vector.broadcast %cst_225 : f32 to vector<2x32xf32>
    %600 = arith.divf %599, %598 : vector<2x32xf32>
    %cst_226 = arith.constant 1.06140542 : f32
    %601 = vector.broadcast %cst_226 : f32 to vector<2x32xf32>
    %602 = arith.mulf %601, %600 : vector<2x32xf32>
    %cst_227 = arith.constant 1.45315206 : f32
    %603 = vector.broadcast %cst_227 : f32 to vector<2x32xf32>
    %604 = arith.subf %602, %603 : vector<2x32xf32>
    %605 = arith.mulf %604, %600 : vector<2x32xf32>
    %cst_228 = arith.constant 1.42141378 : f32
    %606 = vector.broadcast %cst_228 : f32 to vector<2x32xf32>
    %607 = arith.addf %605, %606 : vector<2x32xf32>
    %608 = arith.mulf %607, %600 : vector<2x32xf32>
    %cst_229 = arith.constant 0.284496725 : f32
    %609 = vector.broadcast %cst_229 : f32 to vector<2x32xf32>
    %610 = arith.subf %608, %609 : vector<2x32xf32>
    %611 = arith.mulf %610, %600 : vector<2x32xf32>
    %cst_230 = arith.constant 0.254829586 : f32
    %612 = vector.broadcast %cst_230 : f32 to vector<2x32xf32>
    %613 = arith.addf %611, %612 : vector<2x32xf32>
    %614 = arith.mulf %613, %600 : vector<2x32xf32>
    %cst_231 = arith.constant 0.000000e+00 : f32
    %615 = vector.broadcast %cst_231 : f32 to vector<2x32xf32>
    %616 = arith.subf %615, %594 : vector<2x32xf32>
    %617 = arith.mulf %616, %594 : vector<2x32xf32>
    %618 = math.exp %617 : vector<2x32xf32>
    %619 = arith.mulf %614, %618 : vector<2x32xf32>
    %cst_232 = arith.constant 1.000000e+00 : f32
    %620 = vector.broadcast %cst_232 : f32 to vector<2x32xf32>
    %621 = arith.subf %620, %619 : vector<2x32xf32>
    %cst_233 = arith.constant 0.000000e+00 : f32
    %622 = vector.broadcast %cst_233 : f32 to vector<2x32xf32>
    %623 = arith.cmpf oge, %593, %622 : vector<2x32xf32>
    %cst_234 = arith.constant 0.000000e+00 : f32
    %624 = vector.broadcast %cst_234 : f32 to vector<2x32xf32>
    %625 = arith.subf %624, %621 : vector<2x32xf32>
    %626 = arith.select %623, %621, %625 : vector<2x32xi1>, vector<2x32xf32>
    %cst_235 = arith.constant 5.000000e-01 : f32
    %627 = vector.broadcast %cst_235 : f32 to vector<2x32xf32>
    %628 = arith.mulf %627, %591 : vector<2x32xf32>
    %cst_236 = arith.constant 1.000000e+00 : f32
    %629 = vector.broadcast %cst_236 : f32 to vector<2x32xf32>
    %630 = arith.addf %629, %626 : vector<2x32xf32>
    %631 = arith.mulf %628, %630 : vector<2x32xf32>
    %c0_237 = arith.constant 0 : index
    %c0_238 = arith.constant 0 : index
    %632 = vector.load %arg22[%c0_237, %c0_238] : memref<32x128xf32, #tpu.memory_space<vmem>>, vector<32x128xf32>
    %cst_239 = arith.constant dense<0.000000e+00> : vector<2x128xf32>
    %633 = tpu.matmul %631, %632, %cst_239 {dimension_numbers = #tpu.dot_dimension_numbers<[1], [0], [0], [1], [0, 0, 1, 1], [], []>} : vector<2x32xf32>, vector<32x128xf32>, vector<2x128xf32> -> vector<2x128xf32>
    %c0_240 = arith.constant 0 : index
    %c0_241 = arith.constant 0 : index
    %634 = vector.load %arg23[%c0_240, %c0_241] : memref<1x128xf32, #tpu.memory_space<vmem>>, vector<1x128xf32>
    %635 = vector.broadcast %634 : vector<1x128xf32> to vector<2x128xf32>
    %636 = arith.addf %633, %635 : vector<2x128xf32>
    %c0_242 = arith.constant 0 : index
    %c0_243 = arith.constant 0 : index
    %637 = vector.load %arg24[%c0_242, %c0_243] : memref<2x128xf32, #tpu.memory_space<vmem>>, vector<2x128xf32>
    tpu.vector_store %arg24[%c0_242, %c0_243], %636 {strides = array<i32>} : memref<2x128xf32, #tpu.memory_space<vmem>>, vector<2x128xf32>,
    return
  }
}

</mosaic_0001>

<bundles_post_ra>
// kernel: _lambda_.1
= control target key start
LH: loop header
LB: loop body
LE: loop exit
PB: predicated region body
PF: predicated region fallthrough
CT: control target
= control target key end

     0   :  { %s10358_s0 = inlined_call_operand.<no memory space> [shape: f32[1], index: 0, kind: input, shape index: {}]   ;;  %s10359_s1 = inlined_call_operand.vmem [shape: f32[2], index: 1, kind: input, shape index: {}, may-alias: {1,2}]   ;;  %s10360_s2 = inlined_call_operand.vmem [shape: f32[2], index: 2, kind: input, shape index: {}, may-alias: {1,2}]   ;;  %s10361_s3 = inlined_call_operand.vmem [shape: f32[16,4], index: 3, kind: input, shape index: {}]   ;;  %s10362_s4 = inlined_call_operand.hbm [shape: f32[4,32], index: 4, kind: input, shape index: {}]   ;;  %s10363_s5 = inlined_call_operand.hbm [shape: f32[1,32], index: 5, kind: input, shape index: {}]   ;;  %s10364_s6 = inlined_call_operand.hbm [shape: f32[32,32], index: 6, kind: input, shape index: {}]   ;;  %s10365_s7 = inlined_call_operand.hbm [shape: f32[1,32], index: 7, kind: input, shape index: {}]   ;;  %s10366_s8 = inlined_call_operand.hbm [shape: f32[8,32], index: 8, kind: input, shape index: {}]   ;;  %s10367_s9 = inlined_call_operand.hbm [shape: f32[2,32,192], index: 9, kind: input, shape index: {}]   ;;  %s10368_s10 = inlined_call_operand.hbm [shape: f32[2,1,192], index: 10, kind: input, shape index: {}]   ;;  %s10369_s11 = inlined_call_operand.hbm [shape: f32[2,64,32], index: 11, kind: input, shape index: {}]   ;;  %s10370_s12 = inlined_call_operand.hbm [shape: f32[2,2,32], index: 12, kind: input, shape index: {}]   ;;  %s10371_s13 = inlined_call_operand.hbm [shape: f32[2,4,32], index: 13, kind: input, shape index: {}]   ;;  %s10372_s14 = inlined_call_operand.vmem [shape: f32[2,32,128], index: 14, kind: input, shape index: {}]   ;;  %s10373_s15 = inlined_call_operand.hbm [shape: f32[2,1,128], index: 15, kind: input, shape index: {}]   ;;  %s10374_s16 = inlined_call_operand.hbm [shape: f32[2,128,32], index: 16, kind: input, shape index: {}]   ;;  %s10375_s17 = inlined_call_operand.hbm [shape: f32[2,1,32], index: 17, kind: input, shape index: {}]   ;;  %s10376_s18 = inlined_call_operand.hbm [shape: f32[32,32], index: 18, kind: input, shape index: {}]   ;;  %s10377_s19 = inlined_call_operand.hbm [shape: f32[1,32], index: 19, kind: input, shape index: {}]   ;;  %s10378_s20 = inlined_call_operand.hbm [shape: f32[32,32], index: 20, kind: input, shape index: {}]   ;;  %s10379_s21 = inlined_call_operand.hbm [shape: f32[1,32], index: 21, kind: input, shape index: {}]   ;;  %s10380_s22 = inlined_call_operand.vmem [shape: f32[32,128], index: 22, kind: input, shape index: {}]   ;;  %s10381_s23 = inlined_call_operand.vmem [shape: f32[1,128], index: 23, kind: input, shape index: {}]   ;;  %s10382_s24 = inlined_call_operand.hbm [shape: f32[2,128], index: 24, kind: output, shape index: {}]  }
   0x1   :  { %10392 = sst [smem:[#allocation47_spill]] %s10358_s0 }
   0x2   :  { %10393 = sst [smem:[#allocation48_spill]] %s10359_s1 }
   0x3   :  { %10394 = sst [smem:[#allocation49_spill]] %s10360_s2 }
   0x4   :  { %10395 = sst [smem:[#allocation50_spill]] %s10361_s3 }
   0x5   :  { %10396 = sst [smem:[#allocation51_spill]] %s10362_s4 }
   0x6   :  { %10397 = sst [smem:[#allocation52_spill]] %s10363_s5 }
   0x7   :  { %10398 = sst [smem:[#allocation53_spill]] %s10364_s6 }
   0x8   :  { %10399 = sst [smem:[#allocation54_spill]] %s10365_s7 }
   0x9   :  { %10400 = sst [smem:[#allocation55_spill]] %s10366_s8 }
   0xa   :  { %10401 = sst [smem:[#allocation56_spill]] %s10382_s24 }
   0xb   :  { %30 = vsyncpa [#allocation6], 0 }
   0xc   :  { %31 = vsyncpa [#allocation8], 0 }
   0xd   :  { %32 = vsyncpa [#allocation4], 0 }
   0xe   :  { %33 = vsyncpa [#allocation11], 0 }
   0xf   :  { %34 = vsyncpa [#allocation14], 0 }
  0x10   :  { %35 = vsyncpa [#allocation17], 0 }
  0x11   :  { %36 = vsyncpa [#allocation20], 0 }
  0x12   :  { %37 = vsyncpa [#allocation23], 0 }
  0x13   :  { %38 = vsyncpa [#allocation26], 0 }
  0x14   :  { %39 = vsyncpa [#allocation29], 0 }
  0x15   :  { %40 = vsyncpa [#allocation32], 0 }
  0x16   :  { %41 = vsyncpa [#allocation5], 0  ;;  %s9051_s5 = smov [#allocation10]   ;;  %s9052_s27 = smov [#allocation13]  }
  0x17   :  { %s82_s26 = sshll.u32 %s9051_s5, 4  ;;  %s104_s28 = sshll.u32 %s9052_s27, 4  ;;  %s83_s26 = int_to_ptr.vmem [resolvable:$true] %s82_s26  ;;  %s105_s28 = int_to_ptr.vmem [resolvable:$true] %s104_s28 }
  0x18   :  { %s10402_s29 = sld [smem:[#allocation52_spill]] }
  0x1e   :  { %s8607_s0 = scalar_lea.hbm %s10402_s29, 16 }
  0x1f   :  { %p8608_p0 = scmp.ne.s32.totalorder %s10402_s29, %s8607_s0  ;;  %p8611_p1 = scmp.lt.u32.totalorder %s8607_s0, %s10402_s29 }
  0x21   :  { %p8613_p2 = pnand %p8611_p1, %p8608_p0 }
  0x23   :  { %8616 = shalt.err (!%p8613_p2)
}
  0x24   :  { %s8617_s8 = scalar_lea.vmem %s83_s26, 16  ;;  %s8621_s4 = scalar_lea.vmem %s83_s26, 32 }
  0x25   :  { %p8618_p3 = scmp.ne.s32.totalorder %s83_s26, %s8617_s8  ;;  %p8622_p4 = scmp.lt.s32.totalorder %s83_s26, %s83_s26 }
  0x26   :  { %p8623_p5 = scmp.lt.s32.totalorder %s8621_s4, %s8617_s8 }
  0x28   :  { %p8624_p6 = por %p8623_p5, %p8622_p4 }
  0x2a   :  { %p8625_p7 = pnand %p8624_p6, %p8618_p3 }
  0x2c   :  { %8628 = shalt.err (!%p8625_p7)
}
  0x2d   :  { %85 = dma.hbm_to_vmem [thread:$0]  %s10402_s29, 16, %s83_s26, [#allocation11]  }
  0x2e   :  { %s10403_s2 = sld [smem:[#allocation54_spill]] }
  0x34   :  { %s8629_s7 = scalar_lea.hbm %s10403_s2, 16 }
  0x35   :  { %p8630_p8 = scmp.ne.s32.totalorder %s10403_s2, %s8629_s7  ;;  %p8633_p9 = scmp.lt.u32.totalorder %s8629_s7, %s10403_s2 }
  0x37   :  { %p8635_p10 = pnand %p8633_p9, %p8630_p8 }
  0x39   :  { %8638 = shalt.err (!%p8635_p10)
}
  0x3a   :  { %s8639_s8 = scalar_lea.vmem %s105_s28, 16  ;;  %s8643_s4 = scalar_lea.vmem %s105_s28, 32 }
  0x3b   :  { %p8640_p11 = scmp.ne.s32.totalorder %s105_s28, %s8639_s8  ;;  %p8644_p12 = scmp.lt.s32.totalorder %s105_s28, %s105_s28 }
  0x3c   :  { %p8645_p13 = scmp.lt.s32.totalorder %s8643_s4, %s8639_s8 }
  0x3e   :  { %p8646_p0 = por %p8645_p13, %p8644_p12 }
  0x40   :  { %p8647_p1 = pnand %p8646_p0, %p8640_p11 }
  0x42   :  { %8650 = shalt.err (!%p8647_p1)
}
  0x43   :  { %107 = dma.hbm_to_vmem [thread:$0]  %s10403_s2, 16, %s105_s28, [#allocation14]  }
  0x44   :  { %s9053_s1 = smov [#allocation16]   ;;  %s8651_s7 = scalar_lea.hbm %s10367_s9, 2048 }
  0x45   :  { %s123_s5 = sshll.u32 %s9053_s1, 4  ;;  %p8652_p2 = scmp.ne.s32.totalorder %s10367_s9, %s8651_s7  ;;  %s124_s5 = int_to_ptr.vmem [resolvable:$true] %s123_s5 }
  0x46   :  { %p8655_p3 = scmp.lt.u32.totalorder %s8651_s7, %s10367_s9 }
  0x48   :  { %p8657_p4 = pnand %p8655_p3, %p8652_p2 }
  0x4a   :  { %8660 = shalt.err (!%p8657_p4)
}
  0x4b   :  { %s8661_s8 = scalar_lea.vmem %s124_s5, 2048  ;;  %p8666_p6 = scmp.lt.s32.totalorder %s124_s5, %s124_s5 }
  0x4c   :  { %p8662_p5 = scmp.ne.s32.totalorder %s124_s5, %s8661_s8  ;;  %p8667_p7 = scmp.lt.s32.totalorder %s8661_s8, %s8661_s8 }
  0x4e   :  { %p8668_p8 = por %p8667_p7, %p8666_p6 }
  0x50   :  { %p8669_p9 = pnand %p8668_p8, %p8662_p5 }
  0x52   :  { %8672 = shalt.err (!%p8669_p9)
}
  0x53   :  { %s9054_s28 = smov 256   ;;  %s10390_s2 = smov 16  }
  0x54   :  { %129 = dma.hbm_to_vmem [thread:$0]  %s10367_s9, 2048, %s124_s5, [#allocation17], %s9054_s28, %s9054_s28, %s10390_s2  }
  0x55   :  { %s9056_s29 = smov [#allocation19]   ;;  %s9057_s27 = smov [#allocation22]  }
  0x56   :  { %s147_s1 = sshll.u32 %s9056_s29, 4  ;;  %s171_s6 = sshll.u32 %s9057_s27, 4  ;;  %s148_s1 = int_to_ptr.vmem [resolvable:$true] %s147_s1  ;;  %s172_s6 = int_to_ptr.vmem [resolvable:$true] %s171_s6 }
  0x57   :  { %s8673_s0 = scalar_lea.hbm %s10369_s11, 2048 }
  0x58   :  { %p8674_p10 = scmp.ne.s32.totalorder %s10369_s11, %s8673_s0  ;;  %p8677_p11 = scmp.lt.u32.totalorder %s8673_s0, %s10369_s11 }
  0x5a   :  { %p8679_p12 = pnand %p8677_p11, %p8674_p10 }
  0x5c   :  { %8682 = shalt.err (!%p8679_p12)
}
  0x5d   :  { %s8683_s9 = scalar_lea.vmem %s148_s1, 2048  ;;  %p8688_p0 = scmp.lt.s32.totalorder %s148_s1, %s148_s1 }
  0x5e   :  { %p8684_p13 = scmp.ne.s32.totalorder %s148_s1, %s8683_s9  ;;  %p8689_p1 = scmp.lt.s32.totalorder %s8683_s9, %s8683_s9 }
  0x60   :  { %p8690_p2 = por %p8689_p1, %p8688_p0 }
  0x62   :  { %p8691_p3 = pnand %p8690_p2, %p8684_p13 }
  0x64   :  { %8694 = shalt.err (!%p8691_p3)
}
  0x65   :  { %s9058_s5 = smov 128   ;;  %s9059_s28 = smov 8  }
  0x66   :  { %153 = dma.hbm_to_vmem [thread:$0]  %s10369_s11, 2048, %s148_s1, [#allocation20], %s9058_s5, %s9058_s5, %s9059_s28  }
  0x67   :  { %s8695_s27 = scalar_lea.hbm %s10371_s13, 128 }
  0x68   :  { %p8696_p4 = scmp.ne.s32.totalorder %s10371_s13, %s8695_s27  ;;  %p8699_p5 = scmp.lt.u32.totalorder %s8695_s27, %s10371_s13 }
  0x6a   :  { %p8701_p6 = pnand %p8699_p5, %p8696_p4 }
  0x6c   :  { %8704 = shalt.err (!%p8701_p6)
}
  0x6d   :  { %s8705_s25 = scalar_lea.vmem %s172_s6, 128  ;;  %p8710_p8 = scmp.lt.s32.totalorder %s172_s6, %s172_s6 }
  0x6e   :  { %p8706_p7 = scmp.ne.s32.totalorder %s172_s6, %s8705_s25  ;;  %p8711_p9 = scmp.lt.s32.totalorder %s8705_s25, %s8705_s25 }
  0x70   :  { %p8712_p10 = por %p8711_p9, %p8710_p8 }
  0x72   :  { %p8713_p11 = pnand %p8712_p10, %p8706_p7 }
  0x74   :  { %8716 = shalt.err (!%p8713_p11)
}
  0x75   :  { %s9060_s11 = smov 64   ;;  %s9061_s1 = smov 4  }
  0x76   :  { %177 = dma.hbm_to_vmem [thread:$0]  %s10371_s13, 128, %s172_s6, [#allocation23], %s9060_s11, %s9060_s11, %s9061_s1  }
  0x77   :  { %s9062_s4 = smov [#allocation25]   ;;  %s9063_s24 = smov [#allocation28]  }
  0x78   :  { %s197_s26 = sshll.u32 %s9062_s4, 4  ;;  %s221_s29 = sshll.u32 %s9063_s24, 4  ;;  %s198_s26 = int_to_ptr.vmem [resolvable:$true] %s197_s26  ;;  %s222_s29 = int_to_ptr.vmem [resolvable:$true] %s221_s29 }
  0x79   :  { %s8717_s30 = scalar_lea.hbm %s10374_s16, 4096 }
  0x7a   :  { %p8718_p12 = scmp.ne.s32.totalorder %s10374_s16, %s8717_s30  ;;  %p8721_p13 = scmp.lt.u32.totalorder %s8717_s30, %s10374_s16 }
  0x7c   :  { %p8723_p0 = pnand %p8721_p13, %p8718_p12 }
  0x7e   :  { %8726 = shalt.err (!%p8723_p0)
}
  0x7f   :  { %s8727_s13 = scalar_lea.vmem %s198_s26, 4096  ;;  %p8732_p2 = scmp.lt.s32.totalorder %s198_s26, %s198_s26 }
  0x80   :  { %p8728_p1 = scmp.ne.s32.totalorder %s198_s26, %s8727_s13  ;;  %p8733_p3 = scmp.lt.s32.totalorder %s8727_s13, %s8727_s13 }
  0x82   :  { %p8734_p4 = por %p8733_p3, %p8732_p2 }
  0x84   :  { %p8735_p5 = pnand %p8734_p4, %p8728_p1 }
  0x86   :  { %8738 = shalt.err (!%p8735_p5)
}
  0x87   :  { %203 = dma.hbm_to_vmem [thread:$0]  %s10374_s16, 4096, %s198_s26, [#allocation26], %s9058_s5, %s9058_s5, %s9059_s28  }
  0x88   :  { %s8739_s9 = scalar_lea.hbm %s10376_s18, 512 }
  0x89   :  { %p8740_p6 = scmp.ne.s32.totalorder %s10376_s18, %s8739_s9  ;;  %p8743_p7 = scmp.lt.u32.totalorder %s8739_s9, %s10376_s18 }
  0x8b   :  { %p8745_p8 = pnand %p8743_p7, %p8740_p6 }
  0x8d   :  { %8748 = shalt.err (!%p8745_p8)
}
  0x8e   :  { %s8749_s30 = scalar_lea.vmem %s222_s29, 512  ;;  %p8754_p10 = scmp.lt.s32.totalorder %s222_s29, %s222_s29 }
  0x8f   :  { %p8750_p9 = scmp.ne.s32.totalorder %s222_s29, %s8749_s30  ;;  %p8755_p11 = scmp.lt.s32.totalorder %s8749_s30, %s8749_s30 }
  0x91   :  { %p8756_p12 = por %p8755_p11, %p8754_p10 }
  0x93   :  { %p8757_p13 = pnand %p8756_p12, %p8750_p9 }
  0x95   :  { %8760 = shalt.err (!%p8757_p13)
}
  0x96   :  { %227 = dma.hbm_to_vmem [thread:$0]  %s10376_s18, 512, %s222_s29, [#allocation29], %s9058_s5, %s9058_s5, %s9059_s28  }
  0x97   :  { %s9064_s0 = smov [#allocation31]   ;;  %s10404_s6 = sld [smem:[#allocation48_spill]] }
  0x98   :  { %s243_s3 = sshll.u32 %s9064_s0, 4  ;;  %s8761_s9 = scalar_lea.hbm %s10378_s20, 512  ;;  %s244_s3 = int_to_ptr.vmem [resolvable:$true] %s243_s3 }
  0x99   :  { %p8762_p0 = scmp.ne.s32.totalorder %s10378_s20, %s8761_s9  ;;  %p8765_p1 = scmp.lt.u32.totalorder %s8761_s9, %s10378_s20 }
  0x9b   :  { %p8767_p2 = pnand %p8765_p1, %p8762_p0 }
  0x9d   :  { %s50_s1 = sshll.u32 %s10404_s6, 4  ;;  %s51_s1 = int_to_ptr.vmem [resolvable:$true] %s50_s1 }
  0x9e   :  { %8770 = shalt.err (!%p8767_p2)
}
  0x9f   :  { %s8771_s18 = scalar_lea.vmem %s244_s3, 512  ;;  %p8776_p4 = scmp.lt.s32.totalorder %s244_s3, %s244_s3 }
  0xa0   :  { %p8772_p3 = scmp.ne.s32.totalorder %s244_s3, %s8771_s18  ;;  %p8777_p5 = scmp.lt.s32.totalorder %s8771_s18, %s8771_s18 }
  0xa2   :  { %p8778_p6 = por %p8777_p5, %p8776_p4 }
  0xa4   :  { %p8779_p7 = pnand %p8778_p6, %p8772_p3 }
  0xa6   :  { %8782 = shalt.err (!%p8779_p7)
}
  0xa7   :  { %249 = dma.hbm_to_vmem [thread:$0]  %s10378_s20, 512, %s244_s3, [#allocation32], %s9058_s5, %s9058_s5, %s9059_s28  }
  0xa8   :  { %s10405_s0 = sld [smem:[#allocation49_spill]]  ;;  %s8783_s13 = scalar_lea.vmem %s51_s1, 16 }
  0xa9   :  { %p8784_p8 = scmp.ne.s32.totalorder %s51_s1, %s8783_s13  ;;  %p8788_p9 = scmp.lt.s32.totalorder %s51_s1, %s51_s1 }
  0xaa   :  { %p8789_p10 = scmp.lt.s32.totalorder %s8783_s13, %s8783_s13 }
  0xac   :  { %p8790_p11 = por %p8789_p10, %p8788_p9 }
  0xae   :  { %s60_s25 = sshll.u32 %s10405_s0, 4  ;;  %p8791_p12 = pnand %p8790_p11, %p8784_p8  ;;  %s61_s25 = int_to_ptr.vmem [resolvable:$true] %s60_s25 }
  0xb0   :  { %8794 = shalt.err (!%p8791_p12)
}
  0xb1   :  { %s9065_s6 = smov [#allocation3]   ;;  %s8795_s8 = scalar_lea.vmem %s61_s25, 16 }
  0xb2   :  { %53 = dma.vmem_to_smem %s51_s1, 16, %s9065_s6, [#allocation6]  }
  0xb3   :  { %p8796_p13 = scmp.ne.s32.totalorder %s61_s25, %s8795_s8  ;;  %p8800_p0 = scmp.lt.s32.totalorder %s61_s25, %s61_s25 }
  0xb4   :  { %p8801_p1 = scmp.lt.s32.totalorder %s8795_s8, %s8795_s8 }
  0xb6   :  { %p8802_p2 = por %p8801_p1, %p8800_p0 }
  0xb8   :  { %p8803_p3 = pnand %p8802_p2, %p8796_p13 }
  0xba   :  { %8806 = shalt.err (!%p8803_p3)
}
  0xbb   :  { %s9066_s20 = smov [#allocation7]   ;;  %s9067_s3 = smov [#allocation9]  }
  0xbc   :  { %63 = dma.vmem_to_smem %s61_s25, 16, %s9066_s20, [#allocation8]  }
  0xbd   :  { %s72_s2 = sshll.u32 %s9067_s3, 4  ;;  %s9068_s9 = smov [#allocation12]   ;;  %s73_s2 = int_to_ptr.vmem [resolvable:$true] %s72_s2 }
  0xbe   :  { %s91_s4 = sshll.u32 %s9068_s9, 4  ;;  %s10406_s1 = sld [smem:[#allocation51_spill]]  ;;  %s9336_s4 = int_to_ptr.vmem [resolvable:$true] %s91_s4 }
  0xc4   :  { %s8807_s7 = scalar_lea.hbm %s10406_s1, 64 }
  0xc5   :  { %p8808_p4 = scmp.ne.s32.totalorder %s10406_s1, %s8807_s7  ;;  %p8811_p5 = scmp.lt.u32.totalorder %s8807_s7, %s10406_s1 }
  0xc7   :  { %p8813_p6 = pnand %p8811_p5, %p8808_p4 }
  0xc9   :  { %8816 = shalt.err (!%p8813_p6)
}
  0xca   :  { %s8817_s26 = scalar_lea.vmem %s73_s2, 64  ;;  %p8822_p8 = scmp.lt.s32.totalorder %s73_s2, %s73_s2 }
  0xcb   :  { %p8818_p7 = scmp.ne.s32.totalorder %s73_s2, %s8817_s26  ;;  %p8823_p9 = scmp.lt.s32.totalorder %s8817_s26, %s8817_s26 }
  0xcd   :  { %p8824_p10 = por %p8823_p9, %p8822_p8 }
  0xcf   :  { %p8825_p11 = pnand %p8824_p10, %p8818_p7 }
  0xd1   :  { %8828 = shalt.err (!%p8825_p11)
}
  0xd2   :  { %75 = dma.hbm_to_vmem [thread:$0]  %s10406_s1, 64, %s73_s2, [#allocation4]  }
  0xd3   :  { %s10407_s8 = sld [smem:[#allocation53_spill]] }
  0xd9   :  { %s8829_s20 = scalar_lea.hbm %s10407_s8, 512 }
  0xda   :  { %p8830_p12 = scmp.ne.s32.totalorder %s10407_s8, %s8829_s20  ;;  %p8833_p13 = scmp.lt.u32.totalorder %s8829_s20, %s10407_s8 }
  0xdc   :  { %p8835_p0 = pnand %p8833_p13, %p8830_p12 }
  0xde   :  { %8838 = shalt.err (!%p8835_p0)
}
  0xdf   :  { %s8839_s7 = scalar_lea.vmem %s9336_s4, 512  ;;  %p8844_p2 = scmp.lt.s32.totalorder %s9336_s4, %s9336_s4 }
  0xe0   :  { %p8840_p1 = scmp.ne.s32.totalorder %s9336_s4, %s8839_s7  ;;  %p8845_p3 = scmp.lt.s32.totalorder %s8839_s7, %s8839_s7 }
  0xe2   :  { %p8846_p4 = por %p8845_p3, %p8844_p2 }
  0xe4   :  { %p8847_p5 = pnand %p8846_p4, %p8840_p1 }
  0xe6   :  { %8850 = shalt.err (!%p8847_p5)
}
  0xe7   :  { %97 = dma.hbm_to_vmem [thread:$0]  %s10407_s8, 512, %s9336_s4, [#allocation11], %s9058_s5, %s9058_s5, %s9059_s28  }
  0xe8   :  { %s9069_s18 = smov [#allocation15]   ;;  %s9070_s30 = smov [#allocation18]  }
  0xe9   :  { %s114_s29 = sshll.u32 %s9069_s18, 4  ;;  %s135_s16 = sshll.u32 %s9070_s30, 4  ;;  %s115_s29 = int_to_ptr.vmem [resolvable:$true] %s114_s29  ;;  %s9370_s16 = int_to_ptr.vmem [resolvable:$true] %s135_s16 }
  0xea   :  { %s10408_s25 = sld [smem:[#allocation55_spill]] }
  0xf0   :  { %s8851_s13 = scalar_lea.hbm %s10408_s25, 128 }
  0xf1   :  { %p8852_p6 = scmp.ne.s32.totalorder %s10408_s25, %s8851_s13  ;;  %p8855_p7 = scmp.lt.u32.totalorder %s8851_s13, %s10408_s25 }
  0xf3   :  { %p8857_p8 = pnand %p8855_p7, %p8852_p6 }
  0xf5   :  { %8860 = shalt.err (!%p8857_p8)
}
  0xf6   :  { %s8861_s5 = scalar_lea.vmem %s115_s29, 128  ;;  %p8866_p10 = scmp.lt.s32.totalorder %s115_s29, %s115_s29 }
  0xf7   :  { %p8862_p9 = scmp.ne.s32.totalorder %s115_s29, %s8861_s5  ;;  %p8867_p11 = scmp.lt.s32.totalorder %s8861_s5, %s8861_s5 }
  0xf9   :  { %p8868_p12 = por %p8867_p11, %p8866_p10 }
  0xfb   :  { %p8869_p13 = pnand %p8868_p12, %p8862_p9 }
  0xfd   :  { %8872 = shalt.err (!%p8869_p13)
}
  0xfe   :  { %117 = dma.hbm_to_vmem [thread:$0]  %s10408_s25, 128, %s115_s29, [#allocation14]  }
  0xff   :  { %s8873_s7 = scalar_lea.hbm %s10368_s10, 64 }
 0x100   :  { %p8874_p0 = scmp.ne.s32.totalorder %s10368_s10, %s8873_s7  ;;  %p8877_p1 = scmp.lt.u32.totalorder %s8873_s7, %s10368_s10 }
 0x102   :  { %p8879_p2 = pnand %p8877_p1, %p8874_p0 }
 0x104   :  { %8882 = shalt.err (!%p8879_p2)
}
 0x105   :  { %s8883_s26 = scalar_lea.vmem %s9370_s16, 64  ;;  %p8888_p4 = scmp.lt.s32.totalorder %s9370_s16, %s9370_s16 }
 0x106   :  { %p8884_p3 = scmp.ne.s32.totalorder %s9370_s16, %s8883_s26  ;;  %p8889_p5 = scmp.lt.s32.totalorder %s8883_s26, %s8883_s26 }
 0x108   :  { %p8890_p6 = por %p8889_p5, %p8888_p4 }
 0x10a   :  { %p8891_p7 = pnand %p8890_p6, %p8884_p3 }
 0x10c   :  { %8894 = shalt.err (!%p8891_p7)
}
 0x10d   :  { %s9071_s29 = smov 32   ;;  %s9072_s0 = smov 2  }
 0x10e   :  { %141 = dma.hbm_to_vmem [thread:$0]  %s10368_s10, 64, %s9370_s16, [#allocation17], %s9071_s29, %s9071_s29, %s9072_s0  }
 0x10f   :  { %s9073_s6 = smov [#allocation21]   ;;  %s9074_s3 = smov [#allocation24]  }
 0x110   :  { %s159_s20 = sshll.u32 %s9073_s6, 4  ;;  %s185_s9 = sshll.u32 %s9074_s3, 4  ;;  %s160_s20 = int_to_ptr.vmem [resolvable:$true] %s159_s20  ;;  %s9403_s9 = int_to_ptr.vmem [resolvable:$true] %s185_s9 }
 0x111   :  { %s8895_s8 = scalar_lea.hbm %s10370_s12, 64 }
 0x112   :  { %p8896_p8 = scmp.ne.s32.totalorder %s10370_s12, %s8895_s8  ;;  %p8899_p9 = scmp.lt.u32.totalorder %s8895_s8, %s10370_s12 }
 0x114   :  { %p8901_p10 = pnand %p8899_p9, %p8896_p8 }
 0x116   :  { %8904 = shalt.err (!%p8901_p10)
}
 0x117   :  { %s8905_s10 = scalar_lea.vmem %s160_s20, 64  ;;  %p8910_p12 = scmp.lt.s32.totalorder %s160_s20, %s160_s20 }
 0x118   :  { %p8906_p11 = scmp.ne.s32.totalorder %s160_s20, %s8905_s10  ;;  %p8911_p13 = scmp.lt.s32.totalorder %s8905_s10, %s8905_s10 }
 0x11a   :  { %p8912_p0 = por %p8911_p13, %p8910_p12 }
 0x11c   :  { %p8913_p1 = pnand %p8912_p0, %p8906_p11 }
 0x11e   :  { %8916 = shalt.err (!%p8913_p1)
}
 0x11f   :  { %165 = dma.hbm_to_vmem [thread:$0]  %s10370_s12, 64, %s160_s20, [#allocation20], %s9071_s29, %s9071_s29, %s9072_s0  }
 0x120   :  { %s8917_s26 = scalar_lea.hbm %s10373_s15, 32 }
 0x121   :  { %p8918_p2 = scmp.ne.s32.totalorder %s10373_s15, %s8917_s26  ;;  %p8921_p3 = scmp.lt.u32.totalorder %s8917_s26, %s10373_s15 }
 0x123   :  { %p8923_p4 = pnand %p8921_p3, %p8918_p2 }
 0x125   :  { %8926 = shalt.err (!%p8923_p4)
}
 0x126   :  { %s8927_s5 = scalar_lea.vmem %s9403_s9, 32  ;;  %p8932_p6 = scmp.lt.s32.totalorder %s9403_s9, %s9403_s9 }
 0x127   :  { %p8928_p5 = scmp.ne.s32.totalorder %s9403_s9, %s8927_s5  ;;  %p8933_p7 = scmp.lt.s32.totalorder %s8927_s5, %s8927_s5 }
 0x129   :  { %p8934_p8 = por %p8933_p7, %p8932_p6 }
 0x12b   :  { %p8935_p9 = pnand %p8934_p8, %p8928_p5 }
 0x12d   :  { %8938 = shalt.err (!%p8935_p9)
}
 0x12e   :  { %s9075_s12 = smov 1   ;;  %s10409_s0 = smov 16  }
 0x12f   :  { %191 = dma.hbm_to_vmem [thread:$0]  %s10373_s15, 32, %s9403_s9, [#allocation23], %s10409_s0, %s10409_s0, %s9075_s12  }
 0x130   :  { %s9076_s8 = smov [#allocation27]   ;;  %s9077_s27 = smov [#allocation30]  }
 0x131   :  { %s209_s24 = sshll.u32 %s9076_s8, 4  ;;  %s234_s7 = sshll.u32 %s9077_s27, 4  ;;  %s210_s24 = int_to_ptr.vmem [resolvable:$true] %s209_s24  ;;  %s235_s7 = int_to_ptr.vmem [resolvable:$true] %s234_s7 }
 0x132   :  { %s8939_s16 = scalar_lea.hbm %s10375_s17, 32 }
 0x133   :  { %p8940_p10 = scmp.ne.s32.totalorder %s10375_s17, %s8939_s16  ;;  %p8943_p11 = scmp.lt.u32.totalorder %s8939_s16, %s10375_s17 }
 0x135   :  { %p8945_p12 = pnand %p8943_p11, %p8940_p10 }
 0x137   :  { %8948 = shalt.err (!%p8945_p12)
}
 0x138   :  { %s8949_s15 = scalar_lea.vmem %s210_s24, 32  ;;  %p8954_p0 = scmp.lt.s32.totalorder %s210_s24, %s210_s24 }
 0x139   :  { %p8950_p13 = scmp.ne.s32.totalorder %s210_s24, %s8949_s15  ;;  %p8955_p1 = scmp.lt.s32.totalorder %s8949_s15, %s8949_s15 }
 0x13b   :  { %p8956_p2 = por %p8955_p1, %p8954_p0 }
 0x13d   :  { %p8957_p3 = pnand %p8956_p2, %p8950_p13 }
 0x13f   :  { %8960 = shalt.err (!%p8957_p3)
}
 0x140   :  { %215 = dma.hbm_to_vmem [thread:$0]  %s10375_s17, 32, %s210_s24, [#allocation26], %s10409_s0, %s10409_s0, %s9075_s12  }
 0x141   :  { %s8961_s3 = scalar_lea.hbm %s10377_s19, 16 }
 0x142   :  { %p8962_p4 = scmp.ne.s32.totalorder %s10377_s19, %s8961_s3  ;;  %p8965_p5 = scmp.lt.u32.totalorder %s8961_s3, %s10377_s19 }
 0x144   :  { %p8967_p6 = pnand %p8965_p5, %p8962_p4 }
 0x146   :  { %8970 = shalt.err (!%p8967_p6)
}
 0x147   :  { %s8971_s27 = scalar_lea.vmem %s235_s7, 16  ;;  %s8975_s2 = scalar_lea.vmem %s235_s7, 32 }
 0x148   :  { %p8972_p7 = scmp.ne.s32.totalorder %s235_s7, %s8971_s27  ;;  %p8976_p8 = scmp.lt.s32.totalorder %s235_s7, %s235_s7 }
 0x149   :  { %p8977_p9 = scmp.lt.s32.totalorder %s8975_s2, %s8971_s27 }
 0x14b   :  { %p8978_p10 = por %p8977_p9, %p8976_p8 }
 0x14d   :  { %p8979_p11 = pnand %p8978_p10, %p8972_p7 }
 0x14f   :  { %8982 = shalt.err (!%p8979_p11)
}
 0x150   :  { %237 = dma.hbm_to_vmem [thread:$0]  %s10377_s19, 16, %s235_s7, [#allocation29]  }
 0x151   :  { %s9078_s24 = smov [#allocation33]   ;;  %s8983_s18 = scalar_lea.hbm %s10379_s21, 16 }
 0x152   :  { %s256_s10 = sshll.u32 %s9078_s24, 4  ;;  %p8984_p12 = scmp.ne.s32.totalorder %s10379_s21, %s8983_s18  ;;  %s257_s10 = int_to_ptr.vmem [resolvable:$true] %s256_s10 }
 0x153   :  { %p8987_p13 = scmp.lt.u32.totalorder %s8983_s18, %s10379_s21 }
 0x155   :  { %p8989_p0 = pnand %p8987_p13, %p8984_p12 }
 0x157   :  { %8992 = shalt.err (!%p8989_p0)
}
 0x158   :  { %s8993_s25 = scalar_lea.vmem %s257_s10, 16  ;;  %s8997_s19 = scalar_lea.vmem %s257_s10, 32 }
 0x159   :  { %p8994_p1 = scmp.ne.s32.totalorder %s257_s10, %s8993_s25  ;;  %p8998_p2 = scmp.lt.s32.totalorder %s257_s10, %s257_s10 }
 0x15a   :  { %p8999_p3 = scmp.lt.s32.totalorder %s8997_s19, %s8993_s25 }
 0x15c   :  { %p9000_p4 = por %p8999_p3, %p8998_p2 }
 0x15e   :  { %p9001_p5 = pnand %p9000_p4, %p8994_p1 }
 0x160   :  { %9004 = shalt.err (!%p9001_p5)
}
 0x161   :  { %259 = dma.hbm_to_vmem [thread:$0]  %s10379_s21, 16, %s257_s10, [#allocation32]  }
 0x162   :  { %9027 = dma.done.wait [#allocation6], 16  }
 0x163   :  { %9028 = vsyncadd [#allocation6], 4294967280 }
 0x164   :  { %9029 = dma.done.wait [#allocation8], 16  }
 0x165   :  { %9030 = vsyncadd [#allocation8], 4294967280 }
 0x166   :  { %9031 = dma.done.wait [#allocation4], 64  }
 0x167   :  { %9032 = vsyncadd [#allocation4], 4294967232 }
 0x168   :  { %9033 = dma.done.wait [#allocation11], 528  }
 0x169   :  { %9034 = vsyncadd [#allocation11], 4294966768 }
 0x16a   :  { %9035 = dma.done.wait [#allocation14], 144  }
 0x16b   :  { %9036 = vsyncadd [#allocation14], 4294967152 }
 0x16c   :  { %9037 = dma.done.wait [#allocation17], 2112  }
 0x16d   :  { %9038 = vsyncadd [#allocation17], 4294965184 }
 0x16e   :  { %9039 = dma.done.wait [#allocation20], 2112  }
 0x16f   :  { %9040 = vsyncadd [#allocation20], 4294965184 }
 0x170   :  { %9041 = dma.done.wait [#allocation23], 160  }
 0x171   :  { %9042 = vsyncadd [#allocation23], 4294967136 }
 0x172   :  { %9043 = dma.done.wait [#allocation26], 4128  }
 0x173   :  { %9044 = vsyncadd [#allocation26], 4294963168 }
 0x174   :  { %9045 = dma.done.wait [#allocation29], 528  }
 0x175   :  { %9046 = vsyncadd [#allocation29], 4294966768 }
 0x176   :  { %9047 = dma.done.wait [#allocation32], 528  }
 0x177   :  { %9048 = vsyncadd [#allocation32], 4294966768 }
 0x178   :  { %321 = sfence }
 0x179   :  { %v324_v0 = vld [vmem:[#allocation9] sm:$0xf]  ;;  %vm339_vm0 = vcmask 1043456   ;;  %s10410_s3 = sld [smem:[#allocation50_spill]]  ;;  %vm332_vm1 = vcmask 31744   ;;  %v418_v3 = vld [vmem:[#allocation12] sm:$0xff]  ;;  %v530_v37 = vlaneseq }
 0x17a   :  { %7745 = vmatprep.subr.msk.mxu0 %vm339_vm0, %v324_v0  ;;  %v419_v4 = vld [vmem:[#allocation12 + $0x8] sm:$0xff]  ;;  %v420_v6 = vld [vmem:[#allocation12 + $0x10] sm:$0xff]  ;;  %v421_v7 = vld [vmem:[#allocation12 + $0x18] sm:$0xff]  ;;  %vm429_vm2 = vcmask 261120   ;;  %v9079_v26 = vmov 0.0   ;;  %s10411_s27 = sld [smem:[#allocation47_spill]] }
 0x17b   :  { %7746 = vmatpush3.msk.msra.mxu0 %vm339_vm0, %v324_v0  ;;  %v8244_v5 = vpack.c.bf16 %v419_v4, %v418_v3  ;;  %v8248_v8 = vpack.c.bf16 %v421_v7, %v420_v6  ;;  %v521_v9 = vld [vmem:[#allocation16 + $0x8] sm:$0xff]  ;;  %v523_v10 = vld [vmem:[#allocation16 + $0x18] sm:$0xff]  ;;  %v520_v11 = vld [vmem:[#allocation16] sm:$0xff]  ;;  %v9499_v38 = vshrl.u32 %v530_v37, 7  ;;  %vm9080_vm3 = vmmov 0   ;;  %s9081_s2 = smov 96  }
 0x17c   :  { %v8252_v12 = vpack.c.bf16 %v523_v10, %v521_v9  ;;  %v522_v13 = vld [vmem:[#allocation16 + $0x10] sm:$0xff]  ;;  %v525_v20 = vld [vmem:[#allocation16 + $0x28] sm:$0xff]  ;;  %v527_v21 = vld [vmem:[#allocation16 + $0x38] sm:$0xff]  ;;  %vm626_vm4 = vcmask 64512   ;;  %s9082_s17 = smov 88   ;;  %s9083_s12 = smov 120  }
 0x17d   :  { %8245 = vmatprep.subr.bf16.mxu1 %v8244_v5  ;;  %v8254_v14 = vpack.c.bf16 %v522_v13, %v520_v11  ;;  %v7382_v15 = vld [vmem:[#allocation10] ss:$0 sm:$0xff]  ;;  %v8256_v22 = vpack.c.bf16 %v527_v21, %v525_v20  ;;  %v524_v23 = vld [vmem:[#allocation16 + $0x20] sm:$0xff]  ;;  %v511_v27 = vld [vmem:[#allocation15] sm:$0xff]  ;;  %v9506_v39 = vsub.s32 0, %v9499_v38  ;;  %s9084_s24 = smov 56  }
 0x17e   :  { %8247 = vmatpush3.bf16.msra.mxu1 %v8244_v5  ;;  %8253 = vmatprep.subr.bf16.mxu0 %v8252_v12  ;;  %v526_v24 = vld [vmem:[#allocation16 + $0x30] sm:$0xff]  ;;  %v9508_v40 = vld [vmem:[#allocation18] sm:$0x3]  ;;  %s9085_s10 = smov 80   ;;  %s9086_s16 = smov 112   ;;  %vm1979_vm5 = vcmask 195584  }
 0x17f   :  { %v322_v1 = vld [vmem:[%s10410_s3] sm:$0xff]  ;;  %v323_v2 = vld [vmem:[%s10410_s3 + $0x8] sm:$0xff]  ;;  %8249 = vmatprep.subr.bf16.mxu1 %v8248_v8  ;;  %v8258_v25 = vpack.c.bf16 %v526_v24, %v524_v23  ;;  %v7386_v29 = vld [vmem:[#allocation13] ss:$0 sm:$0xff]  ;;  %v533_v41 = vrot.slane %v9508_v40, %v9506_v39  ;;  %s9087_s1 = smov 48   ;;  %s9088_s18 = smov 72  }
 0x180   :  { %7747 = vmatprep.mubr.msk.f32.mxu0 %vm332_vm1, %v322_v1  ;;  %v513_v28 = vstv %s10411_s27  ;;  %s9089_s30 = smov 104   ;;  %s9090_s26 = smov 40   ;;  %vm1976_vm6 = vcmask 130048   ;;  %vm3368_vm7 = vcmask 523264   ;;  %vm7159_vm12 = vcmask 1040384  }
 0x181   :  { %7748 = vmatmul.mubr.msk.f32.vlgmr.msra.gmra.mrb[0].mxu0 %vm332_vm1, %v323_v2  ;;  %v514_v31 = vmul.f32 %v513_v28, %v511_v27  ;;  %s9091_s15 = smov 24   ;;  %s517_s9 = sld [smem:[#allocation3]] }
 0x182   :  { %8251 = vmatpush3.bf16.msra.mxu1 %v8248_v8  ;;  %8255 = vmatpush1.bf16.msra.mxu0 %v8254_v14  ;;  %s9093_s19 = smov [#allocation34]  }
 0x183   :  { %8257 = vmatprep.subr.bf16.mxu0 %v8256_v22  ;;  %610 = vmatprep.mubr.f32.mxu0 %v9079_v26  ;;  %s7363_s7 = sshll.u32 %s9093_s19, 4  ;;  %s7364_s7 = int_to_ptr.vmem [resolvable:$true] %s7363_s7 }
 0x184   :  { %7761 = vmatprep.subr.mxu1 %v9079_v26  ;;  %s9005_s13 = scalar_lea.vmem %s7364_s7, 32  ;;  %p9010_p7 = scmp.lt.s32.totalorder %s7364_s7, %s7364_s7 }
 0x185   :  { %p9006_p6 = scmp.ne.s32.totalorder %s7364_s7, %s9005_s13  ;;  %p9011_p8 = scmp.lt.s32.totalorder %s9005_s13, %s9005_s13 }
 0x186   :  { %8259 = vmatpush1.bf16.msra.mxu0 %v8258_v25 }
 0x187   :  { %7771 = vmatprep.subr.mxu0 %v9079_v26  ;;  %s3341_s25 = ssub.f32 1.0, %s517_s9  ;;  %p9012_p9 = por %p9011_p8, %p9010_p7 }
 0x189   :  { %p9013_p10 = pnand %p9012_p9, %p9006_p6 }
 0x254   :  { %v7749_v16 = vpop.f32.mrb[0].mxu0 }
 0x255   :  { %v409_v17 = vpop.f32.mrb[1].mxu0  ;;  %v415_v19 = vadd.f32 %v7749_v16, %v7382_v15 }
 0x256   :  { %v410_v18 = vadd.f32 %v7382_v15, %v409_v17 }
 0x258   :  { %7758 = vmatprep.mubr.msk.f32.mxu1 %vm429_vm2, %v410_v18 }
 0x259   :  { %7759 = vmatmul.mubr.msk.f32.vlgmr.msra.gmra.mrb[0].mxu1 %vm429_vm2, %v415_v19 }
 0x25a   :  { %7763 = vmatprep.mubr.msk.f32.mxu1 %vm9080_vm3, %v9079_v26 }
 0x32c   :  { %v7760_v30 = vpop.f32.mrb[0].mxu1 }
 0x32d   :  { %v502_v32 = vpop.f32.mrb[1].mxu1  ;;  %v508_v34 = vadd.f32 %v7760_v30, %v7386_v29 }
 0x32e   :  { %v503_v33 = vadd.f32 %v7386_v29, %v502_v32 }
 0x32f   :  { %v9495_v36 = vadd.f32 %v514_v31, %v508_v34 }
 0x330   :  { %v9490_v35 = vadd.f32 %v514_v31, %v503_v33 }
 0x332   :  { %7389 = vmatmul.mubr.msk.f32.vlgmr.msra.gmra.mrb[2].mxu0 %vm429_vm2, %v9490_v35 }
 0x333   :  { %616 = vmatprep.mubr.f32.mxu0 %v9079_v26 }
 0x336   :  { %7390 = vmatmul.mubr.msk.f32.gmra.mrb[4].mxu0 %vm429_vm2, %v9495_v36 }
 0x337   :  { %7773 = vmatprep.mubr.msk.f32.mxu0 %vm9080_vm3, %v9079_v26 }
 0x405   :  { %v612_v42 = vpop.f32.mrb[2].mxu0 }
 0x406   :  { %v9512_v43 = vadd.f32 %v612_v42, %v533_v41  ;;  %v9514_v44 = vpop.f32.mrb[3].mxu0 }
 0x408   :  { %624 = vrot.lane.b32.xlu0 %v9512_v43, %s9081_s2 }
 0x409   :  { %v618_v45 = vpop.f32.mrb[4].mxu0 }
 0x40a   :  { %v9518_v46 = vadd.f32 %v618_v45, %v533_v41  ;;  %v9520_v47 = vpop.f32.mrb[5].mxu0 }
 0x40c   :  { %702 = vrot.lane.b32.xlu0 %v9518_v46, %s9081_s2 }
 0x47a   :  { %v625_v48 = vpop.permute.xlu0 %624 }
 0x47b   :  { %7762 = vmatpush3.xpose.msk.msra.mxu1 %vm626_vm4, %v625_v48 }
 0x47c   :  { %7766 = vmatprep.subr.mxu1 %v9079_v26 }
 0x47e   :  { %7764 = vmatmul.mubr.msk.f32.vlgmr.msra.gmra.mrb[2].mxu1 %vm626_vm4, %v9512_v43  ;;  %v703_v49 = vpop.permute.xlu0 %702 }
 0x47f   :  { %7767 = vmatpush3.xpose.msk.msra.mxu1 %vm626_vm4, %v703_v49  ;;  %7768 = vmatprep.mubr.msk.f32.mxu1 %vm9080_vm3, %v9079_v26 }
 0x480   :  { %7776 = vmatprep.subr.mxu1 %v9079_v26 }
 0x482   :  { %7769 = vmatmul.mubr.msk.f32.vlgmr.msra.gmra.mrb[4].mxu1 %vm626_vm4, %v9518_v46 }
 0x483   :  { %7778 = vmatprep.mubr.msk.f32.mxu1 %vm9080_vm3, %v9079_v26 }
 0x551   :  { %v697_v50 = vpop.f32.mrb[2].mxu1 }
 0x552   :  { %v778_v51 = vmul.f32 0.35355338, %v697_v50  ;;  %v7765_v52 = vpop.f32.mrb[3].mxu1 }
 0x554   :  { %v780_v53 = vsel %vm626_vm4, %v778_v51, -inf }
 0x555   :  { %781 = vmax.xlane.f32.xlu1 %v780_v53  ;;  %v774_v54 = vpop.f32.mrb[4].mxu1 }
 0x556   :  { %v779_v55 = vmul.f32 0.35355338, %v774_v54  ;;  %v7770_v56 = vpop.f32.mrb[5].mxu1 }
 0x558   :  { %v783_v57 = vsel %vm626_vm4, %v779_v55, -inf }
 0x559   :  { %784 = vmax.xlane.f32.xlu1 %v783_v57 }
 0x56a   :  { %802 = vrot.lane.b32.xlu1 %v9512_v43, %s9060_s11 }
 0x56e   :  { %878 = vrot.lane.b32.xlu1 %v9518_v46, %s9060_s11 }
 0x572   :  { %956 = vrot.lane.b32.xlu1 %v9512_v43, %s9082_s17 }
 0x576   :  { %1034 = vrot.lane.b32.xlu1 %v9518_v46, %s9082_s17 }
 0x5e2   :  { %v782_v58 = vpop.xlane.xlu1 %781 }
 0x5e3   :  { %v786_v59 = vsub.f32 %v778_v51, %v782_v58 }
 0x5e5   :  { %v788_v60 = vmul.f32 1.442695, %v786_v59 }
 0x5e6   :  { %v785_v61 = vpop.xlane.xlu1 %784 }
 0x5e7   :  { %8443 = vpow2.f32 %v788_v60  ;;  %v787_v62 = vsub.f32 %v779_v55, %v785_v61 }
 0x5e9   :  { %v790_v63 = vmul.f32 1.442695, %v787_v62 }
 0x5ea   :  { %v803_v0 = vpop.permute.xlu1 %802 }
 0x5eb   :  { %8445 = vpow2.f32 %v790_v63  ;;  %7772 = vmatpush3.msra.mxu0 %v803_v0 }
 0x5ec   :  { %7781 = vmatprep.subr.mxu0 %v9079_v26 }
 0x5ee   :  { %v879_v1 = vpop.permute.xlu1 %878 }
 0x5ef   :  { %7777 = vmatpush3.msra.mxu1 %v879_v1 }
 0x5f0   :  { %7786 = vmatprep.subr.mxu1 %v9079_v26 }
 0x5f1   :  { %v8444_v2 = vpop.eup %8443 }
 0x5f2   :  { %v792_v3 = vsel %vm626_vm4, %v8444_v2, 0.0  ;;  %v957_v6 = vpop.permute.xlu1 %956 }
 0x5f3   :  { %793 = vadd.xlane.f32.xlu0 %v792_v3 }
 0x5f5   :  { %v8446_v4 = vpop.eup %8445 }
 0x5f6   :  { %v795_v5 = vsel %vm626_vm4, %v8446_v4, 0.0  ;;  %v1035_v7 = vpop.permute.xlu1 %1034 }
 0x5f7   :  { %796 = vadd.xlane.f32.xlu1 %v795_v5 }
 0x608   :  { %1032 = vrot.lane.b32.xlu1 %v9518_v46, %s9083_s12 }
 0x609   :  { %954 = vrot.lane.b32.xlu0 %v9512_v43, %s9083_s12 }
 0x680   :  { %v794_v8 = vpop.xlane.xlu0 %793 }
 0x681   :  { %8447 = vrcp.f32 %v794_v8 }
 0x684   :  { %v797_v9 = vpop.xlane.xlu1 %796  ;;  %v955_v14 = vpop.permute.xlu0 %954 }
 0x685   :  { %8449 = vrcp.f32 %v797_v9 }
 0x688   :  { %v1033_v15 = vpop.permute.xlu1 %1032 }
 0x68b   :  { %v8448_v10 = vpop.eup %8447 }
 0x68c   :  { %v799_v11 = vmul.f32 %v8448_v10, %v8444_v2 }
 0x68e   :  { %7774 = vmatmul.mubr.msk.f32.vlgmr.msra.gmra.mrb[6].mxu0 %vm626_vm4, %v799_v11 }
 0x68f   :  { %v8450_v12 = vpop.eup %8449  ;;  %7782 = vmatpush3.xpose.msk.msra.mxu0 %vm626_vm4, %v957_v6  ;;  %7783 = vmatprep.mubr.msk.f32.mxu0 %vm9080_vm3, %v9079_v26 }
 0x690   :  { %v801_v13 = vmul.f32 %v8450_v12, %v8446_v4  ;;  %7791 = vmatprep.subr.mxu0 %v9079_v26 }
 0x692   :  { %7779 = vmatmul.mubr.msk.f32.vlgmr.msra.gmra.mrb[6].mxu1 %vm626_vm4, %v801_v13  ;;  %7784 = vmatmul.mubr.msk.f32.vlgmr.msra.gmra.mrb[8].mxu0 %vm626_vm4, %v955_v14 }
 0x693   :  { %7787 = vmatpush3.xpose.msk.msra.mxu1 %vm626_vm4, %v1035_v7  ;;  %7788 = vmatprep.mubr.msk.f32.mxu1 %vm9080_vm3, %v9079_v26 }
 0x694   :  { %7796 = vmatprep.subr.mxu1 %v9079_v26  ;;  %7793 = vmatprep.mubr.msk.f32.mxu0 %vm9080_vm3, %v9079_v26 }
 0x696   :  { %7789 = vmatmul.mubr.msk.f32.vlgmr.msra.gmra.mrb[8].mxu1 %vm626_vm4, %v1033_v15 }
 0x697   :  { %7798 = vmatprep.mubr.msk.f32.mxu1 %vm9080_vm3, %v9079_v26 }
 0x761   :  { %v9570_v16 = vpop.f32.mrb[6].mxu0 }
 0x762   :  { %v7775_v17 = vpop.f32.mrb[7].mxu0 }
 0x765   :  { %v9572_v18 = vpop.f32.mrb[6].mxu1  ;;  %v1028_v19 = vpop.f32.mrb[8].mxu0 }
 0x766   :  { %v1110_v20 = vmul.f32 0.35355338, %v1028_v19  ;;  %v7780_v21 = vpop.f32.mrb[7].mxu1  ;;  %v7785_v22 = vpop.f32.mrb[9].mxu0 }
 0x768   :  { %v1112_v23 = vsel %vm626_vm4, %v1110_v20, -inf }
 0x769   :  { %v1106_v24 = vpop.f32.mrb[8].mxu1  ;;  %1113 = vmax.xlane.f32.xlu1 %v1112_v23 }
 0x76a   :  { %v1111_v25 = vmul.f32 0.35355338, %v1106_v24  ;;  %v7790_v27 = vpop.f32.mrb[9].mxu1 }
 0x76c   :  { %v1115_v28 = vsel %vm626_vm4, %v1111_v25, -inf }
 0x76d   :  { %1116 = vmax.xlane.f32.xlu0 %v1115_v28 }
 0x77a   :  { %1134 = vrot.lane.b32.xlu1 %v9512_v43, %s9084_s24 }
 0x77e   :  { %1288 = vrot.lane.b32.xlu1 %v9512_v43, %s9085_s10 }
 0x782   :  { %1366 = vrot.lane.b32.xlu1 %v9518_v46, %s9085_s10 }
 0x783   :  { %1210 = vrot.lane.b32.xlu0 %v9518_v46, %s9084_s24 }
 0x787   :  { %1286 = vrot.lane.b32.xlu0 %v9512_v43, %s9086_s16 }
 0x7f6   :  { %v1114_v29 = vpop.xlane.xlu1 %1113 }
 0x7f7   :  { %v1118_v30 = vsub.f32 %v1110_v20, %v1114_v29 }
 0x7f9   :  { %v1120_v31 = vmul.f32 1.442695, %v1118_v30 }
 0x7fa   :  { %v1135_v32 = vpop.permute.xlu1 %1134  ;;  %v1117_v33 = vpop.xlane.xlu0 %1116 }
 0x7fb   :  { %8451 = vpow2.f32 %v1120_v31  ;;  %v1119_v34 = vsub.f32 %v1111_v25, %v1117_v33  ;;  %7792 = vmatpush3.msra.mxu0 %v1135_v32 }
 0x7fc   :  { %7801 = vmatprep.subr.mxu0 %v9079_v26 }
 0x7fd   :  { %v1122_v37 = vmul.f32 1.442695, %v1119_v34 }
 0x7fe   :  { %v1211_v41 = vpop.permute.xlu0 %1210  ;;  %v1289_v50 = vpop.permute.xlu1 %1288 }
 0x7ff   :  { %8453 = vpow2.f32 %v1122_v37  ;;  %7797 = vmatpush3.msra.mxu1 %v1211_v41 }
 0x800   :  { %7806 = vmatprep.subr.mxu1 %v9079_v26 }
 0x802   :  { %v1367_v51 = vpop.permute.xlu1 %1366  ;;  %v1287_v58 = vpop.permute.xlu0 %1286 }
 0x805   :  { %v8452_v42 = vpop.eup %8451 }
 0x806   :  { %v1124_v45 = vsel %vm626_vm4, %v8452_v42, 0.0 }
 0x807   :  { %1125 = vadd.xlane.f32.xlu1 %v1124_v45 }
 0x809   :  { %v8454_v48 = vpop.eup %8453 }
 0x80a   :  { %v1127_v49 = vsel %vm626_vm4, %v8454_v48, 0.0 }
 0x80b   :  { %1128 = vadd.xlane.f32.xlu1 %v1127_v49 }
 0x81c   :  { %1364 = vrot.lane.b32.xlu1 %v9518_v46, %s9086_s16 }
 0x894   :  { %v1126_v52 = vpop.xlane.xlu1 %1125 }
 0x895   :  { %8455 = vrcp.f32 %v1126_v52 }
 0x898   :  { %v1129_v53 = vpop.xlane.xlu1 %1128 }
 0x899   :  { %8457 = vrcp.f32 %v1129_v53 }
 0x89c   :  { %v1365_v59 = vpop.permute.xlu1 %1364 }
 0x89f   :  { %v8456_v54 = vpop.eup %8455 }
 0x8a0   :  { %v1131_v55 = vmul.f32 %v8456_v54, %v8452_v42 }
 0x8a2   :  { %7794 = vmatmul.mubr.msk.f32.vlgmr.msra.gmra.mrb[10].mxu0 %vm626_vm4, %v1131_v55 }
 0x8a3   :  { %v8458_v56 = vpop.eup %8457  ;;  %7802 = vmatpush3.xpose.msk.msra.mxu0 %vm626_vm4, %v1289_v50  ;;  %7803 = vmatprep.mubr.msk.f32.mxu0 %vm9080_vm3, %v9079_v26 }
 0x8a4   :  { %v1133_v57 = vmul.f32 %v8458_v56, %v8454_v48  ;;  %7811 = vmatprep.subr.mxu0 %v9079_v26 }
 0x8a6   :  { %7799 = vmatmul.mubr.msk.f32.vlgmr.msra.gmra.mrb[10].mxu1 %vm626_vm4, %v1133_v57  ;;  %7804 = vmatmul.mubr.msk.f32.vlgmr.msra.gmra.mrb[12].mxu0 %vm626_vm4, %v1287_v58 }
 0x8a7   :  { %7807 = vmatpush3.xpose.msk.msra.mxu1 %vm626_vm4, %v1367_v51  ;;  %7808 = vmatprep.mubr.msk.f32.mxu1 %vm9080_vm3, %v9079_v26 }
 0x8a8   :  { %7816 = vmatprep.subr.mxu1 %v9079_v26  ;;  %7813 = vmatprep.mubr.msk.f32.mxu0 %vm9080_vm3, %v9079_v26 }
 0x8aa   :  { %7809 = vmatmul.mubr.msk.f32.vlgmr.msra.gmra.mrb[12].mxu1 %vm626_vm4, %v1365_v59 }
 0x8ab   :  { %7818 = vmatprep.mubr.msk.f32.mxu1 %vm9080_vm3, %v9079_v26 }
 0x975   :  { %v9608_v60 = vpop.f32.mrb[10].mxu0 }
 0x976   :  { %v7795_v61 = vpop.f32.mrb[11].mxu0 }
 0x979   :  { %v9610_v62 = vpop.f32.mrb[10].mxu1  ;;  %v1360_v63 = vpop.f32.mrb[12].mxu0 }
 0x97a   :  { %v1442_v0 = vmul.f32 0.35355338, %v1360_v63  ;;  %v7800_v1 = vpop.f32.mrb[11].mxu1  ;;  %v7805_v2 = vpop.f32.mrb[13].mxu0 }
 0x97c   :  { %v1444_v3 = vsel %vm626_vm4, %v1442_v0, -inf }
 0x97d   :  { %v1438_v4 = vpop.f32.mrb[12].mxu1  ;;  %1445 = vmax.xlane.f32.xlu0 %v1444_v3 }
 0x97e   :  { %v1443_v5 = vmul.f32 0.35355338, %v1438_v4  ;;  %v7810_v6 = vpop.f32.mrb[13].mxu1 }
 0x980   :  { %v1447_v7 = vsel %vm626_vm4, %v1443_v5, -inf }
 0x981   :  { %1448 = vmax.xlane.f32.xlu1 %v1447_v7 }
 0x992   :  { %1466 = vrot.lane.b32.xlu1 %v9512_v43, %s9087_s1 }
 0x993   :  { %1542 = vrot.lane.b32.xlu0 %v9518_v46, %s9087_s1 }
 0x996   :  { %1620 = vrot.lane.b32.xlu1 %v9512_v43, %s9088_s18 }
 0x99a   :  { %1698 = vrot.lane.b32.xlu1 %v9518_v46, %s9088_s18 }
 0x99e   :  { %1696 = vrot.lane.b32.xlu1 %v9518_v46, %s9089_s30 }
 0xa0a   :  { %v1446_v8 = vpop.xlane.xlu0 %1445 }
 0xa0b   :  { %v1450_v9 = vsub.f32 %v1442_v0, %v1446_v8 }
 0xa0d   :  { %v1452_v10 = vmul.f32 1.442695, %v1450_v9 }
 0xa0e   :  { %v1449_v11 = vpop.xlane.xlu1 %1448  ;;  %v1543_v12 = vpop.permute.xlu0 %1542 }
 0xa0f   :  { %8459 = vpow2.f32 %v1452_v10  ;;  %v1451_v13 = vsub.f32 %v1443_v5, %v1449_v11  ;;  %7817 = vmatpush3.msra.mxu1 %v1543_v12  ;;  %v9664_v5 = vsub.s32 1, %v9499_v38 }
 0xa10   :  { %7826 = vmatprep.subr.mxu1 %v9079_v26 }
 0xa11   :  { %v1454_v14 = vmul.f32 1.442695, %v1451_v13  ;;  %v537_v7 = vrot.slane %v9508_v40, %v9664_v5 }
 0xa12   :  { %v1467_v15 = vpop.permute.xlu1 %1466 }
 0xa13   :  { %8461 = vpow2.f32 %v1454_v14  ;;  %7812 = vmatpush3.msra.mxu0 %v1467_v15  ;;  %v9670_v10 = vadd.f32 %v9514_v44, %v537_v7  ;;  %v9679_v40 = vadd.f32 %v9520_v47, %v537_v7 }
 0xa14   :  { %7821 = vmatprep.subr.mxu0 %v9079_v26 }
 0xa16   :  { %v1621_v24 = vpop.permute.xlu1 %1620 }
 0xa19   :  { %v8460_v17 = vpop.eup %8459 }
 0xa1a   :  { %v1456_v19 = vsel %vm626_vm4, %v8460_v17, 0.0  ;;  %v1699_v29 = vpop.permute.xlu1 %1698 }
 0xa1b   :  { %1457 = vadd.xlane.f32.xlu0 %v1456_v19 }
 0xa1d   :  { %v8462_v20 = vpop.eup %8461 }
 0xa1e   :  { %v1459_v21 = vsel %vm626_vm4, %v8462_v20, 0.0  ;;  %v1697_v32 = vpop.permute.xlu1 %1696 }
 0xa1f   :  { %1460 = vadd.xlane.f32.xlu0 %v1459_v21 }
 0xa35   :  { %1618 = vrot.lane.b32.xlu0 %v9512_v43, %s9089_s30 }
 0xaa8   :  { %v1458_v22 = vpop.xlane.xlu0 %1457 }
 0xaa9   :  { %8463 = vrcp.f32 %v1458_v22 }
 0xaac   :  { %v1461_v23 = vpop.xlane.xlu0 %1460 }
 0xaad   :  { %8465 = vrcp.f32 %v1461_v23 }
 0xab0   :  { %v1619_v31 = vpop.permute.xlu0 %1618 }
 0xab3   :  { %v8464_v25 = vpop.eup %8463 }
 0xab4   :  { %v1463_v27 = vmul.f32 %v8464_v25, %v8460_v17 }
 0xab6   :  { %7814 = vmatmul.mubr.msk.f32.vlgmr.msra.gmra.mrb[14].mxu0 %vm626_vm4, %v1463_v27 }
 0xab7   :  { %v8466_v28 = vpop.eup %8465  ;;  %7822 = vmatpush3.xpose.msk.msra.mxu0 %vm626_vm4, %v1621_v24  ;;  %7823 = vmatprep.mubr.msk.f32.mxu0 %vm9080_vm3, %v9079_v26 }
 0xab8   :  { %v1465_v30 = vmul.f32 %v8466_v28, %v8462_v20  ;;  %7831 = vmatprep.subr.mxu0 %v9079_v26 }
 0xaba   :  { %7819 = vmatmul.mubr.msk.f32.vlgmr.msra.gmra.mrb[14].mxu1 %vm626_vm4, %v1465_v30  ;;  %7824 = vmatmul.mubr.msk.f32.vlgmr.msra.gmra.mrb[16].mxu0 %vm626_vm4, %v1619_v31 }
 0xabb   :  { %7827 = vmatpush3.xpose.msk.msra.mxu1 %vm626_vm4, %v1699_v29  ;;  %7828 = vmatprep.mubr.msk.f32.mxu1 %vm9080_vm3, %v9079_v26 }
 0xabc   :  { %7836 = vmatprep.subr.mxu1 %v9079_v26  ;;  %7833 = vmatprep.mubr.msk.f32.mxu0 %vm9080_vm3, %v9079_v26 }
 0xabe   :  { %7829 = vmatmul.mubr.msk.f32.vlgmr.msra.gmra.mrb[16].mxu1 %vm626_vm4, %v1697_v32 }
 0xabf   :  { %7838 = vmatprep.mubr.msk.f32.mxu1 %vm9080_vm3, %v9079_v26 }
 0xb89   :  { %v9646_v33 = vpop.f32.mrb[14].mxu0 }
 0xb8a   :  { %v7815_v34 = vpop.f32.mrb[15].mxu0 }
 0xb8d   :  { %v9648_v37 = vpop.f32.mrb[14].mxu1  ;;  %v1692_v41 = vpop.f32.mrb[16].mxu0 }
 0xb8e   :  { %v1774_v42 = vmul.f32 0.35355338, %v1692_v41  ;;  %v7820_v45 = vpop.f32.mrb[15].mxu1  ;;  %v7825_v48 = vpop.f32.mrb[17].mxu0 }
 0xb90   :  { %v1776_v49 = vsel %vm626_vm4, %v1774_v42, -inf }
 0xb91   :  { %v1770_v50 = vpop.f32.mrb[16].mxu1  ;;  %1777 = vmax.xlane.f32.xlu0 %v1776_v49 }
 0xb92   :  { %v1775_v51 = vmul.f32 0.35355338, %v1770_v50  ;;  %v7830_v52 = vpop.f32.mrb[17].mxu1 }
 0xb94   :  { %v1779_v53 = vsel %vm626_vm4, %v1775_v51, -inf }
 0xb95   :  { %1780 = vmax.xlane.f32.xlu1 %v1779_v53 }
 0xba6   :  { %1798 = vrot.lane.b32.xlu1 %v9512_v43, %s9090_s26 }
 0xbaa   :  { %1982 = vrot.lane.b32.xlu1 %v9512_v43, %s9071_s29 }
 0xbae   :  { %2059 = vrot.lane.b32.xlu1 %v9518_v46, %s9071_s29 }
 0xc1e   :  { %v1778_v54 = vpop.xlane.xlu0 %1777 }
 0xc1f   :  { %v1782_v55 = vsub.f32 %v1774_v42, %v1778_v54 }
 0xc21   :  { %v1784_v56 = vmul.f32 1.442695, %v1782_v55 }
 0xc22   :  { %v1781_v57 = vpop.xlane.xlu1 %1780 }
 0xc23   :  { %8467 = vpow2.f32 %v1784_v56  ;;  %v1783_v58 = vsub.f32 %v1775_v51, %v1781_v57 }
 0xc25   :  { %v1786_v59 = vmul.f32 1.442695, %v1783_v58 }
 0xc26   :  { %v1799_v61 = vpop.permute.xlu1 %1798 }
 0xc27   :  { %8469 = vpow2.f32 %v1786_v59  ;;  %7832 = vmatpush3.msra.mxu0 %v1799_v61 }
 0xc28   :  { %7841 = vmatprep.subr.mxu0 %v9079_v26 }
 0xc2a   :  { %v1983_v12 = vpop.permute.xlu1 %1982 }
 0xc2d   :  { %v8468_v63 = vpop.eup %8467 }
 0xc2e   :  { %v1788_v0 = vsel %vm626_vm4, %v8468_v63, 0.0  ;;  %v2060_v44 = vpop.permute.xlu1 %2059 }
 0xc2f   :  { %1789 = vadd.xlane.f32.xlu0 %v1788_v0 }
 0xc31   :  { %v8470_v1 = vpop.eup %8469 }
 0xc32   :  { %v1791_v2 = vsel %vm626_vm4, %v8470_v1, 0.0 }
 0xc33   :  { %1792 = vadd.xlane.f32.xlu0 %v1791_v2 }
 0xc49   :  { %1874 = vrot.lane.b32.xlu0 %v9518_v46, %s9090_s26 }
 0xcbc   :  { %v1790_v3 = vpop.xlane.xlu0 %1789 }
 0xcbd   :  { %8471 = vrcp.f32 %v1790_v3 }
 0xcc0   :  { %v1793_v4 = vpop.xlane.xlu0 %1792 }
 0xcc1   :  { %8473 = vrcp.f32 %v1793_v4 }
 0xcc4   :  { %v1875_v6 = vpop.permute.xlu0 %1874 }
 0xcc5   :  { %7837 = vmatpush3.msra.mxu1 %v1875_v6 }
 0xcc6   :  { %7846 = vmatprep.subr.mxu1 %v9079_v26 }
 0xcc7   :  { %v8472_v8 = vpop.eup %8471 }
 0xcc8   :  { %v1795_v9 = vmul.f32 %v8472_v8, %v8468_v63 }
 0xcca   :  { %7834 = vmatmul.mubr.msk.f32.vlgmr.msra.gmra.mrb[18].mxu0 %vm626_vm4, %v1795_v9 }
 0xccb   :  { %v8474_v11 = vpop.eup %8473  ;;  %7842 = vmatpush3.xpose.msk.msra.mxu0 %vm626_vm4, %v9670_v10  ;;  %7843 = vmatprep.mubr.msk.f32.mxu0 %vm9080_vm3, %v9079_v26 }
 0xccc   :  { %v1797_v13 = vmul.f32 %v8474_v11, %v8470_v1  ;;  %7851 = vmatprep.subr.mxu0 %v9079_v26 }
 0xcce   :  { %7839 = vmatmul.mubr.msk.f32.vlgmr.msra.gmra.mrb[18].mxu1 %vm626_vm4, %v1797_v13  ;;  %7844 = vmatmul.mubr.msk.f32.vlgmr.msra.gmra.mrb[20].mxu0 %vm626_vm4, %v1983_v12 }
 0xccf   :  { %7847 = vmatpush3.xpose.msk.msra.mxu1 %vm626_vm4, %v9679_v40  ;;  %7848 = vmatprep.mubr.msk.f32.mxu1 %vm9080_vm3, %v9079_v26 }
 0xcd0   :  { %7856 = vmatprep.subr.mxu1 %v9079_v26  ;;  %7853 = vmatprep.mubr.msk.f32.mxu0 %vm9080_vm3, %v9079_v26 }
 0xcd2   :  { %7849 = vmatmul.mubr.msk.f32.vlgmr.msra.gmra.mrb[20].mxu1 %vm626_vm4, %v2060_v44 }
 0xcd3   :  { %7858 = vmatprep.mubr.msk.f32.mxu1 %vm9080_vm3, %v9079_v26 }
 0xd9d   :  { %v9693_v47 = vpop.f32.mrb[18].mxu0 }
 0xd9e   :  { %v7835_v14 = vpop.f32.mrb[19].mxu0 }
 0xda1   :  { %v9695_v15 = vpop.f32.mrb[18].mxu1  ;;  %v2055_v17 = vpop.f32.mrb[20].mxu0 }
 0xda2   :  { %v2136_v19 = vmul.f32 0.35355338, %v2055_v17  ;;  %v7840_v20 = vpop.f32.mrb[19].mxu1  ;;  %v7845_v21 = vpop.f32.mrb[21].mxu0 }
 0xda4   :  { %v2138_v22 = vsel %vm626_vm4, %v2136_v19, -inf }
 0xda5   :  { %v2132_v23 = vpop.f32.mrb[20].mxu1  ;;  %2139 = vmax.xlane.f32.xlu0 %v2138_v22 }
 0xda6   :  { %v2137_v24 = vmul.f32 0.35355338, %v2132_v23  ;;  %v7850_v25 = vpop.f32.mrb[21].mxu1 }
 0xda8   :  { %v2141_v27 = vsel %vm626_vm4, %v2137_v24, -inf }
 0xda9   :  { %2142 = vmax.xlane.f32.xlu1 %v2141_v27 }
 0xdba   :  { %2160 = vrot.lane.b32.xlu1 %v9670_v10, %s9081_s2 }
 0xdbb   :  { %2236 = vrot.lane.b32.xlu0 %v9679_v40, %s9081_s2 }
 0xdbe   :  { %2314 = vrot.lane.b32.xlu1 %v9670_v10, %s9083_s12 }
 0xdc2   :  { %2392 = vrot.lane.b32.xlu1 %v9679_v40, %s9083_s12 }
 0xdc6   :  { %2390 = vrot.lane.b32.xlu1 %v9518_v46, %s9091_s15 }
 0xe32   :  { %v2140_v28 = vpop.xlane.xlu0 %2139 }
 0xe33   :  { %v2144_v29 = vsub.f32 %v2136_v19, %v2140_v28 }
 0xe35   :  { %v2146_v30 = vmul.f32 1.442695, %v2144_v29 }
 0xe36   :  { %v2143_v31 = vpop.xlane.xlu1 %2142  ;;  %v2237_v32 = vpop.permute.xlu0 %2236 }
 0xe37   :  { %8475 = vpow2.f32 %v2146_v30  ;;  %v2145_v34 = vsub.f32 %v2137_v24, %v2143_v31  ;;  %7857 = vmatpush3.msra.mxu1 %v2237_v32 }
 0xe38   :  { %7866 = vmatprep.subr.mxu1 %v9079_v26 }
 0xe39   :  { %v2148_v41 = vmul.f32 1.442695, %v2145_v34 }
 0xe3a   :  { %v2161_v42 = vpop.permute.xlu1 %2160 }
 0xe3b   :  { %8477 = vpow2.f32 %v2148_v41  ;;  %7852 = vmatpush3.msra.mxu0 %v2161_v42 }
 0xe3c   :  { %7861 = vmatprep.subr.mxu0 %v9079_v26 }
 0xe3e   :  { %v2315_v53 = vpop.permute.xlu1 %2314 }
 0xe41   :  { %v8476_v45 = vpop.eup %8475 }
 0xe42   :  { %v2150_v48 = vsel %vm626_vm4, %v8476_v45, 0.0  ;;  %v2393_v57 = vpop.permute.xlu1 %2392 }
 0xe43   :  { %2151 = vadd.xlane.f32.xlu0 %v2150_v48 }
 0xe45   :  { %v8478_v49 = vpop.eup %8477 }
 0xe46   :  { %v2153_v50 = vsel %vm626_vm4, %v8478_v49, 0.0  ;;  %v2391_v61 = vpop.permute.xlu1 %2390 }
 0xe47   :  { %2154 = vadd.xlane.f32.xlu0 %v2153_v50 }
 0xe5d   :  { %2312 = vrot.lane.b32.xlu0 %v9512_v43, %s9091_s15 }
 0xed0   :  { %v2152_v51 = vpop.xlane.xlu0 %2151 }
 0xed1   :  { %8479 = vrcp.f32 %v2152_v51 }
 0xed4   :  { %v2155_v52 = vpop.xlane.xlu0 %2154 }
 0xed5   :  { %8481 = vrcp.f32 %v2155_v52 }
 0xed8   :  { %v2313_v59 = vpop.permute.xlu0 %2312 }
 0xedb   :  { %v8480_v54 = vpop.eup %8479 }
 0xedc   :  { %v2157_v55 = vmul.f32 %v8480_v54, %v8476_v45 }
 0xede   :  { %7854 = vmatmul.mubr.msk.f32.vlgmr.msra.gmra.mrb[22].mxu0 %vm626_vm4, %v2157_v55 }
 0xedf   :  { %v8482_v56 = vpop.eup %8481  ;;  %7862 = vmatpush3.xpose.msk.msra.mxu0 %vm626_vm4, %v2315_v53  ;;  %7863 = vmatprep.mubr.msk.f32.mxu0 %vm9080_vm3, %v9079_v26 }
 0xee0   :  { %v2159_v58 = vmul.f32 %v8482_v56, %v8478_v49  ;;  %7871 = vmatprep.subr.mxu0 %v9079_v26 }
 0xee2   :  { %7859 = vmatmul.mubr.msk.f32.vlgmr.msra.gmra.mrb[22].mxu1 %vm626_vm4, %v2159_v58  ;;  %7864 = vmatmul.mubr.msk.f32.vlgmr.msra.gmra.mrb[24].mxu0 %vm626_vm4, %v2313_v59 }
 0xee3   :  { %7867 = vmatpush3.xpose.msk.msra.mxu1 %vm626_vm4, %v2393_v57  ;;  %7868 = vmatprep.mubr.msk.f32.mxu1 %vm9080_vm3, %v9079_v26 }
 0xee4   :  { %7876 = vmatprep.subr.mxu1 %v9079_v26  ;;  %7873 = vmatprep.mubr.msk.f32.mxu0 %vm9080_vm3, %v9079_v26 }
 0xee6   :  { %7869 = vmatmul.mubr.msk.f32.vlgmr.msra.gmra.mrb[24].mxu1 %vm626_vm4, %v2391_v61 }
 0xee7   :  { %7878 = vmatprep.mubr.msk.f32.mxu1 %vm9080_vm3, %v9079_v26 }
 0xfb1   :  { %v9731_v63 = vpop.f32.mrb[22].mxu0 }
 0xfb2   :  { %v7855_v0 = vpop.f32.mrb[23].mxu0 }
 0xfb5   :  { %v9733_v1 = vpop.f32.mrb[22].mxu1  ;;  %v2386_v2 = vpop.f32.mrb[24].mxu0 }
 0xfb6   :  { %v2468_v3 = vmul.f32 0.35355338, %v2386_v2  ;;  %v7860_v4 = vpop.f32.mrb[23].mxu1  ;;  %v7865_v6 = vpop.f32.mrb[25].mxu0 }
 0xfb8   :  { %v2470_v7 = vsel %vm626_vm4, %v2468_v3, -inf }
 0xfb9   :  { %v2464_v8 = vpop.f32.mrb[24].mxu1  ;;  %2471 = vmax.xlane.f32.xlu0 %v2470_v7 }
 0xfba   :  { %v2469_v9 = vmul.f32 0.35355338, %v2464_v8  ;;  %v7870_v11 = vpop.f32.mrb[25].mxu1 }
 0xfbc   :  { %v2473_v12 = vsel %vm626_vm4, %v2469_v9, -inf }
 0xfbd   :  { %2474 = vmax.xlane.f32.xlu1 %v2473_v12 }
 0xfce   :  { %2492 = vrot.lane.b32.xlu1 %v9670_v10, %s9082_s17 }
 0xfcf   :  { %2568 = vrot.lane.b32.xlu0 %v9679_v40, %s9082_s17 }
 0xfd2   :  { %2646 = vrot.lane.b32.xlu1 %v9670_v10, %s9086_s16 }
 0xfd6   :  { %2724 = vrot.lane.b32.xlu1 %v9679_v40, %s9086_s16 }
 0xfda   :  { %2722 = vrot.lane.b32.xlu1 %v9518_v46, %s10409_s0 }
0x1046   :  { %v2472_v13 = vpop.xlane.xlu0 %2471 }
0x1047   :  { %v2476_v44 = vsub.f32 %v2468_v3, %v2472_v13 }
0x1049   :  { %v2478_v14 = vmul.f32 1.442695, %v2476_v44 }
0x104a   :  { %v2475_v17 = vpop.xlane.xlu1 %2474  ;;  %v2569_v19 = vpop.permute.xlu0 %2568 }
0x104b   :  { %8483 = vpow2.f32 %v2478_v14  ;;  %v2477_v20 = vsub.f32 %v2469_v9, %v2475_v17  ;;  %7877 = vmatpush3.msra.mxu1 %v2569_v19 }
0x104c   :  { %7886 = vmatprep.subr.mxu1 %v9079_v26 }
0x104d   :  { %v2480_v21 = vmul.f32 1.442695, %v2477_v20 }
0x104e   :  { %v2493_v22 = vpop.permute.xlu1 %2492 }
0x104f   :  { %8485 = vpow2.f32 %v2480_v21  ;;  %7872 = vmatpush3.msra.mxu0 %v2493_v22 }
0x1050   :  { %7881 = vmatprep.subr.mxu0 %v9079_v26 }
0x1052   :  { %v2647_v30 = vpop.permute.xlu1 %2646 }
0x1055   :  { %v8484_v23 = vpop.eup %8483 }
0x1056   :  { %v2482_v24 = vsel %vm626_vm4, %v8484_v23, 0.0  ;;  %v2725_v41 = vpop.permute.xlu1 %2724 }
0x1057   :  { %2483 = vadd.xlane.f32.xlu0 %v2482_v24 }
0x1059   :  { %v8486_v25 = vpop.eup %8485 }
0x105a   :  { %v2485_v27 = vsel %vm626_vm4, %v8486_v25, 0.0  ;;  %v2723_v48 = vpop.permute.xlu1 %2722 }
0x105b   :  { %2486 = vadd.xlane.f32.xlu0 %v2485_v27 }
0x1071   :  { %2644 = vrot.lane.b32.xlu0 %v9512_v43, %s10409_s0 }
0x10e4   :  { %v2484_v28 = vpop.xlane.xlu0 %2483 }
0x10e5   :  { %8487 = vrcp.f32 %v2484_v28 }
0x10e8   :  { %v2487_v29 = vpop.xlane.xlu0 %2486 }
0x10e9   :  { %8489 = vrcp.f32 %v2487_v29 }
0x10ec   :  { %v2645_v45 = vpop.permute.xlu0 %2644 }
0x10ef   :  { %v8488_v31 = vpop.eup %8487 }
0x10f0   :  { %v2489_v32 = vmul.f32 %v8488_v31, %v8484_v23 }
0x10f2   :  { %7874 = vmatmul.mubr.msk.f32.vlgmr.msra.gmra.mrb[26].mxu0 %vm626_vm4, %v2489_v32 }
0x10f3   :  { %v8490_v34 = vpop.eup %8489  ;;  %7882 = vmatpush3.xpose.msk.msra.mxu0 %vm626_vm4, %v2647_v30  ;;  %7883 = vmatprep.mubr.msk.f32.mxu0 %vm9080_vm3, %v9079_v26 }
0x10f4   :  { %v2491_v42 = vmul.f32 %v8490_v34, %v8486_v25  ;;  %7891 = vmatprep.subr.mxu0 %v9079_v26 }
0x10f6   :  { %7879 = vmatmul.mubr.msk.f32.vlgmr.msra.gmra.mrb[26].mxu1 %vm626_vm4, %v2491_v42  ;;  %7884 = vmatmul.mubr.msk.f32.vlgmr.msra.gmra.mrb[28].mxu0 %vm626_vm4, %v2645_v45 }
0x10f7   :  { %7887 = vmatpush3.xpose.msk.msra.mxu1 %vm626_vm4, %v2725_v41  ;;  %7888 = vmatprep.mubr.msk.f32.mxu1 %vm9080_vm3, %v9079_v26 }
0x10f8   :  { %7896 = vmatprep.subr.mxu1 %v9079_v26  ;;  %7893 = vmatprep.mubr.msk.f32.mxu0 %vm9080_vm3, %v9079_v26 }
0x10fa   :  { %7889 = vmatmul.mubr.msk.f32.vlgmr.msra.gmra.mrb[28].mxu1 %vm626_vm4, %v2723_v48 }
0x10fb   :  { %7898 = vmatprep.mubr.msk.f32.mxu1 %vm9080_vm3, %v9079_v26 }
0x11c5   :  { %v9769_v49 = vpop.f32.mrb[26].mxu0 }
0x11c6   :  { %v7875_v50 = vpop.f32.mrb[27].mxu0 }
0x11c9   :  { %v9771_v51 = vpop.f32.mrb[26].mxu1  ;;  %v2718_v52 = vpop.f32.mrb[28].mxu0 }
0x11ca   :  { %v2800_v53 = vmul.f32 0.35355338, %v2718_v52  ;;  %v7880_v54 = vpop.f32.mrb[27].mxu1  ;;  %v7885_v55 = vpop.f32.mrb[29].mxu0 }
0x11cc   :  { %v2802_v56 = vsel %vm626_vm4, %v2800_v53, -inf }
0x11cd   :  { %v2796_v57 = vpop.f32.mrb[28].mxu1  ;;  %2803 = vmax.xlane.f32.xlu0 %v2802_v56 }
0x11ce   :  { %v2801_v58 = vmul.f32 0.35355338, %v2796_v57  ;;  %v7890_v59 = vpop.f32.mrb[29].mxu1 }
0x11d0   :  { %v2805_v61 = vsel %vm626_vm4, %v2801_v58, -inf }
0x11d1   :  { %2806 = vmax.xlane.f32.xlu1 %v2805_v61 }
0x11e2   :  { %2824 = vrot.lane.b32.xlu1 %v9670_v10, %s9085_s10 }
0x11e3   :  { %2900 = vrot.lane.b32.xlu0 %v9679_v40, %s9085_s10 }
0x11e6   :  { %2978 = vrot.lane.b32.xlu1 %v9670_v10, %s9089_s30 }
0x11ea   :  { %3056 = vrot.lane.b32.xlu1 %v9679_v40, %s9089_s30 }
0x11ee   :  { %3054 = vrot.lane.b32.xlu1 %v9518_v46, %s9059_s28 }
0x125a   :  { %v2804_v0 = vpop.xlane.xlu0 %2803 }
0x125b   :  { %v2808_v2 = vsub.f32 %v2800_v53, %v2804_v0 }
0x125d   :  { %v2810_v3 = vmul.f32 1.442695, %v2808_v2 }
0x125e   :  { %v2807_v4 = vpop.xlane.xlu1 %2806  ;;  %v2901_v6 = vpop.permute.xlu0 %2900 }
0x125f   :  { %8491 = vpow2.f32 %v2810_v3  ;;  %v2809_v7 = vsub.f32 %v2801_v58, %v2807_v4  ;;  %7897 = vmatpush3.msra.mxu1 %v2901_v6 }
0x1260   :  { %7906 = vmatprep.subr.mxu1 %v9079_v26 }
0x1261   :  { %v2812_v8 = vmul.f32 1.442695, %v2809_v7 }
0x1262   :  { %v2825_v9 = vpop.permute.xlu1 %2824 }
0x1263   :  { %8493 = vpow2.f32 %v2812_v8  ;;  %7892 = vmatpush3.msra.mxu0 %v2825_v9 }
0x1264   :  { %7901 = vmatprep.subr.mxu0 %v9079_v26 }
0x1266   :  { %v2979_v17 = vpop.permute.xlu1 %2978 }
0x1269   :  { %v8492_v11 = vpop.eup %8491 }
0x126a   :  { %v2814_v12 = vsel %vm626_vm4, %v8492_v11, 0.0  ;;  %v3057_v22 = vpop.permute.xlu1 %3056 }
0x126b   :  { %2815 = vadd.xlane.f32.xlu0 %v2814_v12  ;;  %v3356_v12 = vld [vmem:[#allocation19 + $0x8] sm:$0xff] }
0x126d   :  { %v8494_v46 = vpop.eup %8493 }
0x126e   :  { %v2817_v13 = vsel %vm626_vm4, %v8494_v46, 0.0  ;;  %v3055_v24 = vpop.permute.xlu1 %3054 }
0x126f   :  { %2818 = vadd.xlane.f32.xlu0 %v2817_v13 }
0x1285   :  { %2976 = vrot.lane.b32.xlu0 %v9512_v43, %s9059_s28 }
0x12f8   :  { %v2816_v44 = vpop.xlane.xlu0 %2815 }
0x12f9   :  { %8495 = vrcp.f32 %v2816_v44  ;;  %v3358_v44 = vld [vmem:[#allocation19 + $0x18] sm:$0xff] }
0x12fc   :  { %v2819_v14 = vpop.xlane.xlu0 %2818 }
0x12fd   :  { %8497 = vrcp.f32 %v2819_v14 }
0x1300   :  { %v2977_v43 = vpop.permute.xlu0 %2976 }
0x1303   :  { %v8496_v19 = vpop.eup %8495 }
0x1304   :  { %v2821_v20 = vmul.f32 %v8496_v19, %v8492_v11  ;;  %v3355_v11 = vld [vmem:[#allocation19] sm:$0xff]  ;;  %v3360_v19 = vld [vmem:[#allocation19 + $0x28] sm:$0xff] }
0x1305   :  { %v8260_v13 = vpack.c.bf16 %v3356_v12, %v3355_v11 }
0x1306   :  { %7894 = vmatmul.mubr.msk.f32.vlgmr.msra.gmra.mrb[30].mxu0 %vm626_vm4, %v2821_v20 }
0x1307   :  { %v8498_v21 = vpop.eup %8497  ;;  %7902 = vmatpush3.xpose.msk.msra.mxu0 %vm626_vm4, %v2979_v17  ;;  %7903 = vmatprep.mubr.msk.f32.mxu0 %vm9080_vm3, %v9079_v26  ;;  %v3359_v17 = vld [vmem:[#allocation19 + $0x20] sm:$0xff] }
0x1308   :  { %v2823_v23 = vmul.f32 %v8498_v21, %v8494_v46  ;;  %7911 = vmatprep.subr.mxu0 %v9079_v26  ;;  %v3357_v46 = vld [vmem:[#allocation19 + $0x10] sm:$0xff]  ;;  %v8268_v20 = vpack.c.bf16 %v3360_v19, %v3359_v17  ;;  %v3362_v21 = vld [vmem:[#allocation19 + $0x38] sm:$0xff] }
0x1309   :  { %v8264_v14 = vpack.c.bf16 %v3358_v44, %v3357_v46 }
0x130a   :  { %7899 = vmatmul.mubr.msk.f32.vlgmr.msra.gmra.mrb[30].mxu1 %vm626_vm4, %v2823_v23  ;;  %7904 = vmatmul.mubr.msk.f32.vlgmr.msra.gmra.mrb[32].mxu0 %vm626_vm4, %v2977_v43 }
0x130b   :  { %7907 = vmatpush3.xpose.msk.msra.mxu1 %vm626_vm4, %v3057_v22  ;;  %7908 = vmatprep.mubr.msk.f32.mxu1 %vm9080_vm3, %v9079_v26 }
0x130c   :  { %7916 = vmatprep.subr.mxu1 %v9079_v26  ;;  %7913 = vmatprep.mubr.msk.f32.mxu0 %vm9080_vm3, %v9079_v26 }
0x130e   :  { %7909 = vmatmul.mubr.msk.f32.vlgmr.msra.gmra.mrb[32].mxu1 %vm626_vm4, %v3055_v24 }
0x130f   :  { %7918 = vmatprep.mubr.msk.f32.mxu1 %vm9080_vm3, %v9079_v26 }
0x13d9   :  { %v2896_v25 = vpop.f32.mrb[30].mxu0 }
0x13da   :  { %v7895_v27 = vpop.f32.mrb[31].mxu0 }
0x13dd   :  { %v2972_v28 = vpop.f32.mrb[30].mxu1  ;;  %v3050_v29 = vpop.f32.mrb[32].mxu0 }
0x13de   :  { %v3132_v30 = vmul.f32 0.35355338, %v3050_v29  ;;  %v7900_v31 = vpop.f32.mrb[31].mxu1  ;;  %v7905_v32 = vpop.f32.mrb[33].mxu0 }
0x13e0   :  { %v3134_v34 = vsel %vm626_vm4, %v3132_v30, -inf }
0x13e1   :  { %v3128_v41 = vpop.f32.mrb[32].mxu1  ;;  %3135 = vmax.xlane.f32.xlu0 %v3134_v34 }
0x13e2   :  { %v3133_v42 = vmul.f32 0.35355338, %v3128_v41  ;;  %v7910_v45 = vpop.f32.mrb[33].mxu1 }
0x13e3   :  { %v3338_v45 = vstv %s517_s9 }
0x13e4   :  { %v3137_v48 = vsel %vm626_vm4, %v3133_v42, -inf }
0x13e5   :  { %3138 = vmax.xlane.f32.xlu1 %v3137_v48 }
0x13f6   :  { %3156 = vrot.lane.b32.xlu1 %v9670_v10, %s9088_s18 }
0x13fa   :  { %3310 = vrot.lane.b32.xlu1 %v9769_v49, %s9059_s28 }
0x13fe   :  { %3312 = vrot.lane.b32.xlu1 %v9771_v51, %s9059_s28 }
0x1402   :  { %3320 = vrot.lane.b32.xlu1 %v2972_v28, %s10409_s0 }
0x146e   :  { %v3136_v50 = vpop.xlane.xlu0 %3135 }
0x146f   :  { %v3140_v52 = vsub.f32 %v3132_v30, %v3136_v50 }
0x1471   :  { %v3142_v53 = vmul.f32 1.442695, %v3140_v52 }
0x1472   :  { %v3139_v54 = vpop.xlane.xlu1 %3138 }
0x1473   :  { %8499 = vpow2.f32 %v3142_v53  ;;  %v3141_v55 = vsub.f32 %v3133_v42, %v3139_v54 }
0x1475   :  { %v3144_v56 = vmul.f32 1.442695, %v3141_v55 }
0x1476   :  { %v3157_v57 = vpop.permute.xlu1 %3156 }
0x1477   :  { %8501 = vpow2.f32 %v3144_v56  ;;  %7912 = vmatpush3.msra.mxu0 %v3157_v57 }
0x1478   :  { %8261 = vmatprep.subr.bf16.mxu0 %v8260_v13 }
0x147d   :  { %v8500_v58 = vpop.eup %8499 }
0x147e   :  { %v3146_v10 = vsel %vm626_vm4, %v8500_v58, 0.0 }
0x147f   :  { %3147 = vadd.xlane.f32.xlu0 %v3146_v10 }
0x1481   :  { %v8502_v49 = vpop.eup %8501 }
0x1482   :  { %v3149_v59 = vsel %vm626_vm4, %v8502_v49, 0.0 }
0x1483   :  { %3150 = vadd.xlane.f32.xlu0 %v3149_v59 }
0x1499   :  { %3232 = vrot.lane.b32.xlu0 %v9679_v40, %s9088_s18 }
0x149d   :  { %3318 = vrot.lane.b32.xlu0 %v2896_v25, %s10409_s0 }
0x150c   :  { %v3148_v51 = vpop.xlane.xlu0 %3147 }
0x150d   :  { %8503 = vrcp.f32 %v3148_v51 }
0x1510   :  { %v3151_v61 = vpop.xlane.xlu0 %3150 }
0x1511   :  { %8505 = vrcp.f32 %v3151_v61 }
0x1514   :  { %v3233_v0 = vpop.permute.xlu0 %3232 }
0x1515   :  { %7917 = vmatpush3.msra.mxu1 %v3233_v0 }
0x1517   :  { %v8504_v2 = vpop.eup %8503 }
0x1518   :  { %v3153_v3 = vmul.f32 %v8504_v2, %v8500_v58  ;;  %v3319_v23 = vpop.permute.xlu0 %3318 }
0x151a   :  { %7914 = vmatmul.mubr.msk.f32.vlgmr.msra.gmra.mrb[34].mxu0 %vm626_vm4, %v3153_v3 }
0x151b   :  { %v8506_v4 = vpop.eup %8505  ;;  %8263 = vmatpush3.bf16.msra.mxu0 %v8260_v13 }
0x151c   :  { %v3155_v6 = vmul.f32 %v8506_v4, %v8502_v49  ;;  %8265 = vmatprep.subr.bf16.mxu0 %v8264_v14 }
0x151e   :  { %7919 = vmatmul.mubr.msk.f32.vlgmr.msra.gmra.mrb[34].mxu1 %vm626_vm4, %v3155_v6 }
0x151f   :  { %8267 = vmatpush3.bf16.msra.mxu0 %v8264_v14 }
0x1520   :  { %8269 = vmatprep.subr.bf16.mxu0 %v8268_v20 }
0x1523   :  { %8271 = vmatpush3.bf16.msra.mxu0 %v8268_v20 }
0x15ed   :  { %v3228_v7 = vpop.f32.mrb[34].mxu0 }
0x15ee   :  { %3326 = vrot.lane.b32.xlu0 %v3228_v7, %s9091_s15  ;;  %v7915_v40 = vpop.f32.mrb[35].mxu0 }
0x15f1   :  { %v3304_v8 = vpop.f32.mrb[34].mxu1 }
0x15f2   :  { %3328 = vrot.lane.b32.xlu1 %v3304_v8, %s9091_s15  ;;  %v7920_v9 = vpop.f32.mrb[35].mxu1  ;;  %1952 = vrot.lane.b32.xlu0 %v9608_v60, %s9059_s28  ;;  %v3311_v60 = vpop.permute.xlu1 %3310 }
0x15f6   :  { %1954 = vrot.lane.b32.xlu1 %v9610_v62, %s9059_s28  ;;  %1960 = vrot.lane.b32.xlu0 %v9646_v33, %s10409_s0  ;;  %v3361_v62 = vld [vmem:[#allocation19 + $0x30] sm:$0xff]  ;;  %v3313_v22 = vpop.permute.xlu1 %3312 }
0x15f7   :  { %v8272_v33 = vpack.c.bf16 %v3362_v21, %v3361_v62  ;;  %v3333_v28 = vsel %vm626_vm4, %v9733_v1, %v3313_v22 }
0x15f9   :  { %8273 = vmatprep.subr.bf16.mxu0 %v8272_v33 }
0x15fa   :  { %1962 = vrot.lane.b32.xlu1 %v9648_v37, %s10409_s0  ;;  %1968 = vrot.lane.b32.xlu0 %v9693_v47, %s9091_s15  ;;  %v3332_v37 = vsel %vm626_vm4, %v9731_v63, %v3311_v60  ;;  %v3342_v47 = vstv %s3341_s25  ;;  %v3321_v43 = vpop.permute.xlu1 %3320 }
0x15fb   :  { %8275 = vmatpush3.bf16.msra.mxu0 %v8272_v33  ;;  %v3335_v29 = vsel %vm1976_vm6, %v3333_v28, %v3321_v43  ;;  %v3499_v33 = vld [vmem:[%s10372_s14 + $0x8] sm:$0xff] }
0x15fe   :  { %1970 = vrot.lane.b32.xlu1 %v9695_v15, %s9091_s15  ;;  %v3334_v15 = vsel %vm1976_vm6, %v3332_v37, %v3319_v23  ;;  %v3500_v23 = vld [vmem:[%s10372_s14 + $0x10] sm:$0xff]  ;;  %v3501_v37 = vld [vmem:[%s10372_s14 + $0x18] sm:$0xff] }
0x1660   :  { %v3327_v24 = vpop.permute.xlu0 %3326 }
0x1661   :  { %v3336_v25 = vsel %vm1979_vm5, %v3334_v15, %v3327_v24 }
0x1662   :  { %v3343_v27 = vmul.f32 %v3342_v47, %v3336_v25 }
0x1664   :  { %v3329_v30 = vpop.permute.xlu1 %3328  ;;  %3347 = vrot.lane.b32.xlu0 %v3343_v27, %s9071_s29  ;;  %v1953_v31 = vpop.permute.xlu0 %1952 }
0x1665   :  { %v3337_v63 = vsel %vm1979_vm5, %v3335_v29, %v3329_v30  ;;  %v1974_v42 = vsel %vm626_vm4, %v9570_v16, %v1953_v31  ;;  %v9880_v29 = vld [vmem:[#allocation22] sm:$0xf] }
0x1666   :  { %v3344_v32 = vmul.f32 %v3342_v47, %v3337_v63  ;;  %v3489_v30 = vrot.slane %v9880_v29, %v9506_v39 }
0x1668   :  { %3349 = vrot.lane.b32.xlu1 %v3344_v32, %s9071_s29  ;;  %v1955_v34 = vpop.permute.xlu1 %1954  ;;  %v1961_v41 = vpop.permute.xlu0 %1960  ;;  %v3495_v32 = vrot.slane %v9880_v29, %v9664_v5 }
0x1669   :  { %v1977_v48 = vsel %vm1976_vm6, %v1974_v42, %v1961_v41  ;;  %v1975_v54 = vsel %vm626_vm4, %v9572_v18, %v1955_v34  ;;  %v519_v18 = vld [vmem:[#allocation21] sm:$0x3] }
0x166a   :  { %v3363_v51 = vmul.f32 %v3338_v45, %v519_v18  ;;  %v3450_v61 = vmul.f32 %v3342_v47, %v519_v18  ;;  %v8280_v47 = vpack.c.bf16 %v3501_v37, %v3500_v23  ;;  %v3652_v18 = vld [vmem:[#allocation25 + $0x40] sm:$0xff] }
0x166c   :  { %v1963_v1 = vpop.permute.xlu1 %1962  ;;  %v1969_v50 = vpop.permute.xlu0 %1968  ;;  %v3367_v0 = vrot.slane %v3363_v51, %v9506_v39  ;;  %v3454_v2 = vrot.slane %v3450_v61, %v9664_v5  ;;  %v3653_v51 = vld [vmem:[#allocation25 + $0x48] sm:$0xff] }
0x166d   :  { %v1980_v52 = vsel %vm1979_vm5, %v1977_v48, %v1969_v50  ;;  %v1978_v55 = vsel %vm1976_vm6, %v1975_v54, %v1963_v1  ;;  %v3644_v50 = vld [vmem:[#allocation25] sm:$0xff]  ;;  %v3646_v54 = vld [vmem:[#allocation25 + $0x10] sm:$0xff]  ;;  %v8300_v61 = vpack.c.bf16 %v3653_v51, %v3652_v18 }
0x166e   :  { %v3339_v53 = vmul.f32 %v3338_v45, %v1980_v52  ;;  %v3645_v52 = vld [vmem:[#allocation25 + $0x8] sm:$0xff] }
0x1670   :  { %v1971_v56 = vpop.permute.xlu1 %1970 }
0x1671   :  { %v1981_v57 = vsel %vm1979_vm5, %v1978_v55, %v1971_v56  ;;  %v3647_v55 = vld [vmem:[#allocation25 + $0x18] sm:$0xff] }
0x1672   :  { %v3340_v58 = vmul.f32 %v3338_v45, %v1981_v57  ;;  %v8288_v56 = vpack.c.bf16 %v3647_v55, %v3646_v54  ;;  %v3648_v57 = vld [vmem:[#allocation25 + $0x20] sm:$0xff] }
0x16d6   :  { %v3348_v10 = vpop.permute.xlu0 %3347 }
0x16d7   :  { %v3353_v16 = vsel %vm429_vm2, %v3339_v53, %v3348_v10  ;;  %v8284_v53 = vpack.c.bf16 %v3645_v52, %v3644_v50 }
0x16d8   :  { %7937 = vmatprep.mubr.msk.f32.mxu0 %vm3368_vm7, %v3353_v16  ;;  %v3650_v16 = vld [vmem:[#allocation25 + $0x30] sm:$0xff] }
0x16da   :  { %v3350_v49 = vpop.permute.xlu1 %3349 }
0x16db   :  { %v3354_v59 = vsel %vm429_vm2, %v3340_v58, %v3350_v49  ;;  %v3649_v58 = vld [vmem:[#allocation25 + $0x28] sm:$0xff]  ;;  %v3651_v49 = vld [vmem:[#allocation25 + $0x38] sm:$0xff] }
0x16dc   :  { %7938 = vmatmul.mubr.msk.f32.vlgmr.msra.gmra.mrb[36].mxu0 %vm3368_vm7, %v3354_v59  ;;  %v8292_v10 = vpack.c.bf16 %v3649_v58, %v3648_v57  ;;  %v8296_v59 = vpack.c.bf16 %v3651_v49, %v3650_v16 }
0x16dd   :  { %3883 = vmatprep.mubr.f32.mxu0 %v9079_v26 }
0x17af   :  { %v7939_v3 = vpop.f32.mrb[36].mxu0 }
0x17b0   :  { %v3447_v4 = vadd.f32 %v7939_v3, %v3367_v0  ;;  %v3441_v6 = vpop.f32.mrb[37].mxu0 }
0x17b1   :  { %v3442_v7 = vadd.f32 %v3441_v6, %v3367_v0  ;;  %v3654_v0 = vld [vmem:[#allocation25 + $0x50] sm:$0xff]  ;;  %v3657_v6 = vld [vmem:[#allocation25 + $0x68] sm:$0xff] }
0x17b2   :  { %v3456_v40 = vadd.f32 %v3454_v2, %v3447_v4  ;;  %v3656_v4 = vld [vmem:[#allocation25 + $0x60] sm:$0xff] }
0x17b3   :  { %v3455_v8 = vadd.f32 %v3454_v2, %v3442_v7  ;;  %v3655_v2 = vld [vmem:[#allocation25 + $0x58] sm:$0xff]  ;;  %v8308_v7 = vpack.c.bf16 %v3657_v6, %v3656_v4 }
0x17b4   :  { %v3458_v9 = vadd.f32 %v3456_v40, %v9495_v36  ;;  %v8304_v3 = vpack.c.bf16 %v3655_v2, %v3654_v0  ;;  %v3658_v40 = vld [vmem:[#allocation25 + $0x70] sm:$0xff] }
0x17b5   :  { %v3457_v11 = vadd.f32 %v3455_v8, %v9490_v35  ;;  %v3498_v35 = vld [vmem:[%s10372_s14] sm:$0xff]  ;;  %v3659_v8 = vld [vmem:[#allocation25 + $0x78] sm:$0xff] }
0x17b6   :  { %v3462_v12 = vsel %vm429_vm2, %v3458_v9, 0.0  ;;  %v8276_v22 = vpack.c.bf16 %v3499_v33, %v3498_v35 }
0x17b7   :  { %3463 = vadd.xlane.f32.xlu1 %v3462_v12  ;;  %v3459_v46 = vsel %vm429_vm2, %v3457_v11, 0.0 }
0x17b8   :  { %3460 = vadd.xlane.f32.xlu0 %v3459_v46  ;;  %8277 = vmatprep.subr.bf16.mxu1 %v8276_v22 }
0x17b9   :  { %8279 = vmatpush3.bf16.msra.mxu1 %v8276_v22 }
0x17ba   :  { %8281 = vmatprep.subr.bf16.mxu1 %v8280_v47 }
0x17bd   :  { %8283 = vmatpush3.bf16.msra.mxu1 %v8280_v47 }
0x17be   :  { %8285 = vmatprep.subr.bf16.mxu1 %v8284_v53 }
0x1844   :  { %v3464_v13 = vpop.xlane.xlu1 %3463 }
0x1845   :  { %v3467_v44 = vmul.f32 0.03125, %v3464_v13  ;;  %v3461_v14 = vpop.xlane.xlu0 %3460 }
0x1846   :  { %v3466_v17 = vmul.f32 0.03125, %v3461_v14 }
0x1847   :  { %v3469_v19 = vsub.f32 %v3458_v9, %v3467_v44  ;;  %v8312_v9 = vpack.c.bf16 %v3659_v8, %v3658_v40  ;;  %v7448_v8 = vld [vmem:[#allocation27] ss:$0 sm:$0xff] }
0x1848   :  { %v3468_v20 = vsub.f32 %v3457_v11, %v3466_v17  ;;  %v7441_v11 = vld [vmem:[#allocation24] ss:$0 sm:$0xff] }
0x1849   :  { %v3471_v21 = vmul.f32 %v3469_v19, %v3469_v19 }
0x184a   :  { %v3470_v60 = vmul.f32 %v3468_v20, %v3468_v20 }
0x184b   :  { %v3475_v36 = vsel %vm429_vm2, %v3471_v21, 0.0 }
0x184c   :  { %v3472_v62 = vsel %vm429_vm2, %v3470_v60, 0.0 }
0x184d   :  { %3473 = vadd.xlane.f32.xlu0 %v3472_v62 }
0x1851   :  { %3476 = vadd.xlane.f32.xlu0 %v3475_v36 }
0x18da   :  { %v3474_v43 = vpop.xlane.xlu0 %3473 }
0x18db   :  { %v3478_v15 = vmul.f32 0.03125, %v3474_v43 }
0x18dd   :  { %v3480_v24 = vadd.f32 1e-05, %v3478_v15 }
0x18de   :  { %v3477_v25 = vpop.xlane.xlu0 %3476 }
0x18df   :  { %8507 = vrsqrt.f32 %v3480_v24  ;;  %v3479_v27 = vmul.f32 0.03125, %v3477_v25 }
0x18e1   :  { %v3481_v28 = vadd.f32 1e-05, %v3479_v27 }
0x18e3   :  { %8509 = vrsqrt.f32 %v3481_v28 }
0x18e9   :  { %v8508_v31 = vpop.eup %8507 }
0x18ea   :  { %v3484_v63 = vmul.f32 %v8508_v31, %v3468_v20 }
0x18ec   :  { %v3490_v34 = vmul.f32 %v3489_v30, %v3484_v63 }
0x18ed   :  { %v8510_v41 = vpop.eup %8509 }
0x18ee   :  { %v3485_v42 = vmul.f32 %v8510_v41, %v3469_v19  ;;  %v9886_v45 = vadd.f32 %v3495_v32, %v3490_v34 }
0x18f0   :  { %v3491_v48 = vmul.f32 %v3489_v30, %v3485_v42  ;;  %7948 = vmatprep.mubr.msk.f32.mxu1 %vm429_vm2, %v9886_v45 }
0x18f2   :  { %v9890_v1 = vadd.f32 %v3495_v32, %v3491_v48 }
0x18f4   :  { %7949 = vmatmul.mubr.msk.f32.vlgmr.msra.gmra.mrb[36].mxu1 %vm429_vm2, %v9890_v1 }
0x18f5   :  { %8287 = vmatpush3.bf16.msra.mxu1 %v8284_v53 }
0x18f6   :  { %8289 = vmatprep.subr.bf16.mxu1 %v8288_v56 }
0x18f9   :  { %8291 = vmatpush3.bf16.msra.mxu1 %v8288_v56 }
0x18fa   :  { %8293 = vmatprep.subr.bf16.mxu1 %v8292_v10 }
0x18fd   :  { %8295 = vmatpush3.bf16.msra.mxu1 %v8292_v10 }
0x18fe   :  { %8297 = vmatprep.subr.bf16.mxu1 %v8296_v59 }
0x1901   :  { %8299 = vmatpush3.bf16.msra.mxu1 %v8296_v59 }
0x1902   :  { %8301 = vmatprep.subr.bf16.mxu1 %v8300_v61 }
0x1905   :  { %8303 = vmatpush3.bf16.msra.mxu1 %v8300_v61 }
0x1906   :  { %8305 = vmatprep.subr.bf16.mxu1 %v8304_v3 }
0x1909   :  { %8307 = vmatpush3.bf16.msra.mxu1 %v8304_v3 }
0x190a   :  { %8309 = vmatprep.subr.bf16.mxu1 %v8308_v7 }
0x190d   :  { %8311 = vmatpush3.bf16.msra.mxu1 %v8308_v7 }
0x190e   :  { %8313 = vmatprep.subr.bf16.mxu1 %v8312_v9 }
0x1911   :  { %8315 = vmatpush3.bf16.msra.mxu1 %v8312_v9 }
0x1912   :  { %8006 = vmatprep.subr.mxu1 %v9079_v26 }
0x19c7   :  { %v7950_v12 = vpop.f32.mrb[36].mxu1 }
0x19c8   :  { %v3587_v46 = vadd.f32 %v7950_v12, %v7441_v11  ;;  %v3581_v13 = vpop.f32.mrb[37].mxu1 }
0x19c9   :  { %v3582_v44 = vadd.f32 %v7441_v11, %v3581_v13 }
0x19ca   :  { %v3591_v14 = vmul.f32 0.70710677, %v3587_v46  ;;  %v3639_v6 = vmul.f32 0.5, %v3587_v46 }
0x19cb   :  { %v3590_v17 = vmul.f32 0.70710677, %v3582_v44  ;;  %v3638_v3 = vmul.f32 0.5, %v3582_v44 }
0x19cc   :  { %v3593_v19 = vand.u32 2147483647, %v3591_v14  ;;  %vm3633_vm8 = vcmp.ge.f32.partialorder %v3591_v14, 0.0 }
0x19cd   :  { %v3592_v20 = vand.u32 2147483647, %v3590_v17  ;;  %vm3632_vm9 = vcmp.ge.f32.partialorder %v3590_v17, 0.0 }
0x19ce   :  { %v3595_v60 = vmul.f32 0.3275911, %v3593_v19  ;;  %v3621_v35 = vsub.f32 0.0, %v3593_v19 }
0x19cf   :  { %v3594_v62 = vmul.f32 0.3275911, %v3592_v20  ;;  %v3620_v33 = vsub.f32 0.0, %v3592_v20 }
0x19d0   :  { %v3597_v21 = vadd.f32 1.0, %v3595_v60  ;;  %v3623_v23 = vmul.f32 %v3621_v35, %v3593_v19 }
0x19d1   :  { %v3596_v36 = vadd.f32 1.0, %v3594_v62  ;;  %v3622_v43 = vmul.f32 %v3620_v33, %v3592_v20 }
0x19d2   :  { %8511 = vrcp.f32 %v3597_v21  ;;  %v3626_v25 = vmul.f32 1.442695, %v3623_v23  ;;  %v3795_v23 = vld [vmem:[#allocation16 + $0x58] sm:$0xff] }
0x19d3   :  { %8513 = vrcp.f32 %v3596_v36  ;;  %v3624_v30 = vmul.f32 1.442695, %v3622_v43  ;;  %v3794_v43 = vld [vmem:[#allocation16 + $0x50] sm:$0xff] }
0x19d4   :  { %8515 = vpow2.f32 %v3626_v25  ;;  %v3799_v25 = vld [vmem:[#allocation16 + $0x78] sm:$0xff] }
0x19d5   :  { %8517 = vpow2.f32 %v3624_v30  ;;  %v3798_v30 = vld [vmem:[#allocation16 + $0x70] sm:$0xff] }
0x19dc   :  { %v8512_v22 = vpop.eup %8511 }
0x19dd   :  { %v8514_v37 = vpop.eup %8513  ;;  %v3603_v47 = vmul.f32 1.0614054, %v8512_v22 }
0x19de   :  { %v3602_v15 = vmul.f32 1.0614054, %v8514_v37  ;;  %v8516_v56 = vpop.eup %8515 }
0x19df   :  { %v7445_v24 = vadd.f32 -1.4531521, %v3603_v47  ;;  %v8518_v58 = vpop.eup %8517  ;;  %v3792_v47 = vld [vmem:[#allocation16 + $0x40] sm:$0xff] }
0x19e0   :  { %v7444_v27 = vadd.f32 -1.4531521, %v3602_v15  ;;  %v8318_v15 = vpack.c.bf16 %v3794_v43, %v3792_v47 }
0x19e1   :  { %v3607_v28 = vmul.f32 %v8512_v22, %v7445_v24  ;;  %v3797_v24 = vld [vmem:[#allocation16 + $0x68] sm:$0xff] }
0x19e2   :  { %v3606_v31 = vmul.f32 %v8514_v37, %v7444_v27  ;;  %v3796_v27 = vld [vmem:[#allocation16 + $0x60] sm:$0xff] }
0x19e3   :  { %v3609_v63 = vadd.f32 1.4214138, %v3607_v28  ;;  %v8320_v28 = vpack.c.bf16 %v3799_v25, %v3797_v24 }
0x19e4   :  { %v3608_v32 = vadd.f32 1.4214138, %v3606_v31  ;;  %v8322_v31 = vpack.c.bf16 %v3798_v30, %v3796_v27 }
0x19e5   :  { %v3611_v34 = vmul.f32 %v8512_v22, %v3609_v63 }
0x19e6   :  { %v3610_v41 = vmul.f32 %v8514_v37, %v3608_v32 }
0x19e7   :  { %v7447_v42 = vadd.f32 -0.28449672, %v3611_v34 }
0x19e8   :  { %v7446_v48 = vadd.f32 -0.28449672, %v3610_v41 }
0x19e9   :  { %v3615_v50 = vmul.f32 %v8512_v22, %v7447_v42 }
0x19ea   :  { %v3614_v52 = vmul.f32 %v8514_v37, %v7446_v48 }
0x19eb   :  { %v3617_v53 = vadd.f32 0.2548296, %v3615_v50  ;;  %v3772_v50 = vsub.s32 2, %v9499_v38 }
0x19ec   :  { %v3616_v54 = vadd.f32 0.2548296, %v3614_v52  ;;  %v3778_v52 = vsub.s32 3, %v9499_v38  ;;  %v7161_v38 = vld [vmem:[#allocation31] sm:$0xff] }
0x19ed   :  { %v3619_v55 = vmul.f32 %v8512_v22, %v3617_v53 }
0x19ee   :  { %v3618_v57 = vmul.f32 %v8514_v37, %v3616_v54  ;;  %v3773_v54 = vrot.slane %v9880_v29, %v3772_v50 }
0x19ef   :  { %v3629_v10 = vmul.f32 %v8516_v56, %v3619_v55 }
0x19f0   :  { %v3628_v16 = vmul.f32 %v8518_v58, %v3618_v57  ;;  %v3779_v57 = vrot.slane %v9880_v29, %v3778_v52 }
0x19f1   :  { %v3631_v49 = vsub.f32 1.0, %v3629_v10 }
0x19f2   :  { %v3630_v59 = vsub.f32 1.0, %v3628_v16 }
0x19f3   :  { %v3635_v18 = vsub.f32 0.0, %v3631_v49 }
0x19f4   :  { %v3634_v51 = vsub.f32 0.0, %v3630_v59 }
0x19f5   :  { %v3637_v61 = vsel %vm3633_vm8, %v3631_v49, %v3635_v18  ;;  %v9923_v18 = vld [vmem:[#allocation18 + $0x2] sm:$0x3] }
0x19f6   :  { %v3641_v0 = vadd.f32 1.0, %v3637_v61  ;;  %v3636_v2 = vsel %vm3632_vm9, %v3630_v59, %v3634_v51  ;;  %v3806_v29 = vrot.slane %v9923_v18, %v9506_v39 }
0x19f7   :  { %v3640_v4 = vadd.f32 1.0, %v3636_v2 }
0x19f8   :  { %v3643_v40 = vmul.f32 %v3641_v0, %v3639_v6 }
0x19f9   :  { %v3642_v7 = vmul.f32 %v3640_v4, %v3638_v3 }
0x19fb   :  { %7983 = vmatprep.mubr.f32.mxu1 %v3642_v7 }
0x19fc   :  { %7984 = vmatmul.mubr.f32.vlgmr.msra.gmra.mrb[38].mxu1 %v3643_v40 }
0x19fd   :  { %8008 = vmatprep.mubr.msk.f32.mxu1 %vm9080_vm3, %v9079_v26 }
0x1acf   :  { %v7985_v9 = vpop.f32.mrb[38].mxu1 }
0x1ad0   :  { %v3739_v11 = vadd.f32 %v7985_v9, %v7448_v8  ;;  %v3733_v12 = vpop.f32.mrb[39].mxu1 }
0x1ad1   :  { %v3734_v13 = vadd.f32 %v7448_v8, %v3733_v12 }
0x1ad2   :  { %v3743_v14 = vadd.f32 %v3739_v11, %v9890_v1 }
0x1ad3   :  { %v3742_v17 = vadd.f32 %v3734_v13, %v9886_v45  ;;  %v3793_v45 = vld [vmem:[#allocation16 + $0x48] sm:$0xff] }
0x1ad4   :  { %v3747_v44 = vsel %vm429_vm2, %v3743_v14, 0.0  ;;  %v8316_v37 = vpack.c.bf16 %v3795_v23, %v3793_v45 }
0x1ad5   :  { %3748 = vadd.xlane.f32.xlu0 %v3747_v44  ;;  %v3744_v46 = vsel %vm429_vm2, %v3742_v17, 0.0 }
0x1ad6   :  { %3745 = vadd.xlane.f32.xlu1 %v3744_v46  ;;  %8317 = vmatprep.subr.bf16.mxu0 %v8316_v37 }
0x1ad7   :  { %8319 = vmatpush1.bf16.msra.mxu0 %v8318_v15 }
0x1ad8   :  { %8321 = vmatprep.subr.bf16.mxu0 %v8320_v28 }
0x1adb   :  { %8323 = vmatpush1.bf16.msra.mxu0 %v8322_v31 }
0x1adc   :  { %7986 = vmatprep.subr.mxu0 %v9079_v26 }
0x1b62   :  { %v3749_v19 = vpop.xlane.xlu0 %3748 }
0x1b63   :  { %v3751_v20 = vmul.f32 0.03125, %v3749_v19  ;;  %v3746_v60 = vpop.xlane.xlu1 %3745 }
0x1b64   :  { %v3750_v62 = vmul.f32 0.03125, %v3746_v60 }
0x1b65   :  { %v3753_v21 = vsub.f32 %v3743_v14, %v3751_v20 }
0x1b66   :  { %v3752_v36 = vsub.f32 %v3742_v17, %v3750_v62 }
0x1b67   :  { %v3755_v35 = vmul.f32 %v3753_v21, %v3753_v21 }
0x1b68   :  { %v3754_v33 = vmul.f32 %v3752_v36, %v3752_v36 }
0x1b69   :  { %v3759_v22 = vsel %vm429_vm2, %v3755_v35, 0.0 }
0x1b6a   :  { %3760 = vadd.xlane.f32.xlu0 %v3759_v22  ;;  %v3756_v1 = vsel %vm429_vm2, %v3754_v33, 0.0 }
0x1b6b   :  { %3757 = vadd.xlane.f32.xlu1 %v3756_v1 }
0x1bf7   :  { %v3761_v63 = vpop.xlane.xlu0 %3760 }
0x1bf8   :  { %v3763_v32 = vmul.f32 0.03125, %v3761_v63  ;;  %v3758_v34 = vpop.xlane.xlu1 %3757 }
0x1bf9   :  { %v3762_v41 = vmul.f32 0.03125, %v3758_v34 }
0x1bfa   :  { %v3765_v42 = vadd.f32 1e-05, %v3763_v32 }
0x1bfb   :  { %v3764_v48 = vadd.f32 1e-05, %v3762_v41 }
0x1bfc   :  { %8519 = vrsqrt.f32 %v3765_v42 }
0x1bfd   :  { %8521 = vrsqrt.f32 %v3764_v48 }
0x1c06   :  { %v8520_v53 = vpop.eup %8519 }
0x1c07   :  { %v8522_v55 = vpop.eup %8521  ;;  %v3769_v58 = vmul.f32 %v8520_v53, %v3753_v21 }
0x1c08   :  { %v3768_v56 = vmul.f32 %v8522_v55, %v3752_v36 }
0x1c09   :  { %v3775_v49 = vmul.f32 %v3773_v54, %v3769_v58 }
0x1c0a   :  { %v3774_v10 = vmul.f32 %v3773_v54, %v3768_v56 }
0x1c0b   :  { %v9917_v59 = vadd.f32 %v3779_v57, %v3775_v49 }
0x1c0c   :  { %v9912_v16 = vadd.f32 %v3779_v57, %v3774_v10 }
0x1c0e   :  { %7450 = vmatmul.mubr.msk.f32.vlgmr.msra.gmra.mrb[38].mxu0 %vm429_vm2, %v9912_v16 }
0x1c0f   :  { %3889 = vmatprep.mubr.f32.mxu0 %v9079_v26 }
0x1c12   :  { %7451 = vmatmul.mubr.msk.f32.gmra.mrb[40].mxu0 %vm429_vm2, %v9917_v59 }
0x1c13   :  { %7988 = vmatprep.mubr.msk.f32.mxu0 %vm9080_vm3, %v9079_v26 }
0x1ce1   :  { %v3885_v51 = vpop.f32.mrb[38].mxu0 }
0x1ce2   :  { %v9927_v61 = vadd.f32 %v3885_v51, %v3806_v29  ;;  %v9929_v0 = vpop.f32.mrb[39].mxu0 }
0x1ce4   :  { %3897 = vrot.lane.b32.xlu1 %v9927_v61, %s9081_s2 }
0x1ce5   :  { %v3891_v2 = vpop.f32.mrb[40].mxu0 }
0x1ce6   :  { %v9933_v3 = vadd.f32 %v3891_v2, %v3806_v29  ;;  %v9935_v4 = vpop.f32.mrb[41].mxu0 }
0x1ce8   :  { %3974 = vrot.lane.b32.xlu0 %v9933_v3, %s9081_s2 }
0x1d56   :  { %v3898_v6 = vpop.permute.xlu1 %3897 }
0x1d57   :  { %7987 = vmatpush3.xpose.msk.msra.mxu0 %vm626_vm4, %v3898_v6 }
0x1d58   :  { %7991 = vmatprep.subr.mxu0 %v9079_v26 }
0x1d5a   :  { %v3975_v7 = vpop.permute.xlu0 %3974  ;;  %7989 = vmatmul.mubr.msk.f32.vlgmr.msra.gmra.mrb[42].mxu0 %vm626_vm4, %v9927_v61 }
0x1d5b   :  { %7992 = vmatpush3.xpose.msk.msra.mxu0 %vm626_vm4, %v3975_v7  ;;  %7993 = vmatprep.mubr.msk.f32.mxu0 %vm9080_vm3, %v9079_v26 }
0x1d5c   :  { %7996 = vmatprep.subr.mxu0 %v9079_v26 }
0x1d5e   :  { %7994 = vmatmul.mubr.msk.f32.vlgmr.msra.gmra.mrb[44].mxu0 %vm626_vm4, %v9933_v3 }
0x1d5f   :  { %7998 = vmatprep.mubr.msk.f32.mxu0 %vm9080_vm3, %v9079_v26 }
0x1e2d   :  { %v3969_v40 = vpop.f32.mrb[42].mxu0 }
0x1e2e   :  { %v4050_v8 = vmul.f32 0.35355338, %v3969_v40  ;;  %v7990_v9 = vpop.f32.mrb[43].mxu0 }
0x1e30   :  { %v4052_v11 = vsel %vm626_vm4, %v4050_v8, -inf }
0x1e31   :  { %4053 = vmax.xlane.f32.xlu1 %v4052_v11  ;;  %v4046_v12 = vpop.f32.mrb[44].mxu0 }
0x1e32   :  { %v4051_v13 = vmul.f32 0.35355338, %v4046_v12  ;;  %v7995_v14 = vpop.f32.mrb[45].mxu0 }
0x1e34   :  { %v4055_v17 = vsel %vm626_vm4, %v4051_v13, -inf }
0x1e35   :  { %4056 = vmax.xlane.f32.xlu0 %v4055_v17 }
0x1e42   :  { %4074 = vrot.lane.b32.xlu1 %v9927_v61, %s9060_s11 }
0x1e46   :  { %4228 = vrot.lane.b32.xlu1 %v9927_v61, %s9082_s17 }
0x1e4b   :  { %4150 = vrot.lane.b32.xlu0 %v9933_v3, %s9060_s11  ;;  %s10249_s11 = sld [smem:[#allocation3 + $0x1]] }
0x1ebe   :  { %v4054_v44 = vpop.xlane.xlu1 %4053 }
0x1ebf   :  { %v4058_v46 = vsub.f32 %v4050_v8, %v4054_v44 }
0x1ec1   :  { %v4060_v19 = vmul.f32 1.442695, %v4058_v46 }
0x1ec2   :  { %v4075_v20 = vpop.permute.xlu1 %4074  ;;  %v4057_v60 = vpop.xlane.xlu0 %4056 }
0x1ec3   :  { %8523 = vpow2.f32 %v4060_v19  ;;  %v4059_v62 = vsub.f32 %v4051_v13, %v4057_v60  ;;  %7997 = vmatpush3.msra.mxu0 %v4075_v20 }
0x1ec4   :  { %8001 = vmatprep.subr.mxu0 %v9079_v26 }
0x1ec5   :  { %v4062_v21 = vmul.f32 1.442695, %v4059_v62 }
0x1ec6   :  { %v4229_v36 = vpop.permute.xlu1 %4228  ;;  %v4151_v45 = vpop.permute.xlu0 %4150 }
0x1ec7   :  { %8525 = vpow2.f32 %v4062_v21  ;;  %8007 = vmatpush3.xpose.msk.msra.mxu1 %vm626_vm4, %v4229_v36 }
0x1ec8   :  { %8016 = vmatprep.subr.mxu1 %v9079_v26 }
0x1ecd   :  { %v8524_v35 = vpop.eup %8523 }
0x1ece   :  { %v4064_v33 = vsel %vm626_vm4, %v8524_v35, 0.0 }
0x1ecf   :  { %4065 = vadd.xlane.f32.xlu1 %v4064_v33 }
0x1ed1   :  { %v8526_v22 = vpop.eup %8525 }
0x1ed2   :  { %v4067_v1 = vsel %vm626_vm4, %v8526_v22, 0.0 }
0x1ed3   :  { %4068 = vadd.xlane.f32.xlu0 %v4067_v1 }
0x1ee0   :  { %4306 = vrot.lane.b32.xlu1 %v9933_v3, %s9082_s17 }
0x1ee4   :  { %4304 = vrot.lane.b32.xlu1 %v9933_v3, %s9083_s12 }
0x1ee9   :  { %4226 = vrot.lane.b32.xlu0 %v9927_v61, %s9083_s12 }
0x1f5c   :  { %v4066_v23 = vpop.xlane.xlu1 %4065 }
0x1f5d   :  { %8527 = vrcp.f32 %v4066_v23 }
0x1f60   :  { %v4069_v37 = vpop.xlane.xlu0 %4068  ;;  %v4307_v27 = vpop.permute.xlu1 %4306 }
0x1f61   :  { %8529 = vrcp.f32 %v4069_v37 }
0x1f64   :  { %v4227_v47 = vpop.permute.xlu0 %4226  ;;  %v4305_v28 = vpop.permute.xlu1 %4304 }
0x1f65   :  { %8009 = vmatmul.mubr.msk.f32.vlgmr.msra.gmra.mrb[40].mxu1 %vm626_vm4, %v4227_v47 }
0x1f66   :  { %8018 = vmatprep.mubr.msk.f32.mxu1 %vm9080_vm3, %v9079_v26 }
0x1f67   :  { %v8528_v43 = vpop.eup %8527 }
0x1f68   :  { %v4071_v15 = vmul.f32 %v8528_v43, %v8524_v35 }
0x1f6a   :  { %7999 = vmatmul.mubr.msk.f32.vlgmr.msra.gmra.mrb[46].mxu0 %vm626_vm4, %v4071_v15 }
0x1f6b   :  { %v8530_v24 = vpop.eup %8529  ;;  %8002 = vmatpush3.msra.mxu0 %v4151_v45  ;;  %8003 = vmatprep.mubr.msk.f32.mxu0 %vm9080_vm3, %v9079_v26 }
0x1f6c   :  { %v4073_v25 = vmul.f32 %v8530_v24, %v8526_v22  ;;  %8011 = vmatprep.subr.mxu0 %v9079_v26 }
0x1f6e   :  { %8004 = vmatmul.mubr.msk.f32.vlgmr.msra.gmra.mrb[48].mxu0 %vm626_vm4, %v4073_v25 }
0x1f6f   :  { %8013 = vmatprep.mubr.msk.f32.mxu0 %vm9080_vm3, %v9079_v26 }
0x1f72   :  { %8012 = vmatpush3.xpose.msk.msra.mxu0 %vm626_vm4, %v4307_v27 }
0x1f73   :  { %8021 = vmatprep.subr.mxu0 %v9079_v26 }
0x1f75   :  { %8014 = vmatmul.mubr.msk.f32.vlgmr.msra.gmra.mrb[50].mxu0 %vm626_vm4, %v4305_v28 }
0x1f76   :  { %8023 = vmatprep.mubr.msk.f32.mxu0 %vm9080_vm3, %v9079_v26 }
0x2038   :  { %v4300_v30 = vpop.f32.mrb[40].mxu1 }
0x2039   :  { %v4382_v31 = vmul.f32 0.35355338, %v4300_v30  ;;  %v8010_v63 = vpop.f32.mrb[41].mxu1 }
0x203b   :  { %v4384_v32 = vsel %vm626_vm4, %v4382_v31, -inf }
0x203c   :  { %4385 = vmax.xlane.f32.xlu0 %v4384_v32 }
0x203d   :  { %v9986_v34 = vpop.f32.mrb[46].mxu0 }
0x203e   :  { %v8000_v41 = vpop.f32.mrb[47].mxu0 }
0x2041   :  { %v9988_v42 = vpop.f32.mrb[48].mxu0 }
0x2042   :  { %v8005_v48 = vpop.f32.mrb[49].mxu0 }
0x2048   :  { %v4378_v53 = vpop.f32.mrb[50].mxu0 }
0x2049   :  { %v4383_v54 = vmul.f32 0.35355338, %v4378_v53  ;;  %v8015_v55 = vpop.f32.mrb[51].mxu0 }
0x204b   :  { %v4387_v56 = vsel %vm626_vm4, %v4383_v54, -inf }
0x204c   :  { %4388 = vmax.xlane.f32.xlu1 %v4387_v56 }
0x205d   :  { %4406 = vrot.lane.b32.xlu1 %v9927_v61, %s9084_s24 }
0x2061   :  { %4560 = vrot.lane.b32.xlu1 %v9927_v61, %s9085_s10 }
0x2065   :  { %4638 = vrot.lane.b32.xlu1 %v9933_v3, %s9085_s10 }
0x2069   :  { %4636 = vrot.lane.b32.xlu1 %v9933_v3, %s9086_s16 }
0x20c9   :  { %v4386_v57 = vpop.xlane.xlu0 %4385 }
0x20ca   :  { %v4390_v58 = vsub.f32 %v4382_v31, %v4386_v57 }
0x20cc   :  { %v4392_v10 = vmul.f32 1.442695, %v4390_v58 }
0x20ce   :  { %8531 = vpow2.f32 %v4392_v10 }
0x20d8   :  { %v8532_v49 = vpop.eup %8531 }
0x20d9   :  { %v4389_v29 = vpop.xlane.xlu1 %4388  ;;  %v4396_v51 = vsel %vm626_vm4, %v8532_v49, 0.0 }
0x20da   :  { %4397 = vadd.xlane.f32.xlu0 %v4396_v51  ;;  %v4391_v6 = vsub.f32 %v4383_v54, %v4389_v29 }
0x20dc   :  { %v4394_v7 = vmul.f32 1.442695, %v4391_v6 }
0x20dd   :  { %v4407_v2 = vpop.permute.xlu1 %4406 }
0x20de   :  { %8017 = vmatpush3.msra.mxu1 %v4407_v2  ;;  %8533 = vpow2.f32 %v4394_v7 }
0x20df   :  { %8026 = vmatprep.subr.mxu1 %v9079_v26 }
0x20e1   :  { %v4561_v14 = vpop.permute.xlu1 %4560 }
0x20e5   :  { %v4639_v19 = vpop.permute.xlu1 %4638 }
0x20e8   :  { %v8534_v40 = vpop.eup %8533 }
0x20e9   :  { %v4399_v8 = vsel %vm626_vm4, %v8534_v40, 0.0  ;;  %v4637_v60 = vpop.permute.xlu1 %4636 }
0x20f0   :  { %4482 = vrot.lane.b32.xlu0 %v9933_v3, %s9084_s24  ;;  %s3782_s24 = sld [smem:[#allocation7]] }
0x210f   :  { %4400 = vadd.xlane.f32.xlu0 %v4399_v8 }
0x2125   :  { %4558 = vrot.lane.b32.xlu0 %v9927_v61, %s9086_s16 }
0x2167   :  { %v4398_v9 = vpop.xlane.xlu0 %4397 }
0x2168   :  { %8535 = vrcp.f32 %v4398_v9 }
0x216b   :  { %v4483_v11 = vpop.permute.xlu0 %4482 }
0x216c   :  { %8022 = vmatpush3.msra.mxu0 %v4483_v11 }
0x216d   :  { %8031 = vmatprep.subr.mxu0 %v9079_v26 }
0x2172   :  { %v8536_v12 = vpop.eup %8535 }
0x2173   :  { %v4403_v13 = vmul.f32 %v8536_v12, %v8532_v49 }
0x2175   :  { %8019 = vmatmul.mubr.msk.f32.vlgmr.msra.gmra.mrb[42].mxu1 %vm626_vm4, %v4403_v13 }
0x2176   :  { %8027 = vmatpush3.xpose.msk.msra.mxu1 %vm626_vm4, %v4561_v14  ;;  %8028 = vmatprep.mubr.msk.f32.mxu1 %vm9080_vm3, %v9079_v26 }
0x2177   :  { %8036 = vmatprep.subr.mxu1 %v9079_v26 }
0x219c   :  { %v4401_v17 = vpop.xlane.xlu0 %4400 }
0x219d   :  { %8537 = vrcp.f32 %v4401_v17 }
0x21a0   :  { %v4559_v44 = vpop.permute.xlu0 %4558 }
0x21a1   :  { %8029 = vmatmul.mubr.msk.f32.vlgmr.msra.gmra.mrb[44].mxu1 %vm626_vm4, %v4559_v44 }
0x21a2   :  { %8038 = vmatprep.mubr.msk.f32.mxu1 %vm9080_vm3, %v9079_v26 }
0x21a7   :  { %v8538_v46 = vpop.eup %8537 }
0x21a8   :  { %v4405_v20 = vmul.f32 %v8538_v46, %v8534_v40 }
0x21aa   :  { %8024 = vmatmul.mubr.msk.f32.vlgmr.msra.gmra.mrb[52].mxu0 %vm626_vm4, %v4405_v20 }
0x21ab   :  { %8032 = vmatpush3.xpose.msk.msra.mxu0 %vm626_vm4, %v4639_v19  ;;  %8033 = vmatprep.mubr.msk.f32.mxu0 %vm9080_vm3, %v9079_v26 }
0x21ac   :  { %8041 = vmatprep.subr.mxu0 %v9079_v26 }
0x21ae   :  { %8034 = vmatmul.mubr.msk.f32.vlgmr.msra.gmra.mrb[54].mxu0 %vm626_vm4, %v4637_v60 }
0x21af   :  { %8043 = vmatprep.mubr.msk.f32.mxu0 %vm9080_vm3, %v9079_v26 }
0x2248   :  { %v10023_v62 = vpop.f32.mrb[42].mxu1 }
0x2249   :  { %v8020_v21 = vpop.f32.mrb[43].mxu1 }
0x2274   :  { %v4632_v36 = vpop.f32.mrb[44].mxu1 }
0x2275   :  { %v4714_v35 = vmul.f32 0.35355338, %v4632_v36  ;;  %v8030_v33 = vpop.f32.mrb[45].mxu1 }
0x2277   :  { %v4716_v22 = vsel %vm626_vm4, %v4714_v35, -inf }
0x2278   :  { %4717 = vmax.xlane.f32.xlu0 %v4716_v22 }
0x227d   :  { %v10026_v1 = vpop.f32.mrb[52].mxu0 }
0x227e   :  { %v8025_v45 = vpop.f32.mrb[53].mxu0 }
0x2281   :  { %v4710_v23 = vpop.f32.mrb[54].mxu0 }
0x2282   :  { %v4715_v37 = vmul.f32 0.35355338, %v4710_v23  ;;  %v8035_v47 = vpop.f32.mrb[55].mxu0 }
0x2284   :  { %v4719_v43 = vsel %vm626_vm4, %v4715_v37, -inf }
0x2285   :  { %4720 = vmax.xlane.f32.xlu1 %v4719_v43  ;;  %v3810_v43 = vrot.slane %v9923_v18, %v9664_v5 }
0x2296   :  { %4738 = vrot.lane.b32.xlu1 %v9927_v61, %s9087_s1 }
0x229a   :  { %4892 = vrot.lane.b32.xlu1 %v9927_v61, %s9088_s18 }
0x229e   :  { %4970 = vrot.lane.b32.xlu1 %v9933_v3, %s9088_s18 }
0x22a2   :  { %4968 = vrot.lane.b32.xlu1 %v9933_v3, %s9089_s30 }
0x2305   :  { %v4718_v15 = vpop.xlane.xlu0 %4717 }
0x2306   :  { %v4722_v24 = vsub.f32 %v4714_v35, %v4718_v15 }
0x2308   :  { %v4724_v25 = vmul.f32 1.442695, %v4722_v24 }
0x230a   :  { %8539 = vpow2.f32 %v4724_v25  ;;  %v10081_v25 = vadd.f32 %v9929_v0, %v3810_v43 }
0x2312   :  { %v4721_v27 = vpop.xlane.xlu1 %4720 }
0x2313   :  { %v4723_v63 = vsub.f32 %v4715_v37, %v4721_v27 }
0x2314   :  { %v8540_v28 = vpop.eup %8539 }
0x2315   :  { %v4728_v30 = vsel %vm626_vm4, %v8540_v28, 0.0  ;;  %v4726_v32 = vmul.f32 1.442695, %v4723_v63 }
0x2316   :  { %4729 = vadd.xlane.f32.xlu0 %v4728_v30  ;;  %v4739_v31 = vpop.permute.xlu1 %4738 }
0x2317   :  { %8037 = vmatpush3.msra.mxu1 %v4739_v31  ;;  %8541 = vpow2.f32 %v4726_v32  ;;  %v10094_v31 = vadd.f32 %v9935_v4, %v3810_v43 }
0x2318   :  { %8046 = vmatprep.subr.mxu1 %v9079_v26 }
0x231a   :  { %v4893_v57 = vpop.permute.xlu1 %4892 }
0x231e   :  { %v4971_v29 = vpop.permute.xlu1 %4970 }
0x2321   :  { %v8542_v41 = vpop.eup %8541 }
0x2322   :  { %v4731_v48 = vsel %vm626_vm4, %v8542_v41, 0.0  ;;  %v4969_v2 = vpop.permute.xlu1 %4968 }
0x232c   :  { %4814 = vrot.lane.b32.xlu0 %v9933_v3, %s9087_s1 }
0x234b   :  { %4732 = vadd.xlane.f32.xlu0 %v4731_v48 }
0x2361   :  { %4890 = vrot.lane.b32.xlu0 %v9927_v61, %s9089_s30 }
0x23a3   :  { %v4730_v53 = vpop.xlane.xlu0 %4729 }
0x23a4   :  { %8543 = vrcp.f32 %v4730_v53 }
0x23a7   :  { %v4815_v54 = vpop.permute.xlu0 %4814 }
0x23a8   :  { %8042 = vmatpush3.msra.mxu0 %v4815_v54 }
0x23a9   :  { %8051 = vmatprep.subr.mxu0 %v9079_v26 }
0x23ae   :  { %v8544_v55 = vpop.eup %8543 }
0x23af   :  { %v4735_v56 = vmul.f32 %v8544_v55, %v8540_v28 }
0x23b1   :  { %8039 = vmatmul.mubr.msk.f32.vlgmr.msra.gmra.mrb[46].mxu1 %vm626_vm4, %v4735_v56 }
0x23b2   :  { %8047 = vmatpush3.xpose.msk.msra.mxu1 %vm626_vm4, %v4893_v57  ;;  %8048 = vmatprep.mubr.msk.f32.mxu1 %vm9080_vm3, %v9079_v26 }
0x23b3   :  { %8056 = vmatprep.subr.mxu1 %v9079_v26 }
0x23d8   :  { %v4733_v58 = vpop.xlane.xlu0 %4732 }
0x23d9   :  { %8545 = vrcp.f32 %v4733_v58 }
0x23dc   :  { %v4891_v10 = vpop.permute.xlu0 %4890 }
0x23dd   :  { %8049 = vmatmul.mubr.msk.f32.vlgmr.msra.gmra.mrb[48].mxu1 %vm626_vm4, %v4891_v10 }
0x23de   :  { %8058 = vmatprep.mubr.msk.f32.mxu1 %vm9080_vm3, %v9079_v26 }
0x23e3   :  { %v8546_v49 = vpop.eup %8545 }
0x23e4   :  { %v4737_v51 = vmul.f32 %v8546_v49, %v8542_v41 }
0x23e6   :  { %8044 = vmatmul.mubr.msk.f32.vlgmr.msra.gmra.mrb[56].mxu0 %vm626_vm4, %v4737_v51 }
0x23e7   :  { %8052 = vmatpush3.xpose.msk.msra.mxu0 %vm626_vm4, %v4971_v29  ;;  %8053 = vmatprep.mubr.msk.f32.mxu0 %vm9080_vm3, %v9079_v26 }
0x23e8   :  { %8061 = vmatprep.subr.mxu0 %v9079_v26 }
0x23ea   :  { %8054 = vmatmul.mubr.msk.f32.vlgmr.msra.gmra.mrb[58].mxu0 %vm626_vm4, %v4969_v2 }
0x23eb   :  { %8063 = vmatprep.mubr.msk.f32.mxu0 %vm9080_vm3, %v9079_v26 }
0x2484   :  { %v10061_v6 = vpop.f32.mrb[46].mxu1 }
0x2485   :  { %v8040_v7 = vpop.f32.mrb[47].mxu1 }
0x24b0   :  { %v4964_v40 = vpop.f32.mrb[48].mxu1 }
0x24b1   :  { %v5046_v8 = vmul.f32 0.35355338, %v4964_v40  ;;  %v8050_v9 = vpop.f32.mrb[49].mxu1 }
0x24b3   :  { %v5048_v11 = vsel %vm626_vm4, %v5046_v8, -inf }
0x24b4   :  { %5049 = vmax.xlane.f32.xlu0 %v5048_v11 }
0x24b9   :  { %v10064_v12 = vpop.f32.mrb[56].mxu0 }
0x24ba   :  { %v8045_v13 = vpop.f32.mrb[57].mxu0 }
0x24bd   :  { %v5042_v14 = vpop.f32.mrb[58].mxu0 }
0x24be   :  { %v5047_v17 = vmul.f32 0.35355338, %v5042_v14  ;;  %v8055_v44 = vpop.f32.mrb[59].mxu0 }
0x24c0   :  { %v5051_v46 = vsel %vm626_vm4, %v5047_v17, -inf }
0x24c1   :  { %5052 = vmax.xlane.f32.xlu1 %v5051_v46 }
0x24d2   :  { %5070 = vrot.lane.b32.xlu1 %v9927_v61, %s9090_s26 }
0x24d6   :  { %5252 = vrot.lane.b32.xlu1 %v9927_v61, %s9071_s29 }
0x24da   :  { %5329 = vrot.lane.b32.xlu1 %v9933_v3, %s9071_s29 }
0x2541   :  { %v5050_v19 = vpop.xlane.xlu0 %5049 }
0x2542   :  { %v5054_v20 = vsub.f32 %v5046_v8, %v5050_v19 }
0x2544   :  { %v5056_v60 = vmul.f32 1.442695, %v5054_v20 }
0x2546   :  { %8547 = vpow2.f32 %v5056_v60 }
0x254e   :  { %v5053_v21 = vpop.xlane.xlu1 %5052 }
0x254f   :  { %v5055_v36 = vsub.f32 %v5047_v17, %v5053_v21 }
0x2550   :  { %v8548_v35 = vpop.eup %8547 }
0x2551   :  { %v5058_v33 = vmul.f32 1.442695, %v5055_v36  ;;  %v5060_v22 = vsel %vm626_vm4, %v8548_v35, 0.0 }
0x2552   :  { %5061 = vadd.xlane.f32.xlu0 %v5060_v22  ;;  %v5071_v45 = vpop.permute.xlu1 %5070 }
0x2553   :  { %8549 = vpow2.f32 %v5058_v33  ;;  %8057 = vmatpush3.msra.mxu1 %v5071_v45 }
0x2554   :  { %8066 = vmatprep.subr.mxu1 %v9079_v26 }
0x2556   :  { %v5253_v28 = vpop.permute.xlu1 %5252 }
0x255a   :  { %v5330_v63 = vpop.permute.xlu1 %5329 }
0x255d   :  { %v8550_v23 = vpop.eup %8549 }
0x255e   :  { %v5063_v37 = vsel %vm626_vm4, %v8550_v23, 0.0 }
0x255f   :  { %5064 = vadd.xlane.f32.xlu0 %v5063_v37 }
0x2575   :  { %5146 = vrot.lane.b32.xlu0 %v9933_v3, %s9090_s26 }
0x25df   :  { %v5062_v47 = vpop.xlane.xlu0 %5061 }
0x25e0   :  { %8551 = vrcp.f32 %v5062_v47 }
0x25ea   :  { %v8552_v15 = vpop.eup %8551 }
0x25eb   :  { %v5067_v24 = vmul.f32 %v8552_v15, %v8548_v35 }
0x25ec   :  { %v5065_v27 = vpop.xlane.xlu0 %5064 }
0x25ed   :  { %8553 = vrcp.f32 %v5065_v27  ;;  %8059 = vmatmul.mubr.msk.f32.vlgmr.msra.gmra.mrb[50].mxu1 %vm626_vm4, %v5067_v24 }
0x25ee   :  { %8067 = vmatpush3.xpose.msk.msra.mxu1 %vm626_vm4, %v10081_v25  ;;  %8068 = vmatprep.mubr.msk.f32.mxu1 %vm9080_vm3, %v9079_v26 }
0x25ef   :  { %8076 = vmatprep.subr.mxu1 %v9079_v26 }
0x25f0   :  { %v5147_v30 = vpop.permute.xlu0 %5146 }
0x25f1   :  { %8062 = vmatpush3.msra.mxu0 %v5147_v30  ;;  %8069 = vmatmul.mubr.msk.f32.vlgmr.msra.gmra.mrb[52].mxu1 %vm626_vm4, %v5253_v28 }
0x25f2   :  { %8071 = vmatprep.subr.mxu0 %v9079_v26  ;;  %8078 = vmatprep.mubr.msk.f32.mxu1 %vm9080_vm3, %v9079_v26 }
0x25f7   :  { %v8554_v18 = vpop.eup %8553 }
0x25f8   :  { %v5069_v0 = vmul.f32 %v8554_v18, %v8550_v23 }
0x25fa   :  { %8064 = vmatmul.mubr.msk.f32.vlgmr.msra.gmra.mrb[60].mxu0 %vm626_vm4, %v5069_v0 }
0x25fb   :  { %8072 = vmatpush3.xpose.msk.msra.mxu0 %vm626_vm4, %v10094_v31  ;;  %8073 = vmatprep.mubr.msk.f32.mxu0 %vm9080_vm3, %v9079_v26 }
0x25fc   :  { %8081 = vmatprep.subr.mxu0 %v9079_v26 }
0x25fe   :  { %8074 = vmatmul.mubr.msk.f32.vlgmr.msra.gmra.mrb[62].mxu0 %vm626_vm4, %v5330_v63 }
0x25ff   :  { %8083 = vmatprep.mubr.msk.f32.mxu0 %vm9080_vm3, %v9079_v26 }
0x26c0   :  { %v10105_v32 = vpop.f32.mrb[50].mxu1 }
0x26c1   :  { %v8060_v4 = vpop.f32.mrb[51].mxu1 }
0x26c4   :  { %v5325_v41 = vpop.f32.mrb[52].mxu1 }
0x26c5   :  { %v5406_v48 = vmul.f32 0.35355338, %v5325_v41  ;;  %v8070_v53 = vpop.f32.mrb[53].mxu1 }
0x26c7   :  { %v5408_v54 = vsel %vm626_vm4, %v5406_v48, -inf }
0x26c8   :  { %5409 = vmax.xlane.f32.xlu0 %v5408_v54 }
0x26cd   :  { %v10108_v55 = vpop.f32.mrb[60].mxu0 }
0x26ce   :  { %v8065_v56 = vpop.f32.mrb[61].mxu0 }
0x26d1   :  { %v5402_v57 = vpop.f32.mrb[62].mxu0 }
0x26d2   :  { %v5407_v58 = vmul.f32 0.35355338, %v5402_v57  ;;  %v8075_v10 = vpop.f32.mrb[63].mxu0 }
0x26d4   :  { %v5411_v49 = vsel %vm626_vm4, %v5407_v58, -inf }
0x26d5   :  { %5412 = vmax.xlane.f32.xlu1 %v5411_v49 }
0x26e6   :  { %5430 = vrot.lane.b32.xlu1 %v10081_v25, %s9081_s2 }
0x26ea   :  { %5584 = vrot.lane.b32.xlu1 %v10081_v25, %s9083_s12 }
0x26ee   :  { %5662 = vrot.lane.b32.xlu1 %v10094_v31, %s9083_s12 }
0x26f2   :  { %5660 = vrot.lane.b32.xlu1 %v9933_v3, %s9091_s15 }
0x2755   :  { %v5410_v29 = vpop.xlane.xlu0 %5409 }
0x2756   :  { %v5414_v51 = vsub.f32 %v5406_v48, %v5410_v29 }
0x2758   :  { %v5416_v2 = vmul.f32 1.442695, %v5414_v51 }
0x275a   :  { %8555 = vpow2.f32 %v5416_v2 }
0x2762   :  { %v5413_v7 = vpop.xlane.xlu1 %5412 }
0x2763   :  { %v5415_v11 = vsub.f32 %v5407_v58, %v5413_v7 }
0x2764   :  { %v8556_v40 = vpop.eup %8555 }
0x2765   :  { %v5420_v8 = vsel %vm626_vm4, %v8556_v40, 0.0  ;;  %v5418_v13 = vmul.f32 1.442695, %v5415_v11 }
0x2766   :  { %5421 = vadd.xlane.f32.xlu0 %v5420_v8  ;;  %v5431_v9 = vpop.permute.xlu1 %5430 }
0x2767   :  { %8077 = vmatpush3.msra.mxu1 %v5431_v9  ;;  %8557 = vpow2.f32 %v5418_v13 }
0x2768   :  { %8086 = vmatprep.subr.mxu1 %v9079_v26 }
0x276a   :  { %v5585_v60 = vpop.permute.xlu1 %5584 }
0x276e   :  { %v5663_v33 = vpop.permute.xlu1 %5662 }
0x2771   :  { %v8558_v14 = vpop.eup %8557 }
0x2772   :  { %v5423_v17 = vsel %vm626_vm4, %v8558_v14, 0.0  ;;  %v5661_v45 = vpop.permute.xlu1 %5660 }
0x277c   :  { %5506 = vrot.lane.b32.xlu0 %v10094_v31, %s9081_s2 }
0x279b   :  { %5424 = vadd.xlane.f32.xlu0 %v5423_v17 }
0x27b1   :  { %5582 = vrot.lane.b32.xlu0 %v9927_v61, %s9091_s15 }
0x27f3   :  { %v5422_v44 = vpop.xlane.xlu0 %5421 }
0x27f4   :  { %8559 = vrcp.f32 %v5422_v44 }
0x27f7   :  { %v5507_v46 = vpop.permute.xlu0 %5506 }
0x27f8   :  { %8082 = vmatpush3.msra.mxu0 %v5507_v46 }
0x27f9   :  { %8091 = vmatprep.subr.mxu0 %v9079_v26 }
0x27fe   :  { %v8560_v19 = vpop.eup %8559 }
0x27ff   :  { %v5427_v20 = vmul.f32 %v8560_v19, %v8556_v40 }
0x2801   :  { %8079 = vmatmul.mubr.msk.f32.vlgmr.msra.gmra.mrb[54].mxu1 %vm626_vm4, %v5427_v20 }
0x2802   :  { %8087 = vmatpush3.xpose.msk.msra.mxu1 %vm626_vm4, %v5585_v60  ;;  %8088 = vmatprep.mubr.msk.f32.mxu1 %vm9080_vm3, %v9079_v26 }
0x2803   :  { %8096 = vmatprep.subr.mxu1 %v9079_v26 }
0x2828   :  { %v5425_v21 = vpop.xlane.xlu0 %5424 }
0x2829   :  { %8561 = vrcp.f32 %v5425_v21 }
0x282c   :  { %v5583_v36 = vpop.permute.xlu0 %5582 }
0x282d   :  { %8089 = vmatmul.mubr.msk.f32.vlgmr.msra.gmra.mrb[56].mxu1 %vm626_vm4, %v5583_v36 }
0x282e   :  { %8098 = vmatprep.mubr.msk.f32.mxu1 %vm9080_vm3, %v9079_v26 }
0x2833   :  { %v8562_v35 = vpop.eup %8561 }
0x2834   :  { %v5429_v22 = vmul.f32 %v8562_v35, %v8558_v14 }
0x2836   :  { %8084 = vmatmul.mubr.msk.f32.vlgmr.msra.gmra.mrb[64].mxu0 %vm626_vm4, %v5429_v22 }
0x2837   :  { %8092 = vmatpush3.xpose.msk.msra.mxu0 %vm626_vm4, %v5663_v33  ;;  %8093 = vmatprep.mubr.msk.f32.mxu0 %vm9080_vm3, %v9079_v26 }
0x2838   :  { %8101 = vmatprep.subr.mxu0 %v9079_v26 }
0x283a   :  { %8094 = vmatmul.mubr.msk.f32.vlgmr.msra.gmra.mrb[66].mxu0 %vm626_vm4, %v5661_v45 }
0x283b   :  { %8103 = vmatprep.mubr.msk.f32.mxu0 %vm9080_vm3, %v9079_v26 }
0x28d4   :  { %v10143_v23 = vpop.f32.mrb[54].mxu1 }
0x28d5   :  { %v8080_v37 = vpop.f32.mrb[55].mxu1 }
0x2900   :  { %v5656_v47 = vpop.f32.mrb[56].mxu1 }
0x2901   :  { %v5738_v43 = vmul.f32 0.35355338, %v5656_v47  ;;  %v8090_v15 = vpop.f32.mrb[57].mxu1 }
0x2903   :  { %v5740_v24 = vsel %vm626_vm4, %v5738_v43, -inf }
0x2904   :  { %5741 = vmax.xlane.f32.xlu0 %v5740_v24 }
0x2909   :  { %v10146_v27 = vpop.f32.mrb[64].mxu0 }
0x290a   :  { %v8085_v28 = vpop.f32.mrb[65].mxu0 }
0x290d   :  { %v5734_v30 = vpop.f32.mrb[66].mxu0 }
0x290e   :  { %v5739_v18 = vmul.f32 0.35355338, %v5734_v30  ;;  %v8095_v0 = vpop.f32.mrb[67].mxu0 }
0x2910   :  { %v5743_v63 = vsel %vm626_vm4, %v5739_v18, -inf }
0x2911   :  { %5744 = vmax.xlane.f32.xlu1 %v5743_v63 }
0x2922   :  { %5762 = vrot.lane.b32.xlu1 %v10081_v25, %s9082_s17 }
0x2926   :  { %5916 = vrot.lane.b32.xlu1 %v10081_v25, %s9086_s16 }
0x292a   :  { %5994 = vrot.lane.b32.xlu1 %v10094_v31, %s9086_s16 }
0x292e   :  { %5992 = vrot.lane.b32.xlu1 %v9933_v3, %s10409_s0 }
0x2991   :  { %v5742_v4 = vpop.xlane.xlu0 %5741 }
0x2992   :  { %v5746_v41 = vsub.f32 %v5738_v43, %v5742_v4 }
0x2994   :  { %v5748_v48 = vmul.f32 1.442695, %v5746_v41 }
0x2996   :  { %8563 = vpow2.f32 %v5748_v48 }
0x299e   :  { %v5745_v53 = vpop.xlane.xlu1 %5744 }
0x299f   :  { %v5747_v58 = vsub.f32 %v5739_v18, %v5745_v53 }
0x29a0   :  { %v8564_v54 = vpop.eup %8563 }
0x29a1   :  { %v5752_v56 = vsel %vm626_vm4, %v8564_v54, 0.0  ;;  %v5750_v10 = vmul.f32 1.442695, %v5747_v58 }
0x29a2   :  { %5753 = vadd.xlane.f32.xlu0 %v5752_v56  ;;  %v5763_v57 = vpop.permute.xlu1 %5762 }
0x29a3   :  { %8097 = vmatpush3.msra.mxu1 %v5763_v57  ;;  %8565 = vpow2.f32 %v5750_v10 }
0x29a4   :  { %8106 = vmatprep.subr.mxu1 %v9079_v26 }
0x29a6   :  { %v5917_v8 = vpop.permute.xlu1 %5916 }
0x29aa   :  { %v5995_v14 = vpop.permute.xlu1 %5994 }
0x29ad   :  { %v8566_v49 = vpop.eup %8565 }
0x29ae   :  { %v5755_v29 = vsel %vm626_vm4, %v8566_v49, 0.0  ;;  %v5993_v44 = vpop.permute.xlu1 %5992 }
0x29b8   :  { %5838 = vrot.lane.b32.xlu0 %v10094_v31, %s9082_s17 }
0x29d7   :  { %5756 = vadd.xlane.f32.xlu0 %v5755_v29 }
0x29ed   :  { %5914 = vrot.lane.b32.xlu0 %v9927_v61, %s10409_s0 }
0x2a2f   :  { %v5754_v51 = vpop.xlane.xlu0 %5753 }
0x2a30   :  { %8567 = vrcp.f32 %v5754_v51 }
0x2a33   :  { %v5839_v2 = vpop.permute.xlu0 %5838 }
0x2a34   :  { %8102 = vmatpush3.msra.mxu0 %v5839_v2 }
0x2a35   :  { %8111 = vmatprep.subr.mxu0 %v9079_v26 }
0x2a3a   :  { %v8568_v7 = vpop.eup %8567 }
0x2a3b   :  { %v5759_v40 = vmul.f32 %v8568_v7, %v8564_v54 }
0x2a3d   :  { %8099 = vmatmul.mubr.msk.f32.vlgmr.msra.gmra.mrb[58].mxu1 %vm626_vm4, %v5759_v40 }
0x2a3e   :  { %8107 = vmatpush3.xpose.msk.msra.mxu1 %vm626_vm4, %v5917_v8  ;;  %8108 = vmatprep.mubr.msk.f32.mxu1 %vm9080_vm3, %v9079_v26 }
0x2a3f   :  { %8116 = vmatprep.subr.mxu1 %v9079_v26 }
0x2a64   :  { %v5757_v9 = vpop.xlane.xlu0 %5756 }
0x2a65   :  { %8569 = vrcp.f32 %v5757_v9 }
0x2a68   :  { %v5915_v11 = vpop.permute.xlu0 %5914 }
0x2a69   :  { %8109 = vmatmul.mubr.msk.f32.vlgmr.msra.gmra.mrb[60].mxu1 %vm626_vm4, %v5915_v11 }
0x2a6a   :  { %8118 = vmatprep.mubr.msk.f32.mxu1 %vm9080_vm3, %v9079_v26 }
0x2a6f   :  { %v8570_v13 = vpop.eup %8569 }
0x2a70   :  { %v5761_v17 = vmul.f32 %v8570_v13, %v8566_v49 }
0x2a72   :  { %8104 = vmatmul.mubr.msk.f32.vlgmr.msra.gmra.mrb[68].mxu0 %vm626_vm4, %v5761_v17 }
0x2a73   :  { %8112 = vmatpush3.xpose.msk.msra.mxu0 %vm626_vm4, %v5995_v14  ;;  %8113 = vmatprep.mubr.msk.f32.mxu0 %vm9080_vm3, %v9079_v26 }
0x2a74   :  { %8121 = vmatprep.subr.mxu0 %v9079_v26 }
0x2a76   :  { %8114 = vmatmul.mubr.msk.f32.vlgmr.msra.gmra.mrb[70].mxu0 %vm626_vm4, %v5993_v44 }
0x2a77   :  { %8123 = vmatprep.mubr.msk.f32.mxu0 %vm9080_vm3, %v9079_v26 }
0x2b10   :  { %v10181_v46 = vpop.f32.mrb[58].mxu1 }
0x2b11   :  { %v8100_v19 = vpop.f32.mrb[59].mxu1 }
0x2b3c   :  { %v5988_v20 = vpop.f32.mrb[60].mxu1 }
0x2b3d   :  { %v6070_v60 = vmul.f32 0.35355338, %v5988_v20  ;;  %v8110_v21 = vpop.f32.mrb[61].mxu1 }
0x2b3f   :  { %v6072_v36 = vsel %vm626_vm4, %v6070_v60, -inf }
0x2b40   :  { %6073 = vmax.xlane.f32.xlu0 %v6072_v36 }
0x2b45   :  { %v10184_v35 = vpop.f32.mrb[68].mxu0 }
0x2b46   :  { %v8105_v33 = vpop.f32.mrb[69].mxu0 }
0x2b49   :  { %v6066_v22 = vpop.f32.mrb[70].mxu0 }
0x2b4a   :  { %v6071_v45 = vmul.f32 0.35355338, %v6066_v22  ;;  %v8115_v37 = vpop.f32.mrb[71].mxu0 }
0x2b4c   :  { %v6075_v47 = vsel %vm626_vm4, %v6071_v45, -inf }
0x2b4d   :  { %6076 = vmax.xlane.f32.xlu1 %v6075_v47 }
0x2b5e   :  { %6094 = vrot.lane.b32.xlu1 %v10081_v25, %s9085_s10 }
0x2b62   :  { %6248 = vrot.lane.b32.xlu1 %v10081_v25, %s9089_s30 }
0x2b66   :  { %6326 = vrot.lane.b32.xlu1 %v10094_v31, %s9089_s30 }
0x2b6a   :  { %6324 = vrot.lane.b32.xlu1 %v9933_v3, %s9059_s28 }
0x2bcd   :  { %v6074_v43 = vpop.xlane.xlu0 %6073 }
0x2bce   :  { %v6078_v15 = vsub.f32 %v6070_v60, %v6074_v43 }
0x2bd0   :  { %v6080_v24 = vmul.f32 1.442695, %v6078_v15 }
0x2bd2   :  { %8571 = vpow2.f32 %v6080_v24 }
0x2bda   :  { %v6077_v28 = vpop.xlane.xlu1 %6076 }
0x2bdb   :  { %v6079_v63 = vsub.f32 %v6071_v45, %v6077_v28 }
0x2bdc   :  { %v8572_v30 = vpop.eup %8571 }
0x2bdd   :  { %v6084_v18 = vsel %vm626_vm4, %v8572_v30, 0.0  ;;  %v6082_v4 = vmul.f32 1.442695, %v6079_v63 }
0x2bde   :  { %6085 = vadd.xlane.f32.xlu0 %v6084_v18  ;;  %v6095_v0 = vpop.permute.xlu1 %6094 }
0x2bdf   :  { %8117 = vmatpush3.msra.mxu1 %v6095_v0  ;;  %8573 = vpow2.f32 %v6082_v4 }
0x2be0   :  { %8126 = vmatprep.subr.mxu1 %v9079_v26 }
0x2be2   :  { %v6249_v57 = vpop.permute.xlu1 %6248 }
0x2be6   :  { %v6327_v49 = vpop.permute.xlu1 %6326 }
0x2be9   :  { %v8574_v3 = vpop.eup %8573 }
0x2bea   :  { %v6087_v41 = vsel %vm626_vm4, %v8574_v3, 0.0  ;;  %v6325_v51 = vpop.permute.xlu1 %6324 }
0x2bf4   :  { %6170 = vrot.lane.b32.xlu0 %v10094_v31, %s9085_s10 }
0x2c13   :  { %6088 = vadd.xlane.f32.xlu0 %v6087_v41  ;;  %v6626_v41 = vld [vmem:[#allocation19 + $0x40] sm:$0xff] }
0x2c29   :  { %6246 = vrot.lane.b32.xlu0 %v9927_v61, %s9059_s28 }
0x2c6b   :  { %v6086_v48 = vpop.xlane.xlu0 %6085 }
0x2c6c   :  { %8575 = vrcp.f32 %v6086_v48  ;;  %v6627_v48 = vld [vmem:[#allocation19 + $0x48] sm:$0xff] }
0x2c6f   :  { %v6171_v53 = vpop.permute.xlu0 %6170 }
0x2c70   :  { %8122 = vmatpush3.msra.mxu0 %v6171_v53  ;;  %v8324_v53 = vpack.c.bf16 %v6627_v48, %v6626_v41 }
0x2c71   :  { %8131 = vmatprep.subr.mxu0 %v9079_v26 }
0x2c76   :  { %v8576_v54 = vpop.eup %8575 }
0x2c77   :  { %v6091_v56 = vmul.f32 %v8576_v54, %v8572_v30  ;;  %v6630_v54 = vld [vmem:[#allocation19 + $0x60] sm:$0xff] }
0x2c79   :  { %8119 = vmatmul.mubr.msk.f32.vlgmr.msra.gmra.mrb[62].mxu1 %vm626_vm4, %v6091_v56  ;;  %v6631_v56 = vld [vmem:[#allocation19 + $0x68] sm:$0xff] }
0x2c7a   :  { %8127 = vmatpush3.xpose.msk.msra.mxu1 %vm626_vm4, %v6249_v57  ;;  %8128 = vmatprep.mubr.msk.f32.mxu1 %vm9080_vm3, %v9079_v26  ;;  %v8332_v57 = vpack.c.bf16 %v6631_v56, %v6630_v54 }
0x2c7b   :  { %8136 = vmatprep.subr.mxu1 %v9079_v26 }
0x2ca0   :  { %v6089_v58 = vpop.xlane.xlu0 %6088 }
0x2ca1   :  { %8577 = vrcp.f32 %v6089_v58  ;;  %v6632_v58 = vld [vmem:[#allocation19 + $0x70] sm:$0xff] }
0x2ca4   :  { %v6247_v61 = vpop.permute.xlu0 %6246 }
0x2ca5   :  { %8129 = vmatmul.mubr.msk.f32.vlgmr.msra.gmra.mrb[64].mxu1 %vm626_vm4, %v6247_v61  ;;  %v6633_v61 = vld [vmem:[#allocation19 + $0x78] sm:$0xff] }
0x2ca6   :  { %8138 = vmatprep.mubr.msk.f32.mxu1 %vm9080_vm3, %v9079_v26 }
0x2cab   :  { %v8578_v10 = vpop.eup %8577 }
0x2cac   :  { %v6093_v29 = vmul.f32 %v8578_v10, %v8574_v3 }
0x2cae   :  { %8124 = vmatmul.mubr.msk.f32.vlgmr.msra.gmra.mrb[72].mxu0 %vm626_vm4, %v6093_v29 }
0x2caf   :  { %8132 = vmatpush3.xpose.msk.msra.mxu0 %vm626_vm4, %v6327_v49  ;;  %8133 = vmatprep.mubr.msk.f32.mxu0 %vm9080_vm3, %v9079_v26 }
0x2cb0   :  { %8141 = vmatprep.subr.mxu0 %v9079_v26 }
0x2cb2   :  { %8134 = vmatmul.mubr.msk.f32.vlgmr.msra.gmra.mrb[74].mxu0 %vm626_vm4, %v6325_v51 }
0x2cb3   :  { %8143 = vmatprep.mubr.msk.f32.mxu0 %vm9080_vm3, %v9079_v26 }
0x2d4c   :  { %v6166_v2 = vpop.f32.mrb[62].mxu1 }
0x2d4d   :  { %v8120_v7 = vpop.f32.mrb[63].mxu1 }
0x2d78   :  { %v6320_v40 = vpop.f32.mrb[64].mxu1 }
0x2d79   :  { %v6402_v8 = vmul.f32 0.35355338, %v6320_v40  ;;  %v8130_v9 = vpop.f32.mrb[65].mxu1 }
0x2d7b   :  { %v6404_v11 = vsel %vm626_vm4, %v6402_v8, -inf }
0x2d7c   :  { %6405 = vmax.xlane.f32.xlu0 %v6404_v11 }
0x2d81   :  { %v6242_v13 = vpop.f32.mrb[72].mxu0 }
0x2d82   :  { %v8125_v14 = vpop.f32.mrb[73].mxu0 }
0x2d85   :  { %v6398_v17 = vpop.f32.mrb[74].mxu0 }
0x2d86   :  { %v6403_v44 = vmul.f32 0.35355338, %v6398_v17  ;;  %v8135_v19 = vpop.f32.mrb[75].mxu0 }
0x2d88   :  { %v6407_v20 = vsel %vm626_vm4, %v6403_v44, -inf }
0x2d89   :  { %6408 = vmax.xlane.f32.xlu1 %v6407_v20 }
0x2d9a   :  { %6426 = vrot.lane.b32.xlu1 %v10081_v25, %s9088_s18 }
0x2d9e   :  { %6580 = vrot.lane.b32.xlu1 %v10181_v46, %s9059_s28 }
0x2da2   :  { %6582 = vrot.lane.b32.xlu1 %v10184_v35, %s9059_s28 }
0x2da6   :  { %6590 = vrot.lane.b32.xlu1 %v6242_v13, %s10409_s0 }
0x2e09   :  { %v6406_v60 = vpop.xlane.xlu0 %6405 }
0x2e0a   :  { %v6410_v21 = vsub.f32 %v6402_v8, %v6406_v60 }
0x2e0c   :  { %v6412_v36 = vmul.f32 1.442695, %v6410_v21 }
0x2e0e   :  { %8579 = vpow2.f32 %v6412_v36  ;;  %v6608_v36 = vstv %s10249_s11 }
0x2e16   :  { %v6409_v33 = vpop.xlane.xlu1 %6408 }
0x2e17   :  { %v6411_v22 = vsub.f32 %v6403_v44, %v6409_v33 }
0x2e18   :  { %v8580_v45 = vpop.eup %8579 }
0x2e19   :  { %v6414_v37 = vmul.f32 1.442695, %v6411_v22  ;;  %v6416_v47 = vsel %vm626_vm4, %v8580_v45, 0.0 }
0x2e1a   :  { %6417 = vadd.xlane.f32.xlu0 %v6416_v47  ;;  %v6427_v25 = vpop.permute.xlu1 %6426 }
0x2e1b   :  { %8581 = vpow2.f32 %v6414_v37  ;;  %8137 = vmatpush3.msra.mxu1 %v6427_v25 }
0x2e1c   :  { %8325 = vmatprep.subr.bf16.mxu1 %v8324_v53 }
0x2e25   :  { %v8582_v46 = vpop.eup %8581 }
0x2e26   :  { %v6419_v43 = vsel %vm626_vm4, %v8582_v46, 0.0 }
0x2e27   :  { %6420 = vadd.xlane.f32.xlu0 %v6419_v43 }
0x2e3d   :  { %6502 = vrot.lane.b32.xlu0 %v10094_v31, %s9088_s18 }
0x2e41   :  { %6588 = vrot.lane.b32.xlu0 %v6166_v2, %s10409_s0 }
0x2ea7   :  { %v6418_v35 = vpop.xlane.xlu0 %6417 }
0x2ea8   :  { %8583 = vrcp.f32 %v6418_v35 }
0x2eb2   :  { %v8584_v15 = vpop.eup %8583 }
0x2eb3   :  { %v6423_v24 = vmul.f32 %v8584_v15, %v8580_v45 }
0x2eb4   :  { %v6421_v28 = vpop.xlane.xlu0 %6420 }
0x2eb5   :  { %8585 = vrcp.f32 %v6421_v28  ;;  %8139 = vmatmul.mubr.msk.f32.vlgmr.msra.gmra.mrb[66].mxu1 %vm626_vm4, %v6423_v24  ;;  %v3790_v24 = vld [vmem:[#allocation21 + $0x2] sm:$0x3] }
0x2eb6   :  { %8327 = vmatpush3.bf16.msra.mxu1 %v8324_v53  ;;  %v6634_v28 = vmul.f32 %v6608_v36, %v3790_v24 }
0x2eb8   :  { %v6503_v30 = vpop.permute.xlu0 %6502 }
0x2eb9   :  { %8142 = vmatpush3.msra.mxu0 %v6503_v30 }
0x2ebc   :  { %v6589_v10 = vpop.permute.xlu0 %6588 }
0x2ebf   :  { %v8586_v18 = vpop.eup %8585 }
0x2ec0   :  { %v6425_v0 = vmul.f32 %v8586_v18, %v8582_v46  ;;  %v6638_v18 = vrot.slane %v6634_v28, %v9506_v39 }
0x2ec2   :  { %8144 = vmatmul.mubr.msk.f32.vlgmr.msra.gmra.mrb[76].mxu0 %vm626_vm4, %v6425_v0 }
0x2f88   :  { %v6498_v63 = vpop.f32.mrb[66].mxu1 }
0x2f89   :  { %6596 = vrot.lane.b32.xlu0 %v6498_v63, %s9091_s15  ;;  %v8140_v31 = vpop.f32.mrb[67].mxu1 }
0x2f8d   :  { %5224 = vrot.lane.b32.xlu0 %v10023_v62, %s9059_s28  ;;  %v6628_v62 = vld [vmem:[#allocation19 + $0x50] sm:$0xff] }
0x2f91   :  { %5232 = vrot.lane.b32.xlu0 %v10061_v6, %s10409_s0  ;;  %v6629_v6 = vld [vmem:[#allocation19 + $0x58] sm:$0xff] }
0x2f95   :  { %5240 = vrot.lane.b32.xlu0 %v10105_v32, %s9091_s15  ;;  %v6574_v4 = vpop.f32.mrb[76].mxu0  ;;  %v8328_v32 = vpack.c.bf16 %v6629_v6, %v6628_v62 }
0x2f96   :  { %6598 = vrot.lane.b32.xlu1 %v6574_v4, %s9091_s15  ;;  %v8145_v3 = vpop.f32.mrb[77].mxu0 }
0x2f97   :  { %8329 = vmatprep.subr.bf16.mxu1 %v8328_v32 }
0x2f98   :  { %8331 = vmatpush3.bf16.msra.mxu1 %v8328_v32 }
0x2f99   :  { %8333 = vmatprep.subr.bf16.mxu1 %v8332_v57 }
0x2f9a   :  { %5226 = vrot.lane.b32.xlu1 %v10026_v1, %s9059_s28  ;;  %s6611_s28 = ssub.f32 1.0, %s10249_s11  ;;  %v6581_v1 = vpop.permute.xlu1 %6580 }
0x2f9c   :  { %v6612_v49 = vstv %s6611_s28  ;;  %8335 = vmatpush3.bf16.msra.mxu1 %v8332_v57 }
0x2f9d   :  { %v6720_v30 = vmul.f32 %v6612_v49, %v3790_v24  ;;  %v6923_v24 = vld [vmem:[#allocation25 + $0xb8] sm:$0xff] }
0x2f9e   :  { %5234 = vrot.lane.b32.xlu1 %v10064_v12, %s10409_s0  ;;  %v8336_v12 = vpack.c.bf16 %v6633_v61, %v6632_v58  ;;  %v6583_v40 = vpop.permute.xlu1 %6582 }
0x2f9f   :  { %v6603_v9 = vsel %vm626_vm4, %v10146_v27, %v6583_v40  ;;  %v6724_v0 = vrot.slane %v6720_v30, %v9664_v5  ;;  %v6924_v30 = vld [vmem:[#allocation25 + $0xc0] sm:$0xff] }
0x2fa0   :  { %8337 = vmatprep.subr.bf16.mxu1 %v8336_v12 }
0x2fa1   :  { %8339 = vmatpush3.bf16.msra.mxu1 %v8336_v12 }
0x2fa2   :  { %5242 = vrot.lane.b32.xlu1 %v10108_v55, %s9091_s15  ;;  %v6602_v55 = vsel %vm626_vm4, %v10143_v23, %v6581_v1  ;;  %v6591_v8 = vpop.permute.xlu1 %6590 }
0x2fa3   :  { %v6604_v29 = vsel %vm1976_vm6, %v6602_v55, %v6589_v10  ;;  %v6605_v23 = vsel %vm1976_vm6, %v6603_v9, %v6591_v8 }
0x2ffb   :  { %v6597_v51 = vpop.permute.xlu0 %6596 }
0x2ffc   :  { %v6606_v2 = vsel %vm1979_vm5, %v6604_v29, %v6597_v51  ;;  %v7503_v29 = vld [vmem:[%s10372_s14 + $0x28] sm:$0xff] }
0x2ffd   :  { %v6613_v7 = vmul.f32 %v6612_v49, %v6606_v2  ;;  %v7504_v2 = vld [vmem:[%s10372_s14 + $0x30] sm:$0xff] }
0x2fff   :  { %6617 = vrot.lane.b32.xlu0 %v6613_v7, %s9071_s29  ;;  %v5225_v17 = vpop.permute.xlu0 %5224  ;;  %v7505_v7 = vld [vmem:[%s10372_s14 + $0x38] sm:$0xff] }
0x3000   :  { %v5246_v20 = vsel %vm626_vm4, %v9986_v34, %v5225_v17  ;;  %v8344_v40 = vpack.c.bf16 %v7505_v7, %v7504_v2  ;;  %v10295_v17 = vld [vmem:[#allocation22 + $0x4] sm:$0xf] }
0x3003   :  { %v5233_v44 = vpop.permute.xlu0 %5232 }
0x3004   :  { %v5248_v21 = vsel %vm1976_vm6, %v5246_v20, %v5233_v44  ;;  %v6758_v44 = vrot.slane %v10295_v17, %v9506_v39  ;;  %v6916_v39 = vld [vmem:[#allocation25 + $0x80] sm:$0xff] }
0x3007   :  { %v5241_v19 = vpop.permute.xlu0 %5240 }
0x3008   :  { %v6599_v11 = vpop.permute.xlu1 %6598  ;;  %v5250_v27 = vsel %vm1979_vm5, %v5248_v21, %v5241_v19 }
0x3009   :  { %v6607_v13 = vsel %vm1979_vm5, %v6605_v23, %v6599_v11  ;;  %v6609_v33 = vmul.f32 %v6608_v36, %v5250_v27 }
0x300a   :  { %v6614_v14 = vmul.f32 %v6612_v49, %v6607_v13  ;;  %v7502_v49 = vld [vmem:[%s10372_s14 + $0x20] sm:$0xff]  ;;  %s7514_s14 = sld [smem:[#allocation7 + $0x1]] }
0x300b   :  { %v8340_v51 = vpack.c.bf16 %v7503_v29, %v7502_v49 }
0x300c   :  { %6619 = vrot.lane.b32.xlu1 %v6614_v14, %s9071_s29  ;;  %v5227_v60 = vpop.permute.xlu1 %5226 }
0x300d   :  { %v5247_v25 = vsel %vm626_vm4, %v9988_v42, %v5227_v60  ;;  %8341 = vmatprep.subr.bf16.mxu0 %v8340_v51  ;;  %v6764_v60 = vrot.slane %v10295_v17, %v9664_v5  ;;  %v6918_v5 = vld [vmem:[#allocation25 + $0x90] sm:$0xff] }
0x300e   :  { %8343 = vmatpush3.bf16.msra.mxu0 %v8340_v51 }
0x300f   :  { %8345 = vmatprep.subr.bf16.mxu0 %v8344_v40 }
0x3010   :  { %v5235_v22 = vpop.permute.xlu1 %5234 }
0x3011   :  { %v5249_v46 = vsel %vm1976_vm6, %v5247_v25, %v5235_v22  ;;  %v6919_v25 = vld [vmem:[#allocation25 + $0x98] sm:$0xff] }
0x3012   :  { %8347 = vmatpush3.bf16.msra.mxu0 %v8344_v40 }
0x3014   :  { %v5243_v47 = vpop.permute.xlu1 %5242 }
0x3015   :  { %v5251_v34 = vsel %vm1979_vm5, %v5249_v46, %v5243_v47  ;;  %v8352_v46 = vpack.c.bf16 %v6919_v25, %v6918_v5 }
0x3016   :  { %v6610_v43 = vmul.f32 %v6608_v36, %v5251_v34  ;;  %v6920_v34 = vld [vmem:[#allocation25 + $0xa0] sm:$0xff] }
0x3071   :  { %v6618_v45 = vpop.permute.xlu0 %6617 }
0x3072   :  { %v6623_v37 = vsel %vm429_vm2, %v6609_v33, %v6618_v45 }
0x3073   :  { %8162 = vmatprep.mubr.msk.f32.mxu1 %vm3368_vm7, %v6623_v37  ;;  %v6917_v37 = vld [vmem:[#allocation25 + $0x88] sm:$0xff] }
0x3074   :  { %v8348_v47 = vpack.c.bf16 %v6917_v37, %v6916_v39 }
0x3076   :  { %8349 = vmatprep.subr.bf16.mxu0 %v8348_v47 }
0x307e   :  { %v6620_v35 = vpop.permute.xlu1 %6619 }
0x307f   :  { %v6624_v15 = vsel %vm429_vm2, %v6610_v43, %v6620_v35  ;;  %v6921_v43 = vld [vmem:[#allocation25 + $0xa8] sm:$0xff] }
0x3080   :  { %8163 = vmatmul.mubr.msk.f32.vlgmr.msra.gmra.mrb[68].mxu1 %vm3368_vm7, %v6624_v15  ;;  %v8356_v35 = vpack.c.bf16 %v6921_v43, %v6920_v34  ;;  %v6922_v15 = vld [vmem:[#allocation25 + $0xb0] sm:$0xff] }
0x3081   :  { %v8360_v28 = vpack.c.bf16 %v6923_v24, %v6922_v15 }
0x3153   :  { %v8164_v63 = vpop.f32.mrb[68].mxu1 }
0x3154   :  { %v6717_v31 = vadd.f32 %v8164_v63, %v6638_v18  ;;  %v6711_v42 = vpop.f32.mrb[69].mxu1  ;;  %v6926_v63 = vld [vmem:[#allocation25 + $0xd0] sm:$0xff] }
0x3155   :  { %v6712_v4 = vadd.f32 %v6711_v42, %v6638_v18  ;;  %v6925_v18 = vld [vmem:[#allocation25 + $0xc8] sm:$0xff] }
0x3156   :  { %v6726_v3 = vadd.f32 %v6724_v0, %v6717_v31  ;;  %v6927_v31 = vld [vmem:[#allocation25 + $0xd8] sm:$0xff] }
0x3157   :  { %v6725_v41 = vadd.f32 %v6724_v0, %v6712_v4  ;;  %v8364_v0 = vpack.c.bf16 %v6925_v18, %v6924_v30  ;;  %v8368_v42 = vpack.c.bf16 %v6927_v31, %v6926_v63  ;;  %v6928_v4 = vld [vmem:[#allocation25 + $0xe0] sm:$0xff] }
0x3158   :  { %v6728_v48 = vadd.f32 %v6726_v3, %v9917_v59  ;;  %v6929_v3 = vld [vmem:[#allocation25 + $0xe8] sm:$0xff] }
0x3159   :  { %v6727_v53 = vadd.f32 %v6725_v41, %v9912_v16  ;;  %v8372_v41 = vpack.c.bf16 %v6929_v3, %v6928_v4 }
0x315a   :  { %v6732_v62 = vsel %vm429_vm2, %v6728_v48, 0.0 }
0x315b   :  { %6733 = vadd.xlane.f32.xlu1 %v6732_v62  ;;  %v6729_v6 = vsel %vm429_vm2, %v6727_v53, 0.0 }
0x315c   :  { %6730 = vadd.xlane.f32.xlu0 %v6729_v6  ;;  %v7506_v6 = vld [vmem:[#allocation24 + $0x1] ss:$0 sm:$0xff] }
0x31e8   :  { %v6734_v32 = vpop.xlane.xlu1 %6733 }
0x31e9   :  { %v6736_v54 = vmul.f32 0.03125, %v6734_v32  ;;  %v6731_v56 = vpop.xlane.xlu0 %6730 }
0x31ea   :  { %v6735_v57 = vmul.f32 0.03125, %v6731_v56 }
0x31eb   :  { %v6738_v58 = vsub.f32 %v6728_v48, %v6736_v54  ;;  %v6930_v48 = vld [vmem:[#allocation25 + $0xf0] sm:$0xff] }
0x31ec   :  { %v6737_v61 = vsub.f32 %v6727_v53, %v6735_v57  ;;  %v6931_v53 = vld [vmem:[#allocation25 + $0xf8] sm:$0xff] }
0x31ed   :  { %v6740_v12 = vmul.f32 %v6738_v58, %v6738_v58  ;;  %v8376_v62 = vpack.c.bf16 %v6931_v53, %v6930_v48 }
0x31ee   :  { %v6739_v1 = vmul.f32 %v6737_v61, %v6737_v61 }
0x31ef   :  { %v6744_v55 = vsel %vm429_vm2, %v6740_v12, 0.0 }
0x31f0   :  { %v6741_v10 = vsel %vm429_vm2, %v6739_v1, 0.0 }
0x31f1   :  { %6742 = vadd.xlane.f32.xlu0 %v6741_v10 }
0x31f5   :  { %6745 = vadd.xlane.f32.xlu0 %v6744_v55 }
0x327e   :  { %v6743_v8 = vpop.xlane.xlu0 %6742 }
0x327f   :  { %v6747_v9 = vmul.f32 0.03125, %v6743_v8 }
0x3281   :  { %v6749_v23 = vadd.f32 1e-05, %v6747_v9 }
0x3282   :  { %v6746_v11 = vpop.xlane.xlu0 %6745 }
0x3283   :  { %8587 = vrsqrt.f32 %v6749_v23  ;;  %v6748_v13 = vmul.f32 0.03125, %v6746_v11 }
0x3285   :  { %v6750_v14 = vadd.f32 1e-05, %v6748_v13 }
0x3287   :  { %8589 = vrsqrt.f32 %v6750_v14 }
0x328d   :  { %v8588_v19 = vpop.eup %8587 }
0x328e   :  { %v6753_v20 = vmul.f32 %v8588_v19, %v6737_v61 }
0x3290   :  { %v6759_v21 = vmul.f32 %v6758_v44, %v6753_v20 }
0x3291   :  { %v8590_v36 = vpop.eup %8589 }
0x3292   :  { %v6754_v27 = vmul.f32 %v8590_v36, %v6738_v58  ;;  %v10301_v33 = vadd.f32 %v6764_v60, %v6759_v21 }
0x3294   :  { %v6760_v22 = vmul.f32 %v6758_v44, %v6754_v27  ;;  %8173 = vmatprep.mubr.msk.f32.mxu0 %vm429_vm2, %v10301_v33 }
0x3296   :  { %v10305_v45 = vadd.f32 %v6764_v60, %v6760_v22 }
0x3298   :  { %8174 = vmatmul.mubr.msk.f32.vlgmr.msra.gmra.mrb[78].mxu0 %vm429_vm2, %v10305_v45 }
0x3299   :  { %8351 = vmatpush3.bf16.msra.mxu0 %v8348_v47 }
0x329a   :  { %8353 = vmatprep.subr.bf16.mxu0 %v8352_v46 }
0x329d   :  { %8355 = vmatpush3.bf16.msra.mxu0 %v8352_v46 }
0x329e   :  { %8357 = vmatprep.subr.bf16.mxu0 %v8356_v35 }
0x32a1   :  { %8359 = vmatpush3.bf16.msra.mxu0 %v8356_v35 }
0x32a2   :  { %8361 = vmatprep.subr.bf16.mxu0 %v8360_v28 }
0x32a5   :  { %8363 = vmatpush3.bf16.msra.mxu0 %v8360_v28 }
0x32a6   :  { %8365 = vmatprep.subr.bf16.mxu0 %v8364_v0 }
0x32a9   :  { %8367 = vmatpush3.bf16.msra.mxu0 %v8364_v0 }
0x32aa   :  { %8369 = vmatprep.subr.bf16.mxu0 %v8368_v42 }
0x32ad   :  { %8371 = vmatpush3.bf16.msra.mxu0 %v8368_v42 }
0x32ae   :  { %8373 = vmatprep.subr.bf16.mxu0 %v8372_v41 }
0x32b1   :  { %8375 = vmatpush3.bf16.msra.mxu0 %v8372_v41 }
0x32b2   :  { %8377 = vmatprep.subr.bf16.mxu0 %v8376_v62 }
0x32b5   :  { %8379 = vmatpush3.bf16.msra.mxu0 %v8376_v62 }
0x336b   :  { %v8175_v32 = vpop.f32.mrb[78].mxu0 }
0x336c   :  { %v6858_v54 = vadd.f32 %v8175_v32, %v7506_v6  ;;  %v6852_v56 = vpop.f32.mrb[79].mxu0 }
0x336d   :  { %v6853_v57 = vadd.f32 %v7506_v6, %v6852_v56  ;;  %v7513_v6 = vld [vmem:[#allocation27 + $0x1] ss:$0 sm:$0xff] }
0x336e   :  { %v6862_v58 = vmul.f32 0.70710677, %v6858_v54  ;;  %v6910_v48 = vmul.f32 0.5, %v6858_v54 }
0x336f   :  { %v6861_v61 = vmul.f32 0.70710677, %v6853_v57  ;;  %v6909_v3 = vmul.f32 0.5, %v6853_v57 }
0x3370   :  { %v6864_v1 = vand.u32 2147483647, %v6862_v58  ;;  %vm6904_vm10 = vcmp.ge.f32.partialorder %v6862_v58, 0.0 }
0x3371   :  { %v6863_v10 = vand.u32 2147483647, %v6861_v61  ;;  %vm6903_vm11 = vcmp.ge.f32.partialorder %v6861_v61, 0.0 }
0x3372   :  { %v6866_v12 = vmul.f32 0.3275911, %v6864_v1  ;;  %v6892_v51 = vsub.f32 0.0, %v6864_v1 }
0x3373   :  { %v6865_v55 = vmul.f32 0.3275911, %v6863_v10  ;;  %v6891_v2 = vsub.f32 0.0, %v6863_v10 }
0x3374   :  { %v6868_v49 = vadd.f32 1.0, %v6866_v12  ;;  %v6894_v40 = vmul.f32 %v6892_v51, %v6864_v1 }
0x3375   :  { %v6867_v29 = vadd.f32 1.0, %v6865_v55  ;;  %v6893_v23 = vmul.f32 %v6891_v2, %v6863_v10 }
0x3376   :  { %8591 = vrcp.f32 %v6868_v49  ;;  %v6897_v14 = vmul.f32 1.442695, %v6894_v40 }
0x3377   :  { %8593 = vrcp.f32 %v6867_v29  ;;  %v6895_v20 = vmul.f32 1.442695, %v6893_v23  ;;  %v7063_v23 = vld [vmem:[#allocation28 + $0x10] sm:$0xff] }
0x3378   :  { %8595 = vpow2.f32 %v6897_v14 }
0x3379   :  { %8597 = vpow2.f32 %v6895_v20 }
0x3380   :  { %v8592_v7 = vpop.eup %8591 }
0x3381   :  { %v8594_v8 = vpop.eup %8593  ;;  %v6874_v9 = vmul.f32 1.0614054, %v8592_v7 }
0x3382   :  { %v6873_v11 = vmul.f32 1.0614054, %v8594_v8  ;;  %v8596_v43 = vpop.eup %8595 }
0x3383   :  { %v7510_v13 = vadd.f32 -1.4531521, %v6874_v9  ;;  %v8598_v15 = vpop.eup %8597  ;;  %v7062_v9 = vld [vmem:[#allocation28 + $0x8] sm:$0xff] }
0x3384   :  { %v7509_v44 = vadd.f32 -1.4531521, %v6873_v11 }
0x3385   :  { %v6878_v19 = vmul.f32 %v8592_v7, %v7510_v13  ;;  %v7064_v13 = vld [vmem:[#allocation28 + $0x18] sm:$0xff] }
0x3386   :  { %v6877_v60 = vmul.f32 %v8594_v8, %v7509_v44  ;;  %v8384_v14 = vpack.c.bf16 %v7064_v13, %v7063_v23  ;;  %v9092_v44 = vmov 0.0|0.0  }
0x3387   :  { %v6880_v21 = vadd.f32 1.4214138, %v6878_v19 }
0x3388   :  { %v6879_v36 = vadd.f32 1.4214138, %v6877_v60 }
0x3389   :  { %v6882_v27 = vmul.f32 %v8592_v7, %v6880_v21 }
0x338a   :  { %v6881_v22 = vmul.f32 %v8594_v8, %v6879_v36 }
0x338b   :  { %v7512_v39 = vadd.f32 -0.28449672, %v6882_v27 }
0x338c   :  { %v7511_v37 = vadd.f32 -0.28449672, %v6881_v22  ;;  %v7046_v22 = vrot.slane %v10295_v17, %v3772_v50 }
0x338d   :  { %v6886_v47 = vmul.f32 %v8592_v7, %v7512_v39 }
0x338e   :  { %v6885_v5 = vmul.f32 %v8594_v8, %v7511_v37 }
0x338f   :  { %v6888_v25 = vadd.f32 0.2548296, %v6886_v47 }
0x3390   :  { %v6887_v46 = vadd.f32 0.2548296, %v6885_v5  ;;  %v7052_v5 = vrot.slane %v10295_v17, %v3778_v52  ;;  %v7162_v52 = vld [vmem:[#allocation31 + $0x8] sm:$0xff] }
0x3391   :  { %v6890_v34 = vmul.f32 %v8592_v7, %v6888_v25  ;;  %v8389_v17 = vpack.c.bf16 %v7162_v52, %v7161_v38 }
0x3392   :  { %v6889_v35 = vmul.f32 %v8594_v8, %v6887_v46 }
0x3393   :  { %v6900_v24 = vmul.f32 %v8596_v43, %v6890_v34  ;;  %v7056_v43 = vstv %s7514_s14 }
0x3394   :  { %v6899_v28 = vmul.f32 %v8598_v15, %v6889_v35  ;;  %v3783_v35 = vstv %s3782_s24 }
0x3395   :  { %v6902_v30 = vsub.f32 1.0, %v6900_v24  ;;  %v3785_v50 = vmul.f32 %v3783_v35, %v9917_v59  ;;  %v7515_v59 = vld [vmem:[#allocation30] ss:$0 sm:$0xff] }
0x3396   :  { %v6901_v18 = vsub.f32 1.0, %v6899_v28 }
0x3397   :  { %v6906_v0 = vsub.f32 0.0, %v6902_v30 }
0x3398   :  { %v6905_v63 = vsub.f32 0.0, %v6901_v18 }
0x3399   :  { %v6908_v31 = vsel %vm6904_vm10, %v6902_v30, %v6906_v0  ;;  %v3784_v30 = vmul.f32 %v3783_v35, %v9912_v16 }
0x339a   :  { %v6912_v42 = vadd.f32 1.0, %v6908_v31  ;;  %v6907_v4 = vsel %vm6903_vm11, %v6901_v18, %v6905_v63  ;;  %v7163_v31 = vld [vmem:[#allocation31 + $0x10] sm:$0xff] }
0x339b   :  { %v6911_v41 = vadd.f32 1.0, %v6907_v4 }
0x339c   :  { %v6914_v62 = vmul.f32 %v6912_v42, %v6910_v48  ;;  %v7164_v42 = vld [vmem:[#allocation31 + $0x18] sm:$0xff] }
0x339d   :  { %v6913_v53 = vmul.f32 %v6911_v41, %v6909_v3  ;;  %v8392_v16 = vpack.c.bf16 %v7164_v42, %v7163_v31 }
0x339f   :  { %8208 = vmatprep.mubr.f32.mxu0 %v6913_v53 }
0x33a0   :  { %8209 = vmatmul.mubr.f32.vlgmr.msra.gmra.mrb[80].mxu0 %v6914_v62 }
0x3473   :  { %v8210_v32 = vpop.f32.mrb[80].mxu0 }
0x3474   :  { %v7012_v56 = vadd.f32 %v8210_v32, %v7513_v6  ;;  %v7006_v1 = vpop.f32.mrb[81].mxu0  ;;  %v7272_v32 = vld [vmem:[%s10380_s22] sm:$0xff] }
0x3475   :  { %v7007_v10 = vadd.f32 %v7513_v6, %v7006_v1 }
0x3476   :  { %v7016_v12 = vadd.f32 %v7012_v56, %v10305_v45  ;;  %v7273_v56 = vld [vmem:[%s10380_s22 + $0x8] sm:$0xff] }
0x3477   :  { %v7015_v58 = vadd.f32 %v7007_v10, %v10301_v33  ;;  %v7061_v33 = vld [vmem:[#allocation28] sm:$0xff]  ;;  %v8395_v1 = vpack.c.bf16 %v7273_v56, %v7272_v32 }
0x3478   :  { %v7020_v61 = vsel %vm429_vm2, %v7016_v12, 0.0  ;;  %v8380_v11 = vpack.c.bf16 %v7062_v9, %v7061_v33  ;;  %v7274_v10 = vld [vmem:[%s10380_s22 + $0x10] sm:$0xff] }
0x3479   :  { %7021 = vadd.xlane.f32.xlu0 %v7020_v61  ;;  %v7017_v57 = vsel %vm429_vm2, %v7015_v58, 0.0 }
0x347a   :  { %7018 = vadd.xlane.f32.xlu1 %v7017_v57  ;;  %8381 = vmatprep.subr.bf16.mxu1 %v8380_v11 }
0x347b   :  { %8383 = vmatpush3.bf16.msra.mxu1 %v8380_v11 }
0x347c   :  { %8385 = vmatprep.subr.bf16.mxu1 %v8384_v14 }
0x347f   :  { %8387 = vmatpush3.bf16.msra.mxu1 %v8384_v14 }
0x3480   :  { %8388 = vmatprep.subr.bf16.mxu1 %v9092_v44 }
0x3506   :  { %v7022_v54 = vpop.xlane.xlu0 %7021 }
0x3507   :  { %v7024_v55 = vmul.f32 0.03125, %v7022_v54  ;;  %v7019_v49 = vpop.xlane.xlu1 %7018 }
0x3508   :  { %v7023_v29 = vmul.f32 0.03125, %v7019_v49 }
0x3509   :  { %v7026_v51 = vsub.f32 %v7016_v12, %v7024_v55  ;;  %v7275_v12 = vld [vmem:[%s10380_s22 + $0x18] sm:$0xff] }
0x350a   :  { %v7025_v2 = vsub.f32 %v7015_v58, %v7023_v29  ;;  %v7518_v58 = vld [vmem:[#allocation33] ss:$0 sm:$0xff] }
0x350b   :  { %v7028_v7 = vmul.f32 %v7026_v51, %v7026_v51 }
0x350c   :  { %v7027_v40 = vmul.f32 %v7025_v2, %v7025_v2 }
0x350d   :  { %v7032_v8 = vsel %vm429_vm2, %v7028_v7, 0.0 }
0x350e   :  { %7033 = vadd.xlane.f32.xlu0 %v7032_v8  ;;  %v7029_v45 = vsel %vm429_vm2, %v7027_v40, 0.0 }
0x350f   :  { %7030 = vadd.xlane.f32.xlu1 %v7029_v45 }
0x359b   :  { %v7034_v19 = vpop.xlane.xlu0 %7033 }
0x359c   :  { %v7036_v20 = vmul.f32 0.03125, %v7034_v19  ;;  %v7031_v60 = vpop.xlane.xlu1 %7030 }
0x359d   :  { %v7035_v21 = vmul.f32 0.03125, %v7031_v60 }
0x359e   :  { %v7038_v36 = vadd.f32 1e-05, %v7036_v20 }
0x359f   :  { %v7037_v27 = vadd.f32 1e-05, %v7035_v21 }
0x35a0   :  { %8599 = vrsqrt.f32 %v7038_v36 }
0x35a1   :  { %8601 = vrsqrt.f32 %v7037_v27 }
0x35aa   :  { %v8600_v39 = vpop.eup %8599 }
0x35ab   :  { %v8602_v37 = vpop.eup %8601  ;;  %v7042_v47 = vmul.f32 %v8600_v39, %v7026_v51 }
0x35ac   :  { %v7041_v25 = vmul.f32 %v8602_v37, %v7025_v2 }
0x35ad   :  { %v7048_v46 = vmul.f32 %v7046_v22, %v7042_v47  ;;  %v7522_v47 = vld [vmem:[%s10381_s23] ss:$0 sm:$0xff] }
0x35ae   :  { %v7047_v34 = vmul.f32 %v7046_v22, %v7041_v25 }
0x35af   :  { %v7054_v15 = vadd.f32 %v7052_v5, %v7048_v46 }
0x35b0   :  { %v7053_v24 = vadd.f32 %v7052_v5, %v7047_v34 }
0x35b1   :  { %v7058_v28 = vmul.f32 %v7056_v43, %v7054_v15 }
0x35b2   :  { %v7057_v18 = vmul.f32 %v7056_v43, %v7053_v24 }
0x35b3   :  { %v7060_v63 = vadd.f32 %v7058_v28, %v3785_v50 }
0x35b4   :  { %v7059_v0 = vadd.f32 %v7057_v18, %v3784_v30 }
0x35b6   :  { %8219 = vmatprep.mubr.msk.f32.mxu1 %vm429_vm2, %v7059_v0 }
0x35b7   :  { %8220 = vmatmul.mubr.msk.f32.vlgmr.msra.gmra.mrb[70].mxu1 %vm429_vm2, %v7060_v63 }
0x35b8   :  { %8230 = vmatprep.mubr.msk.f32.mxu1 %vm9080_vm3, %v9079_v26  ;;  %8390 = vmatpush3.bf16.msra.mxu1 %v8389_v17 }
0x35b9   :  { %8391 = vmatprep.subr.bf16.mxu1 %v9092_v44 }
0x35bc   :  { %8393 = vmatpush3.bf16.msra.mxu1 %v8392_v16 }
0x35bd   :  { %8394 = vmatprep.subr.bf16.mxu1 %v9092_v44 }
0x368a   :  { %v8221_v4 = vpop.f32.mrb[70].mxu1 }
0x368b   :  { %v7150_v3 = vadd.f32 %v8221_v4, %v7515_v59  ;;  %v7144_v41 = vpop.f32.mrb[71].mxu1 }
0x368c   :  { %v7145_v48 = vadd.f32 %v7515_v59, %v7144_v41 }
0x368d   :  { %v7157_v53 = vrot.slane %v7150_v3, 6 }
0x368e   :  { %v7154_v62 = vrot.slane %v7145_v48, 7 }
0x3690   :  { %v7160_v6 = vsel %vm7159_vm12, %v7154_v62, %v7157_v53 }
0x3691   :  { %8231 = vmatmul.mubr.msk.f32.vlgmr.msra.gmra.mrb[72].mxu1 %vm429_vm2, %v7160_v6 }
0x3692   :  { %8241 = vmatprep.mubr.msk.f32.mxu1 %vm9080_vm3, %v9079_v26  ;;  %8396 = vmatpush3.bf16.msra.mxu1 %v8395_v1  ;;  %v8398_v26 = vpack.c.bf16 %v7275_v12, %v7274_v10 }
0x3693   :  { %8397 = vmatprep.subr.bf16.mxu1 %v9092_v44 }
0x3696   :  { %8399 = vmatpush3.bf16.msra.mxu1 %v8398_v26 }
0x3764   :  { %v7241_v61 = vpop.f32.mrb[72].mxu1 }
0x3765   :  { %v7242_v57 = vadd.f32 %v7518_v58, %v7241_v61  ;;  %v8232_v54 = vpop.f32.mrb[73].mxu1 }
0x3767   :  { %v7245_v55 = vmul.f32 0.70710677, %v7242_v57  ;;  %v7269_v22 = vmul.f32 0.5, %v7242_v57 }
0x3769   :  { %v7246_v49 = vand.u32 2147483647, %v7245_v55  ;;  %vm7266_vm13 = vcmp.ge.f32.partialorder %v7245_v55, 0.0 }
0x376b   :  { %v7247_v29 = vmul.f32 0.3275911, %v7246_v49  ;;  %v7260_v2 = vsub.f32 0.0, %v7246_v49 }
0x376d   :  { %v7248_v51 = vadd.f32 1.0, %v7247_v29  ;;  %v7261_v40 = vmul.f32 %v7260_v2, %v7246_v49 }
0x376f   :  { %8603 = vrcp.f32 %v7248_v51  ;;  %v7262_v33 = vmul.f32 1.442695, %v7261_v40 }
0x3771   :  { %8605 = vpow2.f32 %v7262_v33 }
0x3779   :  { %v8604_v7 = vpop.eup %8603 }
0x377a   :  { %v7251_v8 = vmul.f32 1.0614054, %v8604_v7 }
0x377b   :  { %v8606_v20 = vpop.eup %8605 }
0x377c   :  { %v7520_v45 = vadd.f32 -1.4531521, %v7251_v8 }
0x377e   :  { %v7253_v9 = vmul.f32 %v8604_v7, %v7520_v45 }
0x3780   :  { %v7254_v23 = vadd.f32 1.4214138, %v7253_v9 }
0x3782   :  { %v7255_v11 = vmul.f32 %v8604_v7, %v7254_v23 }
0x3784   :  { %v7521_v13 = vadd.f32 -0.28449672, %v7255_v11 }
0x3786   :  { %v7257_v14 = vmul.f32 %v8604_v7, %v7521_v13 }
0x3788   :  { %v7258_v44 = vadd.f32 0.2548296, %v7257_v14 }
0x378a   :  { %v7259_v19 = vmul.f32 %v8604_v7, %v7258_v44 }
0x378c   :  { %v7264_v60 = vmul.f32 %v8606_v20, %v7259_v19 }
0x378e   :  { %v7265_v21 = vsub.f32 1.0, %v7264_v60 }
0x3790   :  { %v7267_v36 = vsub.f32 0.0, %v7265_v21 }
0x3792   :  { %v7268_v27 = vsel %vm7266_vm13, %v7265_v21, %v7267_v36 }
0x3793   :  { %v7270_v39 = vadd.f32 1.0, %v7268_v27 }
0x3795   :  { %v7271_v37 = vmul.f32 %v7270_v39, %v7269_v22 }
0x3797   :  { %8242 = vmatmul.mubr.msk.f32.vlgmr.msra.gmra.mrb[74].mxu1 %vm429_vm2, %v7271_v37 }
0x386a   :  { %v7352_v5 = vpop.f32.mrb[74].mxu1 }
0x386b   :  { %v7353_v25 = vadd.f32 %v7522_v47, %v7352_v5  ;;  %v8243_v46 = vpop.f32.mrb[75].mxu1 }
0x386d   :  { %7356 = vst [vmem:[#allocation34] sm:$0x3] %v7353_v25 }
0x386e   :  { %9016 = shalt.err (!%p9013_p10)
}
0x386f   :  { %s10412_s3 = sld [smem:[#allocation56_spill]] }
0x3875   :  { %s9017_s5 = scalar_lea.hbm %s10412_s3, 32 }
0x3876   :  { %p9018_p11 = scmp.ne.s32.totalorder %s10412_s3, %s9017_s5  ;;  %p9021_p12 = scmp.lt.u32.totalorder %s9017_s5, %s10412_s3 }
0x3878   :  { %p9023_p13 = pnand %p9021_p12, %p9018_p11 }
0x387a   :  { %9026 = shalt.err (!%p9023_p13)
}
0x387b   :  { %7366 = dma.vmem_to_hbm [thread:$0]  %s7364_s7, 32, %s10412_s3, [#allocation5]  }
0x387c   :  { %9049 = dma.done.wait [#allocation5], 32  }
0x387d   :  { %9050 = vsyncadd [#allocation5], 4294967264 }
0x387e   :  { %7370 = vsyncpa [#allocation4], 1 }
0x387f   :  { %7371 = vsyncpa [#allocation11], 1 }
0x3880   :  { %7372 = vsyncpa [#allocation14], 1 }
0x3881   :  { %7373 = vsyncpa [#allocation17], 1 }
0x3882   :  { %7374 = vsyncpa [#allocation20], 1 }
0x3883   :  { %7375 = vsyncpa [#allocation23], 1 }
0x3884   :  { %7376 = vsyncpa [#allocation26], 1 }
0x3885   :  { %7377 = vsyncpa [#allocation29], 1 }
0x3886   :  { %7378 = vsyncpa [#allocation32], 1 }
0x3887   :  { %7379 = vsyncpa [#allocation5], 1 }
0x3888   :  { %7380 = vsyncpa [#allocation6], 1 }
0x3889   :  { %7381 = vsyncpa [#allocation8], 1 }

</bundles_post_ra>
